<compile_context>
chip_gen: v7x
topology: tpu7x:2x2x1
jax: 0.10.0
libtpu: 0.0.40
codegen_flags: <defaults>
</compile_context>

<pallas_src>
import jax
import jax.numpy as jnp
from jax.experimental import pallas as pl
from jax.experimental.pallas import tpu as pltpu


def mlp_kernel(x_ref, w1_ref, b1_ref, w2_ref, b2_ref,
               w3_ref, b3_ref, w4_ref, b4_ref, o_ref):
    # Fully fused 4-layer MLP for one batch tile; everything resident in VMEM.
    # Matmuls accumulate in f32 on the MXU; bias adds / ReLUs are VPU filler
    # hidden under MXU/DMA slack (do NOT hoist them into the wrapper).
    x = x_ref[...]
    h1 = jnp.dot(x, w1_ref[...], preferred_element_type=jnp.float32) + b1_ref[...]
    h1 = jnp.maximum(h1, 0.0)

    h2 = jnp.dot(h1.astype(w2_ref.dtype), w2_ref[...],
                 preferred_element_type=jnp.float32) + b2_ref[...]
    h2 = jnp.maximum(h2, 0.0)

    h3 = jnp.dot(h2.astype(w3_ref.dtype), w3_ref[...],
                 preferred_element_type=jnp.float32) + b3_ref[...]
    h3 = jnp.maximum(h3, 0.0)

    h4 = jnp.dot(h3.astype(w4_ref.dtype), w4_ref[...],
                 preferred_element_type=jnp.float32) + b4_ref[...]
    o_ref[...] = h4.astype(o_ref.dtype)


def _pad2d(a, rows=None, cols=None):
    r, c = a.shape
    pr = (rows - r) if rows is not None else 0
    pc = (cols - c) if cols is not None else 0
    if pr or pc:
        a = jnp.pad(a, ((0, pr), (0, pc)))
    return a


def _vmem_capacity_bytes():
    """Per-core VMEM capacity; conservative (v7x = 64 MiB) fallback if query fails."""
    try:
        cap = getattr(pltpu.get_tpu_info(), "vmem_capacity_bytes", None)
        if cap:
            return int(cap)
    except Exception:
        pass
    return 64 << 20


def mlp_forward(x, params, *, bm=2048, use_bf16=True):
    """x: (B, 784) float32. params: dict of weights/biases. Returns (B, 10) float32.

    bm: requested batch tile (clamped to a 128-aligned value covering the batch,
        and split so the grid has >= 2 steps when B is large enough -> v7x 2-TC).
    use_bf16: bf16 operands / bf16 padded output with f32 MXU accumulation (default).
              Set False for a bit-exact f32 path.
    """
    B, D_in = x.shape
    assert D_in == 28 * 28
    D_out = params["w4"].shape[1]             # 10
    D_out_pad = 128                            # lane-dense output width

    # --- pick an effective, 128-aligned batch tile ---------------------------
    bm_eff = max(128, (bm // 128) * 128)
    b_round = pl.cdiv(B, 128) * 128
    bm_eff = min(bm_eff, b_round)              # don't over-pad tiny batches
    if b_round >= 256:
        # Ensure >= 2 grid steps so the "parallel" axis shards across both
        # TensorCores on v7x (negligible cost on single-TC v5e/v6e).
        bm_eff = min(bm_eff, max(128, (b_round // 2) // 128 * 128))
    B_pad = pl.cdiv(B, bm_eff) * bm_eff
    if B_pad != B:
        x = jnp.pad(x, ((0, B_pad - B), (0, 0)))

    # --- pad weights to lane-dense (multiple-of-128) shapes (exact: zero pad) --
    # Layer 1: 784x64 -> 784x128 (extra columns zero => padded h1 cols are 0).
    # Layer 2: 64x128 -> 128x128 (extra rows zero => padded h1 cols ignored).
    # Layer 4: 256x10 -> 256x128 (extra output cols zero, sliced off below).
    w1 = _pad2d(params["w1"], cols=128)
    b1 = _pad2d(params["b1"], cols=128)
    w2 = _pad2d(params["w2"], rows=128)
    b2 = params["b2"]
    w3 = params["w3"]
    b3 = params["b3"]
    w4 = _pad2d(params["w4"], cols=D_out_pad)
    b4 = _pad2d(params["b4"], cols=D_out_pad)

    if use_bf16:
        # bf16 operands + bf16 (lane-dense) output; f32 accumulation on the MXU;
        # biases stay f32 and are added post-accumulate.
        x = x.astype(jnp.bfloat16)
        w1, w2, w3, w4 = (w.astype(jnp.bfloat16) for w in (w1, w2, w3, w4))
        out_dtype = jnp.bfloat16
    else:
        out_dtype = jnp.float32

    grid = (B_pad // bm_eff,)

    # --- VMEM budget: 2x x tile + 2x out tile + weights + f32 intermediates ----
    in_isz = x.dtype.itemsize
    out_isz = jnp.dtype(out_dtype).itemsize
    w_bytes = sum(int(a.size) * a.dtype.itemsize
                  for a in (w1, b1, w2, b2, w3, b3, w4, b4))
    inter_bytes = bm_eff * (128 + 128 + 256 + D_out_pad) * 4   # h1..h4 in f32
    vmem_needed = (2 * bm_eff * D_in * in_isz
                   + 2 * bm_eff * D_out_pad * out_isz
                   + 2 * w_bytes
                   + inter_bytes)
    vmem_limit = max(int(vmem_needed * 1.5) + (4 << 20), 16 << 20)
    vmem_limit = min(vmem_limit, int(0.8 * _vmem_capacity_bytes()))

    def build_call(single_buffer_weights):
        def whole(shape):
            # Grid-invariant weights/biases: single-buffer them to save VMEM.
            if single_buffer_weights:
                return pl.BlockSpec(shape, lambda i: (0,) * len(shape),
                                    pipeline_mode=pl.Buffered(1))
            return pl.BlockSpec(shape, lambda i: (0,) * len(shape))

        return pl.pallas_call(
            mlp_kernel,
            out_shape=jax.ShapeDtypeStruct((B_pad, D_out_pad), out_dtype),
            grid_spec=pltpu.PrefetchScalarGridSpec(
                num_scalar_prefetch=0,
                grid=grid,
                in_specs=[
                    pl.BlockSpec((bm_eff, D_in), lambda i: (i, 0)),   # x tile
                    whole(w1.shape), whole(b1.shape),
                    whole(w2.shape), whole(b2.shape),
                    whole(w3.shape), whole(b3.shape),
                    whole(w4.shape), whole(b4.shape),
                ],
                out_specs=pl.BlockSpec((bm_eff, D_out_pad), lambda i: (i, 0)),
            ),
            compiler_params=pltpu.CompilerParams(
                dimension_semantics=("parallel",),
                vmem_limit_bytes=vmem_limit,
            ),
        )

    args = (x, w1, b1, w2, b2, w3, b3, w4, b4)
    try:
        out = build_call(True)(*args)
    except Exception:
        # Fallback for Pallas versions that reject Buffered(1) on inputs.
        out = build_call(False)(*args)

    # Slice off batch padding and the zero-padded output columns.
    out = out[:B, :D_out]
    return out.astype(jnp.float32) if use_bf16 else out


def init_params(key):
    """Deterministic init. Weights stored as (in, out); biases as (1, out)."""
    dims = [(28 * 28, 64), (64, 128), (128, 256), (256, 10)]
    params = {}
    keys = jax.random.split(key, 2 * len(dims))
    for idx, (fan_in, fan_out) in enumerate(dims):
        bound = 1.0 / jnp.sqrt(fan_in)  # PyTorch Linear default uniform bound
        w = jax.random.uniform(keys[2 * idx], (fan_in, fan_out),
                               jnp.float32, -bound, bound)
        b = jax.random.uniform(keys[2 * idx + 1], (1, fan_out),
                               jnp.float32, -bound, bound)
        params[f"w{idx + 1}"] = w
        params[f"b{idx + 1}"] = b
    return params


def mlp_reference(x, params):
    h = jnp.maximum(x @ params["w1"] + params["b1"], 0.0)
    h = jnp.maximum(h @ params["w2"] + params["b2"], 0.0)
    h = jnp.maximum(h @ params["w3"] + params["b3"], 0.0)
    return h @ params["w4"] + params["b4"]


if __name__ == "__main__":
    key = jax.random.PRNGKey(0)
    k_x, k_p = jax.random.split(key)

    B = 8
    x = jax.random.normal(k_x, (B, 28 * 28), dtype=jnp.float32)
    params = init_params(k_p)
    ref = mlp_reference(x, params)

    # Default path: bf16 operands/output, f32 accumulate (the memory-bound win).
    out = jax.block_until_ready(mlp_forward(x, params))
    assert out.shape == (B, 10), out.shape
    assert jnp.allclose(out, ref, atol=5e-2, rtol=5e-2), float(
        jnp.max(jnp.abs(out - ref)))

    # Exact f32 path — matches the f32 reference tightly.
    out_f32 = jax.block_until_ready(mlp_forward(x, params, use_bf16=False))
    assert jnp.allclose(out_f32, ref, atol=1e-4, rtol=1e-4), float(
        jnp.max(jnp.abs(out_f32 - ref)))

    print("KERNEL_OK")
</pallas_src>

<mosaic_0001>
module attributes {stable_mosaic.version = 11 : i64} {
  func.func @mlp_kernel(%arg0: i32, %arg1: memref<128x784xbf16, #tpu.memory_space<vmem>>, %arg2: memref<784x128xbf16, #tpu.memory_space<vmem>>, %arg3: memref<1x128xf32, #tpu.memory_space<vmem>>, %arg4: memref<128x128xbf16, #tpu.memory_space<vmem>>, %arg5: memref<1x128xf32, #tpu.memory_space<vmem>>, %arg6: memref<128x256xbf16, #tpu.memory_space<vmem>>, %arg7: memref<1x256xf32, #tpu.memory_space<vmem>>, %arg8: memref<256x128xbf16, #tpu.memory_space<vmem>>, %arg9: memref<1x128xf32, #tpu.memory_space<vmem>>, %arg10: memref<128x128xbf16, #tpu.memory_space<vmem>>) attributes {dimension_semantics = [#tpu.dimension_semantics<parallel>], iteration_bounds = array<i64: 1>, scalar_prefetch = 0 : i64, scratch_operands = 0 : i64, tpu.core_type = #tpu.core_type<tc>, window_params = [{transform_indices = @transform_0, window_bounds = array<i64: 128, 784>}, {pipeline_mode = #tpu.pipeline_mode<synchronous>, transform_indices = @transform_1, window_bounds = array<i64: 784, 128>}, {pipeline_mode = #tpu.pipeline_mode<synchronous>, transform_indices = @transform_2, window_bounds = array<i64: 1, 128>}, {pipeline_mode = #tpu.pipeline_mode<synchronous>, transform_indices = @transform_3, window_bounds = array<i64: 128, 128>}, {pipeline_mode = #tpu.pipeline_mode<synchronous>, transform_indices = @transform_4, window_bounds = array<i64: 1, 128>}, {pipeline_mode = #tpu.pipeline_mode<synchronous>, transform_indices = @transform_5, window_bounds = array<i64: 128, 256>}, {pipeline_mode = #tpu.pipeline_mode<synchronous>, transform_indices = @transform_6, window_bounds = array<i64: 1, 256>}, {pipeline_mode = #tpu.pipeline_mode<synchronous>, transform_indices = @transform_7, window_bounds = array<i64: 256, 128>}, {pipeline_mode = #tpu.pipeline_mode<synchronous>, transform_indices = @transform_8, window_bounds = array<i64: 1, 128>}, {transform_indices = @transform_9, window_bounds = array<i64: 128, 128>}]} {
    %c0 = arith.constant 0 : index
    %c0_0 = arith.constant 0 : index
    %0 = vector.load %arg1[%c0, %c0_0] : memref<128x784xbf16, #tpu.memory_space<vmem>>, vector<128x784xbf16>
    %c0_1 = arith.constant 0 : index
    %c0_2 = arith.constant 0 : index
    %1 = vector.load %arg2[%c0_1, %c0_2] : memref<784x128xbf16, #tpu.memory_space<vmem>>, vector<784x128xbf16>
    %cst = arith.constant dense<0.000000e+00> : vector<128x128xf32>
    %2 = tpu.matmul %0, %1, %cst {dimension_numbers = #tpu.dot_dimension_numbers<[1], [0], [0], [1], [0, 0, 1, 1], [], []>} : vector<128x784xbf16>, vector<784x128xbf16>, vector<128x128xf32> -> vector<128x128xf32>
    %c0_3 = arith.constant 0 : index
    %c0_4 = arith.constant 0 : index
    %3 = vector.load %arg3[%c0_3, %c0_4] : memref<1x128xf32, #tpu.memory_space<vmem>>, vector<1x128xf32>
    %4 = vector.broadcast %3 : vector<1x128xf32> to vector<128x128xf32>
    %5 = arith.addf %2, %4 : vector<128x128xf32>
    %cst_5 = arith.constant 0.000000e+00 : f32
    %6 = vector.broadcast %cst_5 : f32 to vector<128x128xf32>
    %7 = arith.maximumf %5, %6 : vector<128x128xf32>
    %8 = arith.truncf %7 : vector<128x128xf32> to vector<128x128xbf16>
    %c0_6 = arith.constant 0 : index
    %c0_7 = arith.constant 0 : index
    %9 = vector.load %arg4[%c0_6, %c0_7] : memref<128x128xbf16, #tpu.memory_space<vmem>>, vector<128x128xbf16>
    %cst_8 = arith.constant dense<0.000000e+00> : vector<128x128xf32>
    %10 = tpu.matmul %8, %9, %cst_8 {dimension_numbers = #tpu.dot_dimension_numbers<[1], [0], [0], [1], [0, 0, 1, 1], [], []>} : vector<128x128xbf16>, vector<128x128xbf16>, vector<128x128xf32> -> vector<128x128xf32>
    %c0_9 = arith.constant 0 : index
    %c0_10 = arith.constant 0 : index
    %11 = vector.load %arg5[%c0_9, %c0_10] : memref<1x128xf32, #tpu.memory_space<vmem>>, vector<1x128xf32>
    %12 = vector.broadcast %11 : vector<1x128xf32> to vector<128x128xf32>
    %13 = arith.addf %10, %12 : vector<128x128xf32>
    %cst_11 = arith.constant 0.000000e+00 : f32
    %14 = vector.broadcast %cst_11 : f32 to vector<128x128xf32>
    %15 = arith.maximumf %13, %14 : vector<128x128xf32>
    %16 = arith.truncf %15 : vector<128x128xf32> to vector<128x128xbf16>
    %c0_12 = arith.constant 0 : index
    %c0_13 = arith.constant 0 : index
    %17 = vector.load %arg6[%c0_12, %c0_13] : memref<128x256xbf16, #tpu.memory_space<vmem>>, vector<128x256xbf16>
    %cst_14 = arith.constant dense<0.000000e+00> : vector<128x256xf32>
    %18 = tpu.matmul %16, %17, %cst_14 {dimension_numbers = #tpu.dot_dimension_numbers<[1], [0], [0], [1], [0, 0, 1, 1], [], []>} : vector<128x128xbf16>, vector<128x256xbf16>, vector<128x256xf32> -> vector<128x256xf32>
    %c0_15 = arith.constant 0 : index
    %c0_16 = arith.constant 0 : index
    %19 = vector.load %arg7[%c0_15, %c0_16] : memref<1x256xf32, #tpu.memory_space<vmem>>, vector<1x256xf32>
    %20 = vector.broadcast %19 : vector<1x256xf32> to vector<128x256xf32>
    %21 = arith.addf %18, %20 : vector<128x256xf32>
    %cst_17 = arith.constant 0.000000e+00 : f32
    %22 = vector.broadcast %cst_17 : f32 to vector<128x256xf32>
    %23 = arith.maximumf %21, %22 : vector<128x256xf32>
    %24 = arith.truncf %23 : vector<128x256xf32> to vector<128x256xbf16>
    %c0_18 = arith.constant 0 : index
    %c0_19 = arith.constant 0 : index
    %25 = vector.load %arg8[%c0_18, %c0_19] : memref<256x128xbf16, #tpu.memory_space<vmem>>, vector<256x128xbf16>
    %cst_20 = arith.constant dense<0.000000e+00> : vector<128x128xf32>
    %26 = tpu.matmul %24, %25, %cst_20 {dimension_numbers = #tpu.dot_dimension_numbers<[1], [0], [0], [1], [0, 0, 1, 1], [], []>} : vector<128x256xbf16>, vector<256x128xbf16>, vector<128x128xf32> -> vector<128x128xf32>
    %c0_21 = arith.constant 0 : index
    %c0_22 = arith.constant 0 : index
    %27 = vector.load %arg9[%c0_21, %c0_22] : memref<1x128xf32, #tpu.memory_space<vmem>>, vector<1x128xf32>
    %28 = vector.broadcast %27 : vector<1x128xf32> to vector<128x128xf32>
    %29 = arith.addf %26, %28 : vector<128x128xf32>
    %30 = arith.truncf %29 : vector<128x128xf32> to vector<128x128xbf16>
    %c0_23 = arith.constant 0 : index
    %c0_24 = arith.constant 0 : index
    %31 = vector.load %arg10[%c0_23, %c0_24] : memref<128x128xbf16, #tpu.memory_space<vmem>>, vector<128x128xbf16>
    tpu.vector_store %arg10[%c0_23, %c0_24], %30 {strides = array<i32>} : memref<128x128xbf16, #tpu.memory_space<vmem>>, vector<128x128xbf16>,
    return
  }
  func.func @transform_0(%arg0: i32) -> (i32, i32) {
    %c0_i32 = arith.constant 0 : i32
    %c0_i32_0 = arith.constant 0 : i32
    return %arg0, %c0_i32 : i32, i32
  }
  func.func @transform_1(%arg0: i32) -> (i32, i32) {
    %c0_i32 = arith.constant 0 : i32
    %c0_i32_0 = arith.constant 0 : i32
    %c0_i32_1 = arith.constant 0 : i32
    return %c0_i32, %c0_i32_0 : i32, i32
  }
  func.func @transform_2(%arg0: i32) -> (i32, i32) {
    %c0_i32 = arith.constant 0 : i32
    %c0_i32_0 = arith.constant 0 : i32
    %c0_i32_1 = arith.constant 0 : i32
    return %c0_i32, %c0_i32_0 : i32, i32
  }
  func.func @transform_3(%arg0: i32) -> (i32, i32) {
    %c0_i32 = arith.constant 0 : i32
    %c0_i32_0 = arith.constant 0 : i32
    %c0_i32_1 = arith.constant 0 : i32
    return %c0_i32, %c0_i32_0 : i32, i32
  }
  func.func @transform_4(%arg0: i32) -> (i32, i32) {
    %c0_i32 = arith.constant 0 : i32
    %c0_i32_0 = arith.constant 0 : i32
    %c0_i32_1 = arith.constant 0 : i32
    return %c0_i32, %c0_i32_0 : i32, i32
  }
  func.func @transform_5(%arg0: i32) -> (i32, i32) {
    %c0_i32 = arith.constant 0 : i32
    %c0_i32_0 = arith.constant 0 : i32
    %c0_i32_1 = arith.constant 0 : i32
    return %c0_i32, %c0_i32_0 : i32, i32
  }
  func.func @transform_6(%arg0: i32) -> (i32, i32) {
    %c0_i32 = arith.constant 0 : i32
    %c0_i32_0 = arith.constant 0 : i32
    %c0_i32_1 = arith.constant 0 : i32
    return %c0_i32, %c0_i32_0 : i32, i32
  }
  func.func @transform_7(%arg0: i32) -> (i32, i32) {
    %c0_i32 = arith.constant 0 : i32
    %c0_i32_0 = arith.constant 0 : i32
    %c0_i32_1 = arith.constant 0 : i32
    return %c0_i32, %c0_i32_0 : i32, i32
  }
  func.func @transform_8(%arg0: i32) -> (i32, i32) {
    %c0_i32 = arith.constant 0 : i32
    %c0_i32_0 = arith.constant 0 : i32
    %c0_i32_1 = arith.constant 0 : i32
    return %c0_i32, %c0_i32_0 : i32, i32
  }
  func.func @transform_9(%arg0: i32) -> (i32, i32) {
    %c0_i32 = arith.constant 0 : i32
    %c0_i32_0 = arith.constant 0 : i32
    return %arg0, %c0_i32 : i32, i32
  }
}

module attributes {stable_mosaic.version = 11 : i64} {
  func.func @mlp_kernel(%arg0: i32, %arg1: memref<128x784xbf16, #tpu.memory_space<vmem>>, %arg2: memref<784x128xbf16, #tpu.memory_space<vmem>>, %arg3: memref<1x128xf32, #tpu.memory_space<vmem>>, %arg4: memref<128x128xbf16, #tpu.memory_space<vmem>>, %arg5: memref<1x128xf32, #tpu.memory_space<vmem>>, %arg6: memref<128x256xbf16, #tpu.memory_space<vmem>>, %arg7: memref<1x256xf32, #tpu.memory_space<vmem>>, %arg8: memref<256x128xbf16, #tpu.memory_space<vmem>>, %arg9: memref<1x128xf32, #tpu.memory_space<vmem>>, %arg10: memref<128x128xbf16, #tpu.memory_space<vmem>>) attributes {dimension_semantics = [#tpu.dimension_semantics<parallel>], iteration_bounds = array<i64: 1>, scalar_prefetch = 0 : i64, scratch_operands = 0 : i64, tpu.core_type = #tpu.core_type<tc>, window_params = [{transform_indices = @transform_0, window_bounds = array<i64: 128, 784>}, {pipeline_mode = #tpu.pipeline_mode<synchronous>, transform_indices = @transform_1, window_bounds = array<i64: 784, 128>}, {pipeline_mode = #tpu.pipeline_mode<synchronous>, transform_indices = @transform_2, window_bounds = array<i64: 1, 128>}, {pipeline_mode = #tpu.pipeline_mode<synchronous>, transform_indices = @transform_3, window_bounds = array<i64: 128, 128>}, {pipeline_mode = #tpu.pipeline_mode<synchronous>, transform_indices = @transform_4, window_bounds = array<i64: 1, 128>}, {pipeline_mode = #tpu.pipeline_mode<synchronous>, transform_indices = @transform_5, window_bounds = array<i64: 128, 256>}, {pipeline_mode = #tpu.pipeline_mode<synchronous>, transform_indices = @transform_6, window_bounds = array<i64: 1, 256>}, {pipeline_mode = #tpu.pipeline_mode<synchronous>, transform_indices = @transform_7, window_bounds = array<i64: 256, 128>}, {pipeline_mode = #tpu.pipeline_mode<synchronous>, transform_indices = @transform_8, window_bounds = array<i64: 1, 128>}, {transform_indices = @transform_9, window_bounds = array<i64: 128, 128>}]} {
    %c0 = arith.constant 0 : index
    %c0_0 = arith.constant 0 : index
    %0 = vector.load %arg1[%c0, %c0_0] : memref<128x784xbf16, #tpu.memory_space<vmem>>, vector<128x784xbf16>
    %c0_1 = arith.constant 0 : index
    %c0_2 = arith.constant 0 : index
    %1 = vector.load %arg2[%c0_1, %c0_2] : memref<784x128xbf16, #tpu.memory_space<vmem>>, vector<784x128xbf16>
    %cst = arith.constant dense<0.000000e+00> : vector<128x128xf32>
    %2 = tpu.matmul %0, %1, %cst {dimension_numbers = #tpu.dot_dimension_numbers<[1], [0], [0], [1], [0, 0, 1, 1], [], []>} : vector<128x784xbf16>, vector<784x128xbf16>, vector<128x128xf32> -> vector<128x128xf32>
    %c0_3 = arith.constant 0 : index
    %c0_4 = arith.constant 0 : index
    %3 = vector.load %arg3[%c0_3, %c0_4] : memref<1x128xf32, #tpu.memory_space<vmem>>, vector<1x128xf32>
    %4 = vector.broadcast %3 : vector<1x128xf32> to vector<128x128xf32>
    %5 = arith.addf %2, %4 : vector<128x128xf32>
    %cst_5 = arith.constant 0.000000e+00 : f32
    %6 = vector.broadcast %cst_5 : f32 to vector<128x128xf32>
    %7 = arith.maximumf %5, %6 : vector<128x128xf32>
    %8 = arith.truncf %7 : vector<128x128xf32> to vector<128x128xbf16>
    %c0_6 = arith.constant 0 : index
    %c0_7 = arith.constant 0 : index
    %9 = vector.load %arg4[%c0_6, %c0_7] : memref<128x128xbf16, #tpu.memory_space<vmem>>, vector<128x128xbf16>
    %cst_8 = arith.constant dense<0.000000e+00> : vector<128x128xf32>
    %10 = tpu.matmul %8, %9, %cst_8 {dimension_numbers = #tpu.dot_dimension_numbers<[1], [0], [0], [1], [0, 0, 1, 1], [], []>} : vector<128x128xbf16>, vector<128x128xbf16>, vector<128x128xf32> -> vector<128x128xf32>
    %c0_9 = arith.constant 0 : index
    %c0_10 = arith.constant 0 : index
    %11 = vector.load %arg5[%c0_9, %c0_10] : memref<1x128xf32, #tpu.memory_space<vmem>>, vector<1x128xf32>
    %12 = vector.broadcast %11 : vector<1x128xf32> to vector<128x128xf32>
    %13 = arith.addf %10, %12 : vector<128x128xf32>
    %cst_11 = arith.constant 0.000000e+00 : f32
    %14 = vector.broadcast %cst_11 : f32 to vector<128x128xf32>
    %15 = arith.maximumf %13, %14 : vector<128x128xf32>
    %16 = arith.truncf %15 : vector<128x128xf32> to vector<128x128xbf16>
    %c0_12 = arith.constant 0 : index
    %c0_13 = arith.constant 0 : index
    %17 = vector.load %arg6[%c0_12, %c0_13] : memref<128x256xbf16, #tpu.memory_space<vmem>>, vector<128x256xbf16>
    %cst_14 = arith.constant dense<0.000000e+00> : vector<128x256xf32>
    %18 = tpu.matmul %16, %17, %cst_14 {dimension_numbers = #tpu.dot_dimension_numbers<[1], [0], [0], [1], [0, 0, 1, 1], [], []>} : vector<128x128xbf16>, vector<128x256xbf16>, vector<128x256xf32> -> vector<128x256xf32>
    %c0_15 = arith.constant 0 : index
    %c0_16 = arith.constant 0 : index
    %19 = vector.load %arg7[%c0_15, %c0_16] : memref<1x256xf32, #tpu.memory_space<vmem>>, vector<1x256xf32>
    %20 = vector.broadcast %19 : vector<1x256xf32> to vector<128x256xf32>
    %21 = arith.addf %18, %20 : vector<128x256xf32>
    %cst_17 = arith.constant 0.000000e+00 : f32
    %22 = vector.broadcast %cst_17 : f32 to vector<128x256xf32>
    %23 = arith.maximumf %21, %22 : vector<128x256xf32>
    %24 = arith.truncf %23 : vector<128x256xf32> to vector<128x256xbf16>
    %c0_18 = arith.constant 0 : index
    %c0_19 = arith.constant 0 : index
    %25 = vector.load %arg8[%c0_18, %c0_19] : memref<256x128xbf16, #tpu.memory_space<vmem>>, vector<256x128xbf16>
    %cst_20 = arith.constant dense<0.000000e+00> : vector<128x128xf32>
    %26 = tpu.matmul %24, %25, %cst_20 {dimension_numbers = #tpu.dot_dimension_numbers<[1], [0], [0], [1], [0, 0, 1, 1], [], []>} : vector<128x256xbf16>, vector<256x128xbf16>, vector<128x128xf32> -> vector<128x128xf32>
    %c0_21 = arith.constant 0 : index
    %c0_22 = arith.constant 0 : index
    %27 = vector.load %arg9[%c0_21, %c0_22] : memref<1x128xf32, #tpu.memory_space<vmem>>, vector<1x128xf32>
    %28 = vector.broadcast %27 : vector<1x128xf32> to vector<128x128xf32>
    %29 = arith.addf %26, %28 : vector<128x128xf32>
    %30 = arith.truncf %29 : vector<128x128xf32> to vector<128x128xbf16>
    %c0_23 = arith.constant 0 : index
    %c0_24 = arith.constant 0 : index
    %31 = vector.load %arg10[%c0_23, %c0_24] : memref<128x128xbf16, #tpu.memory_space<vmem>>, vector<128x128xbf16>
    tpu.vector_store %arg10[%c0_23, %c0_24], %30 {strides = array<i32>} : memref<128x128xbf16, #tpu.memory_space<vmem>>, vector<128x128xbf16>,
    return
  }
  func.func @transform_0(%arg0: i32) -> (i32, i32) {
    %c0_i32 = arith.constant 0 : i32
    %c0_i32_0 = arith.constant 0 : i32
    return %arg0, %c0_i32 : i32, i32
  }
  func.func @transform_1(%arg0: i32) -> (i32, i32) {
    %c0_i32 = arith.constant 0 : i32
    %c0_i32_0 = arith.constant 0 : i32
    %c0_i32_1 = arith.constant 0 : i32
    return %c0_i32, %c0_i32_0 : i32, i32
  }
  func.func @transform_2(%arg0: i32) -> (i32, i32) {
    %c0_i32 = arith.constant 0 : i32
    %c0_i32_0 = arith.constant 0 : i32
    %c0_i32_1 = arith.constant 0 : i32
    return %c0_i32, %c0_i32_0 : i32, i32
  }
  func.func @transform_3(%arg0: i32) -> (i32, i32) {
    %c0_i32 = arith.constant 0 : i32
    %c0_i32_0 = arith.constant 0 : i32
    %c0_i32_1 = arith.constant 0 : i32
    return %c0_i32, %c0_i32_0 : i32, i32
  }
  func.func @transform_4(%arg0: i32) -> (i32, i32) {
    %c0_i32 = arith.constant 0 : i32
    %c0_i32_0 = arith.constant 0 : i32
    %c0_i32_1 = arith.constant 0 : i32
    return %c0_i32, %c0_i32_0 : i32, i32
  }
  func.func @transform_5(%arg0: i32) -> (i32, i32) {
    %c0_i32 = arith.constant 0 : i32
    %c0_i32_0 = arith.constant 0 : i32
    %c0_i32_1 = arith.constant 0 : i32
    return %c0_i32, %c0_i32_0 : i32, i32
  }
  func.func @transform_6(%arg0: i32) -> (i32, i32) {
    %c0_i32 = arith.constant 0 : i32
    %c0_i32_0 = arith.constant 0 : i32
    %c0_i32_1 = arith.constant 0 : i32
    return %c0_i32, %c0_i32_0 : i32, i32
  }
  func.func @transform_7(%arg0: i32) -> (i32, i32) {
    %c0_i32 = arith.constant 0 : i32
    %c0_i32_0 = arith.constant 0 : i32
    %c0_i32_1 = arith.constant 0 : i32
    return %c0_i32, %c0_i32_0 : i32, i32
  }
  func.func @transform_8(%arg0: i32) -> (i32, i32) {
    %c0_i32 = arith.constant 0 : i32
    %c0_i32_0 = arith.constant 0 : i32
    %c0_i32_1 = arith.constant 0 : i32
    return %c0_i32, %c0_i32_0 : i32, i32
  }
  func.func @transform_9(%arg0: i32) -> (i32, i32) {
    %c0_i32 = arith.constant 0 : i32
    %c0_i32_0 = arith.constant 0 : i32
    return %arg0, %c0_i32 : i32, i32
  }
}

</mosaic_0001>

<bundles_post_ra>
// kernel: tpu_custom_call.1
= control target key start
LH: loop header
LB: loop body
LE: loop exit
PB: predicated region body
PF: predicated region fallthrough
CT: control target
= control target key end

     0   :  { %vm777_vm0 = vcmask 130048   ;;  %s3426_s0 = inlined_call_operand.vmem [shape: bf16[128,784], index: 0, kind: input, shape index: {}]   ;;  %s3427_s1 = inlined_call_operand.vmem [shape: bf16[784,128], index: 1, kind: input, shape index: {}]   ;;  %s3428_s2 = inlined_call_operand.vmem [shape: f32[1,128], index: 2, kind: input, shape index: {}]   ;;  %s3429_s3 = inlined_call_operand.vmem [shape: bf16[128,128], index: 3, kind: input, shape index: {}]   ;;  %s3430_s4 = inlined_call_operand.vmem [shape: f32[1,128], index: 4, kind: input, shape index: {}]   ;;  %s3431_s5 = inlined_call_operand.vmem [shape: bf16[128,256], index: 5, kind: input, shape index: {}]   ;;  %s3432_s6 = inlined_call_operand.vmem [shape: f32[1,256], index: 6, kind: input, shape index: {}]   ;;  %s3433_s7 = inlined_call_operand.vmem [shape: bf16[256,128], index: 7, kind: input, shape index: {}]   ;;  %s3434_s8 = inlined_call_operand.vmem [shape: f32[1,128], index: 8, kind: input, shape index: {}]   ;;  %s3435_s9 = inlined_call_operand.hbm [shape: bf16[128,128], index: 9, kind: output, shape index: {}]  }
   0x1   :  { %v2573_v0 = vld [vmem:[%s3427_s1 + $0x40] sm:$0xff]   ;;  %v2577_v4 = vld [vmem:[%s3427_s1 + $0x48] sm:$0xff]   ;;  %v2581_v8 = vld [vmem:[%s3427_s1 + $0x50] sm:$0xff]  }
   0x2   :  { %v2574_v1 = vld [vmem:[%s3427_s1] sm:$0xff]   ;;  %2238 = vmatprep.subr.bf16.mxu0 %v2573_v0  ;;  %v2578_v5 = vld [vmem:[%s3427_s1 + $0x8] sm:$0xff]   ;;  %v2582_v9 = vld [vmem:[%s3427_s1 + $0x10] sm:$0xff]  }
   0x3   :  { %v2575_v2 = vld [vmem:[%s3427_s1 + $0xc0] sm:$0xff]   ;;  %2239 = vmatpush3.bf16.msra.mxu0 %v2574_v1  ;;  %v2579_v6 = vld [vmem:[%s3427_s1 + $0xc8] sm:$0xff]   ;;  %v2583_v10 = vld [vmem:[%s3427_s1 + $0xd0] sm:$0xff]  }
   0x4   :  { %v2576_v3 = vld [vmem:[%s3427_s1 + $0x80] sm:$0xff]   ;;  %2302 = vmatprep.subr.bf16.mxu1 %v2575_v2  ;;  %2240 = vmatprep.subr.bf16.mxu0 %v2577_v4  ;;  %v2580_v7 = vld [vmem:[%s3427_s1 + $0x88] sm:$0xff]   ;;  %v2584_v11 = vld [vmem:[%s3427_s1 + $0x90] sm:$0xff]  }
   0x5   :  { %2303 = vmatpush3.bf16.msra.mxu1 %v2576_v3  ;;  %v2585_v12 = vld [vmem:[%s3427_s1 + $0x58] sm:$0xff]   ;;  %v2589_v16 = vld [vmem:[%s3427_s1 + $0x60] sm:$0xff]   ;;  %v2593_v20 = vld [vmem:[%s3427_s1 + $0x68] sm:$0xff]  }
   0x6   :  { %2304 = vmatprep.subr.bf16.mxu1 %v2579_v6  ;;  %v2586_v13 = vld [vmem:[%s3427_s1 + $0x18] sm:$0xff]   ;;  %v2590_v17 = vld [vmem:[%s3427_s1 + $0x20] sm:$0xff]   ;;  %v2594_v21 = vld [vmem:[%s3427_s1 + $0x28] sm:$0xff]  }
   0x7   :  { %2241 = vmatpush3.bf16.msra.mxu0 %v2578_v5  ;;  %v2587_v14 = vld [vmem:[%s3427_s1 + $0xd8] sm:$0xff]   ;;  %v2591_v18 = vld [vmem:[%s3427_s1 + $0xe0] sm:$0xff]   ;;  %v2595_v22 = vld [vmem:[%s3427_s1 + $0xe8] sm:$0xff]  }
   0x8   :  { %2242 = vmatprep.subr.bf16.mxu0 %v2581_v8  ;;  %v2588_v15 = vld [vmem:[%s3427_s1 + $0x98] sm:$0xff]   ;;  %v2592_v19 = vld [vmem:[%s3427_s1 + $0xa0] sm:$0xff]   ;;  %v2596_v23 = vld [vmem:[%s3427_s1 + $0xa8] sm:$0xff]  }
   0x9   :  { %2305 = vmatpush3.bf16.msra.mxu1 %v2580_v7  ;;  %v2597_v24 = vld [vmem:[%s3427_s1 + $0x70] sm:$0xff]   ;;  %v2601_v28 = vld [vmem:[%s3427_s1 + $0x78] sm:$0xff]   ;;  %v2606_v32 = vld [vmem:[%s3426_s0 + $0x4] ss:$28 sps:$4 sm:$0xff]  }
   0xa   :  { %2306 = vmatprep.subr.bf16.mxu1 %v2583_v10  ;;  %v2598_v25 = vld [vmem:[%s3427_s1 + $0x30] sm:$0xff]   ;;  %v2602_v29 = vld [vmem:[%s3427_s1 + $0x38] sm:$0xff]   ;;  %834 = vmatprep.mubr.bf16.mxu0 %v2606_v32  ;;  %v2608_v34 = vld [vmem:[%s3427_s1 + $0x140] sm:$0xff]  }
   0xb   :  { %2243 = vmatpush3.bf16.msra.mxu0 %v2582_v9  ;;  %v2599_v26 = vld [vmem:[%s3427_s1 + $0xf0] sm:$0xff]   ;;  %v2603_v30 = vld [vmem:[%s3427_s1 + $0xf8] sm:$0xff]   ;;  %v2609_v35 = vld [vmem:[%s3426_s0 + $0x8] ss:$28 sps:$4 sm:$0xff]  }
   0xc   :  { %2244 = vmatprep.subr.bf16.mxu0 %v2585_v12  ;;  %v2600_v27 = vld [vmem:[%s3427_s1 + $0xb0] sm:$0xff]   ;;  %v2604_v31 = vld [vmem:[%s3426_s0] ss:$28 sps:$4 sm:$0xff]   ;;  %v2611_v36 = vld [vmem:[%s3426_s0 + $0xc] ss:$28 sps:$4 sm:$0xff]  }
   0xd   :  { %2307 = vmatpush3.bf16.msra.mxu1 %v2584_v11  ;;  %v2607_v33 = vld [vmem:[%s3427_s1 + $0xb8] sm:$0xff]   ;;  %v2612_v37 = vld [vmem:[%s3427_s1 + $0x100] sm:$0xff]   ;;  %931 = vmatprep.mubr.bf16.mxu1 %v2611_v36  ;;  %v2616_v40 = vld [vmem:[%s3427_s1 + $0x148] sm:$0xff]  }
   0xe   :  { %2308 = vmatprep.subr.bf16.mxu1 %v2587_v14  ;;  %v2613_v38 = vld [vmem:[%s3426_s0 + $0x3c] ss:$28 sps:$4 sm:$0xff]   ;;  %v2617_v41 = vld [vmem:[%s3426_s0 + $0x44] ss:$28 sps:$4 sm:$0xff]   ;;  %v2619_v42 = vld [vmem:[%s3427_s1 + $0x108] sm:$0xff]  }
   0xf   :  { %2245 = vmatpush3.bf16.msra.mxu0 %v2586_v13  ;;  %v2615_v39 = vld [vmem:[%s3426_s0 + $0x38] ss:$28 sps:$4 sm:$0xff]   ;;  %v2620_v43 = vld [vmem:[%s3426_s0 + $0x40] ss:$28 sps:$4 sm:$0xff]   ;;  %v2624_v49 = vld [vmem:[%s3426_s0 + $0x70] ss:$28 sps:$4 sm:$0xff]  }
  0x10   :  { %2246 = vmatprep.subr.bf16.mxu0 %v2589_v16  ;;  %v2621_v44 = vld [vmem:[%s3427_s1 + $0x180] sm:$0xff]   ;;  %v2622_v45 = vld [vmem:[%s3426_s0 + $0x74] ss:$28 sps:$4 sm:$0xff]   ;;  %v2626_v47 = vld [vmem:[%s3426_s0 + $0x7c] ss:$28 sps:$4 sm:$0xff]  }
  0x11   :  { %2309 = vmatpush3.bf16.msra.mxu1 %v2588_v15  ;;  %v2625_v46 = vld [vmem:[%s3427_s1 + $0x150] sm:$0xff]   ;;  %v2630_v50 = vld [vmem:[%s3426_s0 + $0xac] ss:$28 sps:$4 sm:$0xff]   ;;  %v2633_v51 = vld [vmem:[%s3427_s1 + $0x158] sm:$0xff]  }
  0x12   :  { %2310 = vmatprep.subr.bf16.mxu1 %v2591_v18  ;;  %v2628_v48 = vld [vmem:[%s3427_s1 + $0x110] sm:$0xff]   ;;  %v2636_v54 = vld [vmem:[%s3427_s1 + $0x118] sm:$0xff]   ;;  %v2641_v55 = vld [vmem:[%s3427_s1 + $0x160] sm:$0xff]  }
  0x13   :  { %2247 = vmatpush3.bf16.msra.mxu0 %v2590_v17  ;;  %v2629_v52 = vld [vmem:[%s3426_s0 + $0x78] ss:$28 sps:$4 sm:$0xff]   ;;  %v2632_v56 = vld [vmem:[%s3426_s0 + $0xa8] ss:$28 sps:$4 sm:$0xff]   ;;  %v2637_v59 = vld [vmem:[%s3426_s0 + $0xb0] ss:$28 sps:$4 sm:$0xff]  }
  0x14   :  { %2248 = vmatprep.subr.bf16.mxu0 %v2593_v20  ;;  %v2634_v53 = vld [vmem:[%s3426_s0 + $0xb4] ss:$28 sps:$4 sm:$0xff]   ;;  %v2644_v57 = vld [vmem:[%s3427_s1 + $0x120] sm:$0xff]   ;;  %v2649_v60 = vld [vmem:[%s3427_s1 + $0x168] sm:$0xff]  }
  0x15   :  { %2311 = vmatpush3.bf16.msra.mxu1 %v2592_v19  ;;  %v2638_v58 = vld [vmem:[%s3426_s0 + $0xe4] ss:$28 sps:$4 sm:$0xff]   ;;  %v2642_v61 = vld [vmem:[%s3426_s0 + $0xec] ss:$28 sps:$4 sm:$0xff]   ;;  %v2657_v0 = vld [vmem:[%s3427_s1 + $0x170] sm:$0xff]  }
  0x16   :  { %2312 = vmatprep.subr.bf16.mxu1 %v2595_v22  ;;  %v2652_v62 = vld [vmem:[%s3427_s1 + $0x128] sm:$0xff]   ;;  %v2640_v63 = vld [vmem:[%s3426_s0 + $0xe0] ss:$28 sps:$4 sm:$0xff]   ;;  %v2660_v2 = vld [vmem:[%s3427_s1 + $0x130] sm:$0xff]  }
  0x17   :  { %2249 = vmatpush3.bf16.msra.mxu0 %v2594_v21  ;;  %v2646_v1 = vld [vmem:[%s3426_s0 + $0x11c] ss:$28 sps:$4 sm:$0xff]   ;;  %v2645_v3 = vld [vmem:[%s3426_s0 + $0xe8] ss:$28 sps:$4 sm:$0xff]   ;;  %v2654_v8 = vld [vmem:[%s3426_s0 + $0x154] ss:$28 sps:$4 sm:$0xff]  }
  0x18   :  { %2250 = vmatprep.subr.bf16.mxu0 %v2597_v24  ;;  %v2650_v4 = vld [vmem:[%s3426_s0 + $0x124] ss:$28 sps:$4 sm:$0xff]   ;;  %v2665_v5 = vld [vmem:[%s3427_s1 + $0x178] sm:$0xff]   ;;  %v2656_v11 = vld [vmem:[%s3426_s0 + $0x150] ss:$28 sps:$4 sm:$0xff]  }
  0x19   :  { %2313 = vmatpush3.bf16.msra.mxu1 %v2596_v23  ;;  %v2668_v6 = vld [vmem:[%s3427_s1 + $0x138] sm:$0xff]   ;;  %v2662_v12 = vld [vmem:[%s3426_s0 + $0x18c] ss:$28 sps:$4 sm:$0xff]   ;;  %v2666_v14 = vld [vmem:[%s3426_s0 + $0x194] ss:$28 sps:$4 sm:$0xff]  }
  0x1a   :  { %2314 = vmatprep.subr.bf16.mxu1 %v2599_v26  ;;  %v2648_v7 = vld [vmem:[%s3426_s0 + $0x118] ss:$28 sps:$4 sm:$0xff]   ;;  %v2653_v9 = vld [vmem:[%s3426_s0 + $0x120] ss:$28 sps:$4 sm:$0xff]   ;;  %v2664_v15 = vld [vmem:[%s3426_s0 + $0x188] ss:$28 sps:$4 sm:$0xff]  }
  0x1b   :  { %2251 = vmatpush3.bf16.msra.mxu0 %v2598_v25  ;;  %v2658_v10 = vld [vmem:[%s3426_s0 + $0x15c] ss:$28 sps:$4 sm:$0xff]   ;;  %v2669_v16 = vld [vmem:[%s3426_s0 + $0x190] ss:$28 sps:$4 sm:$0xff]   ;;  %v2681_v22 = vld [vmem:[%s3426_s0 + $0x88] ss:$28 sps:$4 sm:$0xff]  }
  0x1c   :  { %2252 = vmatprep.subr.bf16.mxu0 %v2601_v28  ;;  %v2661_v13 = vld [vmem:[%s3426_s0 + $0x158] ss:$28 sps:$4 sm:$0xff]   ;;  %v2670_v19 = vld [vmem:[%s3426_s0 + $0x10] ss:$28 sps:$4 sm:$0xff]   ;;  %v2677_v23 = vld [vmem:[%s3426_s0 + $0x48] ss:$28 sps:$4 sm:$0xff]  }
  0x1d   :  { %2315 = vmatpush3.bf16.msra.mxu1 %v2600_v27  ;;  %v2672_v17 = vld [vmem:[%s3426_s0 + $0x14] ss:$28 sps:$4 sm:$0xff]   ;;  %v2675_v20 = vld [vmem:[%s3426_s0 + $0x4c] ss:$28 sps:$4 sm:$0xff]   ;;  %v2678_v24 = vld [vmem:[%s3426_s0 + $0x84] ss:$28 sps:$4 sm:$0xff]  }
  0x1e   :  { %2316 = vmatprep.subr.bf16.mxu1 %v2603_v30  ;;  %v2673_v18 = vld [vmem:[%s3426_s0 + $0x18] ss:$28 sps:$4 sm:$0xff]   ;;  %v2674_v21 = vld [vmem:[%s3426_s0 + $0x50] ss:$28 sps:$4 sm:$0xff]   ;;  %v2682_v25 = vld [vmem:[%s3426_s0 + $0xc0] ss:$28 sps:$4 sm:$0xff]  }
  0x1f   :  { %2253 = vmatpush3.bf16.msra.mxu0 %v2602_v29  ;;  %v2689_v26 = vld [vmem:[%s3426_s0 + $0xf8] ss:$28 sps:$4 sm:$0xff]  }
  0x20   :  { %2366 = vmatprep.subr.bf16.mxu0 %v2608_v34 }
  0x21   :  { %2317 = vmatpush3.bf16.msra.mxu1 %v2607_v33 }
  0x22   :  { %835 = vmatmul.mubr.bf16.vlgmr.msra.gmra.mrb[0].mxu0 %v2604_v31  ;;  %2519 = vmatprep.subr.bf16.mxu1 %v2621_v44 }
  0x23   :  { %2367 = vmatpush3.bf16.msra.mxu0 %v2612_v37  ;;  %842 = vmatprep.mubr.bf16.mxu0 %v2613_v38 }
  0x24   :  { %932 = vmatmul.mubr.bf16.vlgmr.msra.gmra.mrb[0].mxu1 %v2609_v35  ;;  %2368 = vmatprep.subr.bf16.mxu0 %v2616_v40 }
  0x25   :  { %939 = vmatprep.mubr.bf16.mxu1 %v2617_v41  ;;  %2520 = vmatpush3.bf16.msra.mxu1 %v2621_v44 }
  0x27   :  { %2369 = vmatpush3.bf16.msra.mxu0 %v2619_v42 }
  0x28   :  { %2370 = vmatprep.subr.bf16.mxu0 %v2625_v46 }
  0x2a   :  { %843 = vmatmul.mubr.bf16.gmra.mrb[4].mxu0 %v2615_v39 }
  0x2b   :  { %850 = vmatprep.mubr.bf16.mxu0 %v2622_v45  ;;  %2371 = vmatpush3.bf16.msra.mxu0 %v2628_v48 }
  0x2c   :  { %940 = vmatmul.mubr.bf16.gmra.mrb[4].mxu1 %v2620_v43  ;;  %2372 = vmatprep.subr.bf16.mxu0 %v2633_v51 }
  0x2d   :  { %947 = vmatprep.mubr.bf16.mxu1 %v2626_v47 }
  0x2f   :  { %2373 = vmatpush3.bf16.msra.mxu0 %v2636_v54 }
  0x30   :  { %2374 = vmatprep.subr.bf16.mxu0 %v2641_v55 }
  0x32   :  { %851 = vmatmul.mubr.bf16.gmra.mrb[8].mxu0 %v2624_v49 }
  0x33   :  { %858 = vmatprep.mubr.bf16.mxu0 %v2630_v50  ;;  %2375 = vmatpush3.bf16.msra.mxu0 %v2644_v57 }
  0x34   :  { %948 = vmatmul.mubr.bf16.gmra.mrb[8].mxu1 %v2629_v52  ;;  %2376 = vmatprep.subr.bf16.mxu0 %v2649_v60 }
  0x35   :  { %955 = vmatprep.mubr.bf16.mxu1 %v2634_v53 }
  0x37   :  { %2377 = vmatpush3.bf16.msra.mxu0 %v2652_v62 }
  0x38   :  { %2378 = vmatprep.subr.bf16.mxu0 %v2657_v0 }
  0x3a   :  { %859 = vmatmul.mubr.bf16.gmra.mrb[12].mxu0 %v2632_v56 }
  0x3b   :  { %866 = vmatprep.mubr.bf16.mxu0 %v2638_v58  ;;  %2379 = vmatpush3.bf16.msra.mxu0 %v2660_v2 }
  0x3c   :  { %956 = vmatmul.mubr.bf16.gmra.mrb[12].mxu1 %v2637_v59  ;;  %2380 = vmatprep.subr.bf16.mxu0 %v2665_v5 }
  0x3d   :  { %963 = vmatprep.mubr.bf16.mxu1 %v2642_v61 }
  0x3f   :  { %2381 = vmatpush3.bf16.msra.mxu0 %v2668_v6 }
  0x42   :  { %867 = vmatmul.mubr.bf16.gmra.mrb[16].mxu0 %v2640_v63 }
  0x43   :  { %874 = vmatprep.mubr.bf16.mxu0 %v2646_v1 }
  0x44   :  { %964 = vmatmul.mubr.bf16.gmra.mrb[16].mxu1 %v2645_v3 }
  0x45   :  { %971 = vmatprep.mubr.bf16.mxu1 %v2650_v4 }
  0x4a   :  { %875 = vmatmul.mubr.bf16.gmra.mrb[20].mxu0 %v2648_v7 }
  0x4b   :  { %882 = vmatprep.mubr.bf16.mxu0 %v2654_v8 }
  0x4c   :  { %972 = vmatmul.mubr.bf16.gmra.mrb[20].mxu1 %v2653_v9 }
  0x4d   :  { %979 = vmatprep.mubr.bf16.mxu1 %v2658_v10 }
  0x52   :  { %883 = vmatmul.mubr.bf16.gmra.mrb[24].mxu0 %v2656_v11 }
  0x53   :  { %890 = vmatprep.mubr.bf16.mxu0 %v2662_v12 }
  0x54   :  { %980 = vmatmul.mubr.bf16.gmra.mrb[24].mxu1 %v2661_v13 }
  0x55   :  { %987 = vmatprep.mubr.bf16.mxu1 %v2666_v14 }
  0x5a   :  { %891 = vmatmul.mubr.bf16.gmra.mrb[28].mxu0 %v2664_v15 }
  0x5b   :  { %1028 = vmatprep.mubr.bf16.mxu0 %v2672_v17 }
  0x5c   :  { %988 = vmatmul.mubr.bf16.gmra.mrb[28].mxu1 %v2669_v16 }
  0x5d   :  { %2521 = vmatprep.mubr.msk.bf16.mxu1 %vm777_vm0, %v2673_v18 }
  0x62   :  { %1029 = vmatmul.mubr.bf16.vlgmr.msra.gmra.mrb[32].mxu0 %v2670_v19 }
  0x63   :  { %1036 = vmatprep.mubr.bf16.mxu0 %v2675_v20 }
  0x64   :  { %2522 = vmatmul.mubr.msk.bf16.vlgmr.msra.gmra.mrb[32].mxu1 %vm777_vm0, %v2674_v21 }
  0x65   :  { %2525 = vmatprep.mubr.msk.bf16.mxu1 %vm777_vm0, %v2681_v22 }
  0x6a   :  { %1037 = vmatmul.mubr.bf16.gmra.mrb[36].mxu0 %v2677_v23 }
  0x6b   :  { %1044 = vmatprep.mubr.bf16.mxu0 %v2678_v24 }
  0x6c   :  { %2526 = vmatmul.mubr.msk.bf16.gmra.mrb[36].mxu1 %vm777_vm0, %v2682_v25 }
  0x6d   :  { %14 = vsyncpa [#allocation3], 0  ;;  %v2680_v27 = vld [vmem:[%s3426_s0 + $0x80] ss:$28 sps:$4 sm:$0xff]   ;;  %2529 = vmatprep.mubr.msk.bf16.mxu1 %vm777_vm0, %v2689_v26  ;;  %v2690_v29 = vld [vmem:[%s3426_s0 + $0x130] ss:$28 sps:$4 sm:$0xff]  }
  0x6e   :  { %v2683_v28 = vld [vmem:[%s3426_s0 + $0xbc] ss:$28 sps:$4 sm:$0xff]   ;;  %v2697_v30 = vld [vmem:[%s3426_s0 + $0x168] ss:$28 sps:$4 sm:$0xff]   ;;  %v2686_v32 = vld [vmem:[%s3426_s0 + $0xf4] ss:$28 sps:$4 sm:$0xff]  }
  0x6f   :  { %v2685_v31 = vld [vmem:[%s3426_s0 + $0xb8] ss:$28 sps:$4 sm:$0xff]   ;;  %v2698_v33 = vld [vmem:[%s3426_s0 + $0x1a0] ss:$28 sps:$4 sm:$0xff]   ;;  %v2688_v34 = vld [vmem:[%s3426_s0 + $0xf0] ss:$28 sps:$4 sm:$0xff]  }
  0x70   :  { %v2691_v35 = vld [vmem:[%s3426_s0 + $0x12c] ss:$28 sps:$4 sm:$0xff]   ;;  %v2694_v37 = vld [vmem:[%s3426_s0 + $0x164] ss:$28 sps:$4 sm:$0xff]   ;;  %v2699_v39 = vld [vmem:[%s3426_s0 + $0x19c] ss:$28 sps:$4 sm:$0xff]  }
  0x71   :  { %v2693_v36 = vld [vmem:[%s3426_s0 + $0x128] ss:$28 sps:$4 sm:$0xff]   ;;  %v2696_v38 = vld [vmem:[%s3426_s0 + $0x160] ss:$28 sps:$4 sm:$0xff]   ;;  %v2701_v40 = vld [vmem:[%s3426_s0 + $0x198] ss:$28 sps:$4 sm:$0xff]  }
  0x72   :  { %1045 = vmatmul.mubr.bf16.gmra.mrb[40].mxu0 %v2680_v27  ;;  %v2702_v41 = vld [vmem:[%s3429_s3] sm:$0xff]   ;;  %v2703_v42 = vld [vmem:[%s3429_s3 + $0x8] sm:$0xff]   ;;  %v2704_v43 = vld [vmem:[%s3429_s3 + $0x10] sm:$0xff]  }
  0x73   :  { %1052 = vmatprep.mubr.bf16.mxu0 %v2683_v28  ;;  %2537 = vmatprep.subr.bf16.mxu1 %v2702_v41  ;;  %v2705_v44 = vld [vmem:[%s3429_s3 + $0x18] sm:$0xff]   ;;  %v2706_v45 = vld [vmem:[%s3429_s3 + $0x20] sm:$0xff]   ;;  %v2707_v46 = vld [vmem:[%s3429_s3 + $0x28] sm:$0xff]  }
  0x74   :  { %2530 = vmatmul.mubr.msk.bf16.gmra.mrb[40].mxu1 %vm777_vm0, %v2690_v29  ;;  %v2708_v47 = vld [vmem:[%s3429_s3 + $0x30] sm:$0xff]   ;;  %v2709_v48 = vld [vmem:[%s3429_s3 + $0x38] sm:$0xff]   ;;  %v3178_v50 = vld [vmem:[%s3428_s2] ss:$0 sm:$0xff] }
  0x75   :  { %2533 = vmatprep.mubr.msk.bf16.mxu1 %vm777_vm0, %v2697_v30  ;;  %2538 = vmatpush3.bf16.msra.mxu1 %v2702_v41  ;;  %v2710_v63 = vld [vmem:[%s3431_s5] ss:$8 sps:$4 sm:$0xff]   ;;  %v2712_v0 = vld [vmem:[%s3431_s5 + $0x4] ss:$8 sps:$4 sm:$0xff]   ;;  %v2715_v3 = vld [vmem:[%s3431_s5 + $0x14] ss:$8 sps:$4 sm:$0xff]  }
  0x76   :  { %2539 = vmatprep.subr.bf16.mxu1 %v2703_v42  ;;  %1514 = vmatprep.subr.bf16.mxu0 %v2712_v0  ;;  %v2713_v7 = vld [vmem:[%s3431_s5 + $0x10] ss:$8 sps:$4 sm:$0xff]   ;;  %v2718_v10 = vld [vmem:[%s3431_s5 + $0x24] ss:$8 sps:$4 sm:$0xff]   ;;  %v2716_v18 = vld [vmem:[%s3431_s5 + $0x20] ss:$8 sps:$4 sm:$0xff]  }
  0x77   :  { %1515 = vmatpush1.bf16.msra.mxu0 %v2710_v63  ;;  %v2721_v21 = vld [vmem:[%s3431_s5 + $0x34] ss:$8 sps:$4 sm:$0xff]   ;;  %v2719_v27 = vld [vmem:[%s3431_s5 + $0x30] ss:$8 sps:$4 sm:$0xff]   ;;  %v2724_v30 = vld [vmem:[%s3431_s5 + $0x44] ss:$8 sps:$4 sm:$0xff]  }
  0x78   :  { %1516 = vmatprep.subr.bf16.mxu0 %v2715_v3  ;;  %v2727_v41 = vld [vmem:[%s3431_s5 + $0x54] ss:$8 sps:$4 sm:$0xff]  }
  0x79   :  { %2540 = vmatpush3.bf16.msra.mxu1 %v2703_v42 }
  0x7a   :  { %1053 = vmatmul.mubr.bf16.gmra.mrb[44].mxu0 %v2685_v31  ;;  %2541 = vmatprep.subr.bf16.mxu1 %v2704_v43 }
  0x7b   :  { %1060 = vmatprep.mubr.bf16.mxu0 %v2686_v32  ;;  %1517 = vmatpush1.bf16.msra.mxu0 %v2713_v7 }
  0x7c   :  { %2534 = vmatmul.mubr.msk.bf16.gmra.mrb[44].mxu1 %vm777_vm0, %v2698_v33  ;;  %1518 = vmatprep.subr.bf16.mxu0 %v2718_v10 }
  0x7d   :  { %2542 = vmatpush3.bf16.msra.mxu1 %v2704_v43 }
  0x7e   :  { %2543 = vmatprep.subr.bf16.mxu1 %v2705_v44 }
  0x7f   :  { %1519 = vmatpush1.bf16.msra.mxu0 %v2716_v18 }
  0x80   :  { %1520 = vmatprep.subr.bf16.mxu0 %v2721_v21 }
  0x81   :  { %2544 = vmatpush3.bf16.msra.mxu1 %v2705_v44 }
  0x82   :  { %1061 = vmatmul.mubr.bf16.gmra.mrb[48].mxu0 %v2688_v34  ;;  %2545 = vmatprep.subr.bf16.mxu1 %v2706_v45 }
  0x83   :  { %1068 = vmatprep.mubr.bf16.mxu0 %v2691_v35  ;;  %1521 = vmatpush1.bf16.msra.mxu0 %v2719_v27 }
  0x84   :  { %1522 = vmatprep.subr.bf16.mxu0 %v2724_v30 }
  0x85   :  { %2546 = vmatpush3.bf16.msra.mxu1 %v2706_v45 }
  0x86   :  { %2547 = vmatprep.subr.bf16.mxu1 %v2707_v46 }
  0x89   :  { %2548 = vmatpush3.bf16.msra.mxu1 %v2707_v46 }
  0x8a   :  { %1069 = vmatmul.mubr.bf16.gmra.mrb[52].mxu0 %v2693_v36  ;;  %2549 = vmatprep.subr.bf16.mxu1 %v2708_v47 }
  0x8b   :  { %1076 = vmatprep.mubr.bf16.mxu0 %v2694_v37 }
  0x8d   :  { %2550 = vmatpush3.bf16.msra.mxu1 %v2708_v47  ;;  %v2725_v47 = vld [vmem:[%s3431_s5 + $0x50] ss:$8 sps:$4 sm:$0xff]  }
  0x8e   :  { %2551 = vmatprep.subr.bf16.mxu1 %v2709_v48 }
  0x91   :  { %2552 = vmatpush3.bf16.msra.mxu1 %v2709_v48 }
  0x92   :  { %1077 = vmatmul.mubr.bf16.gmra.mrb[56].mxu0 %v2696_v38  ;;  %v2722_v38 = vld [vmem:[%s3431_s5 + $0x40] ss:$8 sps:$4 sm:$0xff]  }
  0x93   :  { %1084 = vmatprep.mubr.bf16.mxu0 %v2699_v39  ;;  %1523 = vmatpush1.bf16.msra.mxu0 %v2722_v38 }
  0x94   :  { %1524 = vmatprep.subr.bf16.mxu0 %v2727_v41 }
  0x97   :  { %1525 = vmatpush1.bf16.msra.mxu0 %v2725_v47 }
  0x9a   :  { %1085 = vmatmul.mubr.bf16.gmra.mrb[60].mxu0 %v2701_v40 }
  0xf5   :  { %v2254_v49 = vpop.f32.mrb[0].mxu0 }
  0xf6   :  { %v2255_v51 = vpop.f32.mrb[1].mxu0 }
  0xf7   :  { %v2256_v52 = vadd.f32 %v2255_v51, %v2254_v49  ;;  %v2257_v53 = vpop.f32.mrb[2].mxu0  ;;  %v2318_v54 = vpop.f32.mrb[0].mxu1  ;;  %v2730_v51 = vld [vmem:[%s3431_s5 + $0x64] ss:$8 sps:$4 sm:$0xff]  }
  0xf8   :  { %v2258_v55 = vpop.f32.mrb[3].mxu0  ;;  %v2319_v58 = vpop.f32.mrb[1].mxu1  ;;  %1526 = vmatprep.subr.bf16.mxu0 %v2730_v51 }
  0xf9   :  { %v837_v56 = vadd.f32 %v2256_v52, %v3178_v50  ;;  %v2259_v57 = vadd.f32 %v2258_v55, %v2257_v53  ;;  %v2320_v59 = vadd.f32 %v2319_v58, %v2318_v54  ;;  %v2321_v60 = vpop.f32.mrb[2].mxu1 }
  0xfa   :  { %v2322_v62 = vpop.f32.mrb[3].mxu1 }
  0xfb   :  { %v840_v61 = vadd.f32 %v2259_v57, %v3178_v50  ;;  %v3188_v1 = vadd.f32 %v2320_v59, %v837_v56  ;;  %v2323_v2 = vadd.f32 %v2322_v62, %v2321_v60  ;;  %v2728_v59 = vld [vmem:[%s3431_s5 + $0x60] ss:$8 sps:$4 sm:$0xff]  }
  0xfc   :  { %1527 = vmatpush1.bf16.msra.mxu0 %v2728_v59 }
  0xfd   :  { %v2260_v4 = vpop.f32.mrb[4].mxu0  ;;  %v3193_v5 = vadd.f32 %v2323_v2, %v840_v61 }
  0xfe   :  { %v2261_v6 = vpop.f32.mrb[5].mxu0 }
  0xff   :  { %v2262_v8 = vadd.f32 %v2261_v6, %v2260_v4  ;;  %v2263_v9 = vpop.f32.mrb[6].mxu0  ;;  %v2324_v11 = vpop.f32.mrb[4].mxu1 }
 0x100   :  { %v2264_v12 = vpop.f32.mrb[7].mxu0  ;;  %v2325_v15 = vpop.f32.mrb[5].mxu1 }
 0x101   :  { %v845_v13 = vadd.f32 %v2262_v8, %v3178_v50  ;;  %v2265_v14 = vadd.f32 %v2264_v12, %v2263_v9  ;;  %v2326_v16 = vadd.f32 %v2325_v15, %v2324_v11  ;;  %v2327_v17 = vpop.f32.mrb[6].mxu1 }
 0x102   :  { %v2328_v20 = vpop.f32.mrb[7].mxu1 }
 0x103   :  { %v848_v19 = vadd.f32 %v2265_v14, %v3178_v50  ;;  %v3209_v22 = vadd.f32 %v2326_v16, %v845_v13  ;;  %v2329_v23 = vadd.f32 %v2328_v20, %v2327_v17 }
 0x105   :  { %v2266_v24 = vpop.f32.mrb[8].mxu0  ;;  %v3211_v25 = vadd.f32 %v2329_v23, %v848_v19 }
 0x106   :  { %v2267_v26 = vpop.f32.mrb[9].mxu0 }
 0x107   :  { %v2268_v28 = vadd.f32 %v2267_v26, %v2266_v24  ;;  %v2269_v29 = vpop.f32.mrb[10].mxu0  ;;  %v2330_v31 = vpop.f32.mrb[8].mxu1 }
 0x108   :  { %v2270_v32 = vpop.f32.mrb[11].mxu0  ;;  %v2331_v35 = vpop.f32.mrb[9].mxu1 }
 0x109   :  { %v853_v33 = vadd.f32 %v2268_v28, %v3178_v50  ;;  %v2271_v34 = vadd.f32 %v2270_v32, %v2269_v29  ;;  %v2332_v36 = vadd.f32 %v2331_v35, %v2330_v31  ;;  %v2333_v37 = vpop.f32.mrb[10].mxu1 }
 0x10a   :  { %v2334_v40 = vpop.f32.mrb[11].mxu1 }
 0x10b   :  { %v856_v39 = vadd.f32 %v2271_v34, %v3178_v50  ;;  %v3227_v42 = vadd.f32 %v2332_v36, %v853_v33  ;;  %v2335_v43 = vadd.f32 %v2334_v40, %v2333_v37 }
 0x10d   :  { %v2272_v44 = vpop.f32.mrb[12].mxu0  ;;  %v3229_v45 = vadd.f32 %v2335_v43, %v856_v39 }
 0x10e   :  { %v2273_v46 = vpop.f32.mrb[13].mxu0 }
 0x10f   :  { %v2274_v48 = vadd.f32 %v2273_v46, %v2272_v44  ;;  %v2275_v49 = vpop.f32.mrb[14].mxu0  ;;  %v2336_v52 = vpop.f32.mrb[12].mxu1 }
 0x110   :  { %v2276_v53 = vpop.f32.mrb[15].mxu0  ;;  %v2337_v56 = vpop.f32.mrb[13].mxu1 }
 0x111   :  { %v861_v54 = vadd.f32 %v2274_v48, %v3178_v50  ;;  %v2277_v55 = vadd.f32 %v2276_v53, %v2275_v49  ;;  %v2338_v57 = vadd.f32 %v2337_v56, %v2336_v52  ;;  %v2339_v58 = vpop.f32.mrb[14].mxu1 }
 0x112   :  { %v2340_v61 = vpop.f32.mrb[15].mxu1 }
 0x113   :  { %v864_v60 = vadd.f32 %v2277_v55, %v3178_v50  ;;  %v3242_v62 = vadd.f32 %v2338_v57, %v861_v54  ;;  %v2341_v63 = vadd.f32 %v2340_v61, %v2339_v58 }
 0x115   :  { %v2278_v0 = vpop.f32.mrb[16].mxu0  ;;  %v3244_v2 = vadd.f32 %v2341_v63, %v864_v60 }
 0x116   :  { %v2279_v3 = vpop.f32.mrb[17].mxu0 }
 0x117   :  { %v2280_v4 = vadd.f32 %v2279_v3, %v2278_v0  ;;  %v2281_v6 = vpop.f32.mrb[18].mxu0  ;;  %v2342_v7 = vpop.f32.mrb[16].mxu1 }
 0x118   :  { %v2282_v8 = vpop.f32.mrb[19].mxu0  ;;  %v2343_v11 = vpop.f32.mrb[17].mxu1 }
 0x119   :  { %v869_v9 = vadd.f32 %v2280_v4, %v3178_v50  ;;  %v2283_v10 = vadd.f32 %v2282_v8, %v2281_v6  ;;  %v2344_v12 = vadd.f32 %v2343_v11, %v2342_v7  ;;  %v2345_v13 = vpop.f32.mrb[18].mxu1 }
 0x11a   :  { %v2346_v15 = vpop.f32.mrb[19].mxu1 }
 0x11b   :  { %v872_v14 = vadd.f32 %v2283_v10, %v3178_v50  ;;  %v3248_v16 = vadd.f32 %v2344_v12, %v869_v9  ;;  %v2347_v17 = vadd.f32 %v2346_v15, %v2345_v13 }
 0x11d   :  { %v2284_v18 = vpop.f32.mrb[20].mxu0  ;;  %v3250_v19 = vadd.f32 %v2347_v17, %v872_v14 }
 0x11e   :  { %v2285_v20 = vpop.f32.mrb[21].mxu0 }
 0x11f   :  { %v2286_v21 = vadd.f32 %v2285_v20, %v2284_v18  ;;  %v2287_v23 = vpop.f32.mrb[22].mxu0  ;;  %v2348_v24 = vpop.f32.mrb[20].mxu1 }
 0x120   :  { %v2288_v26 = vpop.f32.mrb[23].mxu0  ;;  %v2349_v29 = vpop.f32.mrb[21].mxu1 }
 0x121   :  { %v877_v27 = vadd.f32 %v2286_v21, %v3178_v50  ;;  %v2289_v28 = vadd.f32 %v2288_v26, %v2287_v23  ;;  %v2350_v30 = vadd.f32 %v2349_v29, %v2348_v24  ;;  %v2351_v31 = vpop.f32.mrb[22].mxu1 }
 0x122   :  { %v2352_v33 = vpop.f32.mrb[23].mxu1 }
 0x123   :  { %v880_v32 = vadd.f32 %v2289_v28, %v3178_v50  ;;  %v3254_v34 = vadd.f32 %v2350_v30, %v877_v27  ;;  %v2353_v35 = vadd.f32 %v2352_v33, %v2351_v31 }
 0x125   :  { %v2290_v36 = vpop.f32.mrb[24].mxu0  ;;  %v3256_v37 = vadd.f32 %v2353_v35, %v880_v32 }
 0x126   :  { %v2291_v38 = vpop.f32.mrb[25].mxu0 }
 0x127   :  { %v2292_v39 = vadd.f32 %v2291_v38, %v2290_v36  ;;  %v2293_v40 = vpop.f32.mrb[26].mxu0  ;;  %v2354_v41 = vpop.f32.mrb[24].mxu1 }
 0x128   :  { %v2294_v43 = vpop.f32.mrb[27].mxu0  ;;  %v2355_v47 = vpop.f32.mrb[25].mxu1 }
 0x129   :  { %v885_v44 = vadd.f32 %v2292_v39, %v3178_v50  ;;  %v2295_v46 = vadd.f32 %v2294_v43, %v2293_v40  ;;  %v2356_v48 = vadd.f32 %v2355_v47, %v2354_v41  ;;  %v2357_v49 = vpop.f32.mrb[26].mxu1 }
 0x12a   :  { %v2358_v52 = vpop.f32.mrb[27].mxu1 }
 0x12b   :  { %v888_v51 = vadd.f32 %v2295_v46, %v3178_v50  ;;  %v3260_v53 = vadd.f32 %v2356_v48, %v885_v44  ;;  %v2359_v54 = vadd.f32 %v2358_v52, %v2357_v49 }
 0x12d   :  { %v2296_v55 = vpop.f32.mrb[28].mxu0  ;;  %v3262_v56 = vadd.f32 %v2359_v54, %v888_v51 }
 0x12e   :  { %v2297_v57 = vpop.f32.mrb[29].mxu0 }
 0x12f   :  { %v2298_v58 = vadd.f32 %v2297_v57, %v2296_v55  ;;  %v2299_v59 = vpop.f32.mrb[30].mxu0  ;;  %v2360_v60 = vpop.f32.mrb[28].mxu1 }
 0x130   :  { %v2300_v61 = vpop.f32.mrb[31].mxu0  ;;  %v2361_v3 = vpop.f32.mrb[29].mxu1 }
 0x131   :  { %v893_v63 = vadd.f32 %v2298_v58, %v3178_v50  ;;  %v2301_v0 = vadd.f32 %v2300_v61, %v2299_v59  ;;  %v2362_v4 = vadd.f32 %v2361_v3, %v2360_v60  ;;  %v2363_v6 = vpop.f32.mrb[30].mxu1 }
 0x132   :  { %v2364_v8 = vpop.f32.mrb[31].mxu1 }
 0x133   :  { %v896_v7 = vadd.f32 %v2301_v0, %v3178_v50  ;;  %v3266_v9 = vadd.f32 %v2362_v4, %v893_v63  ;;  %v2365_v10 = vadd.f32 %v2364_v8, %v2363_v6 }
 0x135   :  { %v2382_v11 = vpop.f32.mrb[32].mxu0  ;;  %v3268_v12 = vadd.f32 %v2365_v10, %v896_v7 }
 0x136   :  { %v2383_v13 = vpop.f32.mrb[33].mxu0 }
 0x137   :  { %v2384_v14 = vadd.f32 %v2383_v13, %v2382_v11  ;;  %v2385_v15 = vpop.f32.mrb[34].mxu0  ;;  %v2523_v18 = vpop.f32.mrb[32].mxu1 }
 0x138   :  { %v2386_v17 = vpop.f32.mrb[35].mxu0  ;;  %v1127_v23 = vpop.f32.mrb[33].mxu1 }
 0x139   :  { %v2387_v20 = vadd.f32 %v2386_v17, %v2385_v15  ;;  %v1031_v21 = vadd.f32 %v2384_v14, %v3188_v1  ;;  %v2524_v24 = vpop.f32.mrb[34].mxu1 }
 0x13a   :  { %v1130_v27 = vpop.f32.mrb[35].mxu1 }
 0x13b   :  { %v1128_v26 = vadd.f32 %v1127_v23, %v1031_v21  ;;  %v1034_v50 = vadd.f32 %v2387_v20, %v3193_v5 }
 0x13d   :  { %v1131_v28 = vadd.f32 %v1130_v27, %v1034_v50  ;;  %v2388_v29 = vpop.f32.mrb[36].mxu0  ;;  %v1190_v31 = vmax.f32 %v1128_v26, 0.0 }
 0x13e   :  { %v2389_v30 = vpop.f32.mrb[37].mxu0 }
 0x13f   :  { %v1191_v32 = vmax.f32 %v1131_v28, 0.0  ;;  %v2390_v33 = vadd.f32 %v2389_v30, %v2388_v29  ;;  %v2391_v35 = vpop.f32.mrb[38].mxu0  ;;  %v2527_v38 = vpop.f32.mrb[36].mxu1 }
 0x140   :  { %v2392_v36 = vpop.f32.mrb[39].mxu0  ;;  %v1143_v1 = vpop.f32.mrb[37].mxu1 }
 0x141   :  { %v1206_v39 = vpack.c.bf16 %v1191_v32, %v1190_v31  ;;  %v1039_v40 = vadd.f32 %v2390_v33, %v3209_v22  ;;  %v2393_v41 = vadd.f32 %v2392_v36, %v2391_v35  ;;  %v2528_v43 = vpop.f32.mrb[38].mxu1 }
 0x142   :  { %v1146_v5 = vpop.f32.mrb[39].mxu1 }
 0x143   :  { %v1136_v44 = vadd.f32 %v2523_v18, %v1039_v40  ;;  %v1042_v46 = vadd.f32 %v2393_v41, %v3211_v25  ;;  %2553 = vmatprep.mubr.bf16.mxu1 %v1206_v39 }
 0x145   :  { %v1139_v47 = vadd.f32 %v2524_v24, %v1042_v46  ;;  %v2394_v48 = vpop.f32.mrb[40].mxu0  ;;  %v1192_v51 = vmax.f32 %v1136_v44, 0.0 }
 0x146   :  { %v2395_v49 = vpop.f32.mrb[41].mxu0 }
 0x147   :  { %v1193_v52 = vmax.f32 %v1139_v47, 0.0  ;;  %v2396_v54 = vadd.f32 %v2395_v49, %v2394_v48  ;;  %v2397_v55 = vpop.f32.mrb[42].mxu0  ;;  %v2531_v58 = vpop.f32.mrb[40].mxu1 }
 0x148   :  { %v2398_v57 = vpop.f32.mrb[43].mxu0  ;;  %v1159_v61 = vpop.f32.mrb[41].mxu1 }
 0x149   :  { %v1207_v59 = vpack.c.bf16 %v1193_v52, %v1192_v51  ;;  %v2399_v60 = vadd.f32 %v2398_v57, %v2397_v55  ;;  %v1047_v22 = vadd.f32 %v2396_v54, %v3227_v42  ;;  %v2532_v63 = vpop.f32.mrb[42].mxu1 }
 0x14a   :  { %v1162_v3 = vpop.f32.mrb[43].mxu1 }
 0x14b   :  { %v1144_v0 = vadd.f32 %v1143_v1, %v1047_v22  ;;  %2554 = vmatmul.mubr.bf16.vlgmr.msra.gmra.mrb[48].mxu1 %v1207_v59  ;;  %v1050_v25 = vadd.f32 %v2399_v60, %v3229_v45 }
 0x14d   :  { %v1147_v4 = vadd.f32 %v1146_v5, %v1050_v25  ;;  %v2400_v6 = vpop.f32.mrb[44].mxu0  ;;  %v1194_v8 = vmax.f32 %v1144_v0, 0.0 }
 0x14e   :  { %v2401_v7 = vpop.f32.mrb[45].mxu0 }
 0x14f   :  { %v1195_v10 = vmax.f32 %v1147_v4, 0.0  ;;  %v2402_v11 = vadd.f32 %v2401_v7, %v2400_v6  ;;  %v2403_v13 = vpop.f32.mrb[46].mxu0  ;;  %v3276_v15 = vpop.f32.mrb[44].mxu1 }
 0x150   :  { %v2404_v14 = vpop.f32.mrb[47].mxu0  ;;  %v1175_v20 = vpop.f32.mrb[45].mxu1 }
 0x151   :  { %v1208_v17 = vpack.c.bf16 %v1195_v10, %v1194_v8  ;;  %v1055_v42 = vadd.f32 %v2402_v11, %v3242_v62  ;;  %v2405_v18 = vadd.f32 %v2404_v14, %v2403_v13  ;;  %v2536_v21 = vpop.f32.mrb[46].mxu1 }
 0x152   :  { %v1178_v24 = vpop.f32.mrb[47].mxu1 }
 0x153   :  { %v1152_v23 = vadd.f32 %v2527_v38, %v1055_v42  ;;  %v1058_v45 = vadd.f32 %v2405_v18, %v3244_v2  ;;  %2557 = vmatprep.mubr.bf16.mxu1 %v1208_v17 }
 0x155   :  { %v1155_v26 = vadd.f32 %v2528_v43, %v1058_v45  ;;  %v2406_v50 = vpop.f32.mrb[48].mxu0  ;;  %v1196_v28 = vmax.f32 %v1152_v23, 0.0  ;;  %v2731_v23 = vld [vmem:[%s3431_s5 + $0x70] ss:$8 sps:$4 sm:$0xff]   ;;  %v2737_v45 = vld [vmem:[%s3433_s7 + $0x8] sm:$0xff]  }
 0x156   :  { %v2407_v27 = vpop.f32.mrb[49].mxu0 }
 0x157   :  { %v1197_v29 = vmax.f32 %v1155_v26, 0.0  ;;  %v2408_v30 = vadd.f32 %v2407_v27, %v2406_v50  ;;  %v2409_v31 = vpop.f32.mrb[50].mxu0  ;;  %v2739_v26 = vld [vmem:[%s3433_s7 + $0x10] sm:$0xff]   ;;  %v2740_v50 = vld [vmem:[%s3433_s7 + $0x58] sm:$0xff]  }
 0x158   :  { %v2410_v32 = vpop.f32.mrb[51].mxu0  ;;  %v2741_v27 = vld [vmem:[%s3433_s7 + $0x18] sm:$0xff]  }
 0x159   :  { %v2411_v33 = vadd.f32 %v2410_v32, %v2409_v31  ;;  %v1063_v35 = vadd.f32 %v2408_v30, %v3248_v16  ;;  %v1209_v62 = vpack.c.bf16 %v1197_v29, %v1196_v28  ;;  %v2742_v28 = vld [vmem:[%s3433_s7 + $0x60] sm:$0xff]   ;;  %v2744_v30 = vld [vmem:[%s3433_s7 + $0x68] sm:$0xff]  }
 0x15a   :  { %v2743_v29 = vld [vmem:[%s3433_s7 + $0x20] sm:$0xff]  }
 0x15b   :  { %v1160_v36 = vadd.f32 %v1159_v61, %v1063_v35  ;;  %2558 = vmatmul.mubr.bf16.gmra.mrb[52].mxu1 %v1209_v62  ;;  %v1066_v38 = vadd.f32 %v2411_v33, %v3250_v19  ;;  %v2117_v31 = vld [vmem:[%s3430_s4] ss:$0 sm:$0xff] }
 0x15d   :  { %v1163_v39 = vadd.f32 %v1162_v3, %v1066_v38  ;;  %v2412_v2 = vpop.f32.mrb[52].mxu0  ;;  %v1198_v41 = vmax.f32 %v1160_v36, 0.0 }
 0x15e   :  { %v2413_v40 = vpop.f32.mrb[53].mxu0 }
 0x15f   :  { %v1199_v1 = vmax.f32 %v1163_v39, 0.0  ;;  %v2414_v43 = vadd.f32 %v2413_v40, %v2412_v2  ;;  %v2415_v44 = vpop.f32.mrb[54].mxu0 }
 0x160   :  { %v2416_v46 = vpop.f32.mrb[55].mxu0 }
 0x161   :  { %v1210_v5 = vpack.c.bf16 %v1199_v1, %v1198_v41  ;;  %v1071_v47 = vadd.f32 %v2414_v43, %v3254_v34  ;;  %v2417_v48 = vadd.f32 %v2416_v46, %v2415_v44 }
 0x163   :  { %v1168_v49 = vadd.f32 %v2531_v58, %v1071_v47  ;;  %v1074_v16 = vadd.f32 %v2417_v48, %v3256_v37  ;;  %2561 = vmatprep.mubr.bf16.mxu1 %v1210_v5 }
 0x165   :  { %v1171_v51 = vadd.f32 %v2532_v63, %v1074_v16  ;;  %v2418_v52 = vpop.f32.mrb[56].mxu0  ;;  %v1200_v19 = vmax.f32 %v1168_v49, 0.0 }
 0x166   :  { %v2419_v54 = vpop.f32.mrb[57].mxu0 }
 0x167   :  { %v1201_v55 = vmax.f32 %v1171_v51, 0.0  ;;  %v2420_v57 = vadd.f32 %v2419_v54, %v2418_v52  ;;  %v2421_v59 = vpop.f32.mrb[58].mxu0 }
 0x168   :  { %v2422_v60 = vpop.f32.mrb[59].mxu0 }
 0x169   :  { %v2423_v22 = vadd.f32 %v2422_v60, %v2421_v59  ;;  %v1079_v61 = vadd.f32 %v2420_v57, %v3260_v53  ;;  %v1211_v0 = vpack.c.bf16 %v1201_v55, %v1200_v19 }
 0x16b   :  { %v1176_v25 = vadd.f32 %v1175_v20, %v1079_v61  ;;  %2562 = vmatmul.mubr.bf16.gmra.mrb[56].mxu1 %v1211_v0  ;;  %v1082_v34 = vadd.f32 %v2423_v22, %v3262_v56  ;;  %v2733_v20 = vld [vmem:[%s3431_s5 + $0x74] ss:$8 sps:$4 sm:$0xff]  }
 0x16c   :  { %1528 = vmatprep.subr.bf16.mxu0 %v2733_v20 }
 0x16d   :  { %v1179_v58 = vadd.f32 %v1178_v24, %v1082_v34  ;;  %v2424_v3 = vpop.f32.mrb[60].mxu0  ;;  %v1202_v4 = vmax.f32 %v1176_v25, 0.0  ;;  %1529 = vmatpush1.bf16.msra.mxu0 %v2731_v23  ;;  %v2738_v24 = vld [vmem:[%s3433_s7 + $0x50] sm:$0xff]  }
 0x16e   :  { %v2425_v37 = vpop.f32.mrb[61].mxu0 }
 0x16f   :  { %v1203_v63 = vmax.f32 %v1179_v58, 0.0  ;;  %v2426_v6 = vadd.f32 %v2425_v37, %v2424_v3  ;;  %v2427_v7 = vpop.f32.mrb[62].mxu0 }
 0x170   :  { %v2428_v8 = vpop.f32.mrb[63].mxu0 }
 0x171   :  { %v1212_v10 = vpack.c.bf16 %v1203_v63, %v1202_v4  ;;  %v1087_v11 = vadd.f32 %v2426_v6, %v3266_v9  ;;  %v2429_v13 = vadd.f32 %v2428_v8, %v2427_v7  ;;  %v2774_v9 = vmov 0  }
 0x172   :  { %1546 = vmatprep.mubr.bf16.mxu0 %v2774_v9 }
 0x173   :  { %v1184_v14 = vadd.f32 %v3276_v15, %v1087_v11  ;;  %v1090_v53 = vadd.f32 %v2429_v13, %v3268_v12  ;;  %2565 = vmatprep.mubr.bf16.mxu1 %v1212_v10  ;;  %v2734_v12 = vld [vmem:[%s3433_s7 + $0x40] sm:$0xff]  }
 0x174   :  { %v2735_v15 = vld [vmem:[%s3433_s7] sm:$0xff]   ;;  %2455 = vmatprep.subr.bf16.mxu1 %v2734_v12 }
 0x175   :  { %v1187_v17 = vadd.f32 %v2536_v21, %v1090_v53  ;;  %v1204_v42 = vmax.f32 %v1184_v14, 0.0  ;;  %v2736_v21 = vld [vmem:[%s3433_s7 + $0x48] sm:$0xff]   ;;  %2456 = vmatpush3.bf16.msra.mxu1 %v2735_v15 }
 0x176   :  { %2457 = vmatprep.subr.bf16.mxu1 %v2736_v21 }
 0x177   :  { %v1205_v56 = vmax.f32 %v1187_v17, 0.0 }
 0x179   :  { %v1213_v18 = vpack.c.bf16 %v1205_v56, %v1204_v42  ;;  %2458 = vmatpush3.bf16.msra.mxu1 %v2737_v45 }
 0x17a   :  { %2459 = vmatprep.subr.bf16.mxu1 %v2738_v24 }
 0x17b   :  { %2566 = vmatmul.mubr.bf16.gmra.mrb[60].mxu1 %v1213_v18 }
 0x17d   :  { %2460 = vmatpush3.bf16.msra.mxu1 %v2739_v26  ;;  %v2745_v26 = vld [vmem:[%s3433_s7 + $0x28] sm:$0xff]  }
 0x17e   :  { %2461 = vmatprep.subr.bf16.mxu1 %v2740_v50  ;;  %v2746_v50 = vld [vmem:[%s3433_s7 + $0x70] sm:$0xff]  }
 0x181   :  { %2462 = vmatpush3.bf16.msra.mxu1 %v2741_v27  ;;  %v2747_v27 = vld [vmem:[%s3433_s7 + $0x30] sm:$0xff]  }
 0x182   :  { %2463 = vmatprep.subr.bf16.mxu1 %v2742_v28  ;;  %v2749_v28 = vld [vmem:[%s3433_s7 + $0x38] sm:$0xff]  }
 0x185   :  { %2464 = vmatpush3.bf16.msra.mxu1 %v2743_v29  ;;  %v1424_v29 = vlaneseq }
 0x186   :  { %2465 = vmatprep.subr.bf16.mxu1 %v2744_v30 }
 0x187   :  { %v1425_v30 = vshrl.u32 %v1424_v29, 7 }
 0x189   :  { %2466 = vmatpush3.bf16.msra.mxu1 %v2745_v26 }
 0x18a   :  { %2467 = vmatprep.subr.bf16.mxu1 %v2746_v50 }
 0x18d   :  { %2468 = vmatpush3.bf16.msra.mxu1 %v2747_v27 }
 0x21e   :  { %v2555_v32 = vpop.f32.mrb[48].mxu1 }
 0x21f   :  { %v1328_v33 = vadd.f32 %v2555_v32, %v2117_v31  ;;  %v1319_v35 = vpop.f32.mrb[49].mxu1  ;;  %v1422_v32 = vld [vmem:[%s3432_s6] sm:$0x3] }
 0x220   :  { %v1320_v62 = vadd.f32 %v2117_v31, %v1319_v35  ;;  %v2556_v36 = vpop.f32.mrb[50].mxu1 }
 0x221   :  { %v1331_v38 = vadd.f32 %v2556_v36, %v2117_v31  ;;  %v1322_v39 = vpop.f32.mrb[51].mxu1  ;;  %v1384_v40 = vmax.f32 %v1328_v33, 0.0  ;;  %v1430_v33 = vsub.s32 1, %v1425_v30 }
 0x222   :  { %v1323_v2 = vadd.f32 %v2117_v31, %v1322_v39  ;;  %v1382_v1 = vmax.f32 %v1320_v62, 0.0 }
 0x223   :  { %v1385_v41 = vmax.f32 %v1331_v38, 0.0  ;;  %v3359_v62 = vrot.slane %v1422_v32, %v1430_v33 }
 0x224   :  { %v1383_v43 = vmax.f32 %v1323_v2, 0.0 }
 0x225   :  { %v1399_v44 = vpack.c.bf16 %v1385_v41, %v1384_v40 }
 0x226   :  { %v1398_v46 = vpack.c.bf16 %v1383_v43, %v1382_v1 }
 0x228   :  { %1547 = vmatmul.mubr.bf16.vlgmr.msra.gmra.mrb[64].mxu0 %v1398_v46 }
 0x229   :  { %1556 = vmatprep.mubr.bf16.mxu0 %v2774_v9 }
 0x22e   :  { %v2559_v5 = vpop.f32.mrb[52].mxu1 }
 0x22f   :  { %v1344_v47 = vadd.f32 %v2559_v5, %v2117_v31  ;;  %v1335_v48 = vpop.f32.mrb[53].mxu1 }
 0x230   :  { %v1336_v49 = vadd.f32 %v2117_v31, %v1335_v48  ;;  %v2560_v16 = vpop.f32.mrb[54].mxu1  ;;  %1557 = vmatmul.mubr.bf16.gmra.mrb[68].mxu0 %v1399_v44 }
 0x231   :  { %v1347_v51 = vadd.f32 %v2560_v16, %v2117_v31  ;;  %v1338_v52 = vpop.f32.mrb[55].mxu1  ;;  %1566 = vmatprep.mubr.bf16.mxu0 %v2774_v9  ;;  %v1388_v19 = vmax.f32 %v1344_v47, 0.0 }
 0x232   :  { %v1339_v54 = vadd.f32 %v2117_v31, %v1338_v52  ;;  %v1386_v57 = vmax.f32 %v1336_v49, 0.0 }
 0x233   :  { %v1389_v55 = vmax.f32 %v1347_v51, 0.0 }
 0x234   :  { %v1387_v59 = vmax.f32 %v1339_v54, 0.0 }
 0x235   :  { %v1401_v60 = vpack.c.bf16 %v1389_v55, %v1388_v19 }
 0x236   :  { %v1400_v22 = vpack.c.bf16 %v1387_v59, %v1386_v57 }
 0x238   :  { %1567 = vmatmul.mubr.bf16.gmra.mrb[72].mxu0 %v1400_v22 }
 0x239   :  { %1576 = vmatprep.mubr.bf16.mxu0 %v2774_v9 }
 0x23e   :  { %v2563_v61 = vpop.f32.mrb[56].mxu1 }
 0x23f   :  { %v1360_v0 = vadd.f32 %v2563_v61, %v2117_v31  ;;  %v1351_v25 = vpop.f32.mrb[57].mxu1 }
 0x240   :  { %v1352_v34 = vadd.f32 %v2117_v31, %v1351_v25  ;;  %v2564_v58 = vpop.f32.mrb[58].mxu1  ;;  %1577 = vmatmul.mubr.bf16.gmra.mrb[76].mxu0 %v1401_v60 }
 0x241   :  { %v1363_v3 = vadd.f32 %v2564_v58, %v2117_v31  ;;  %v1354_v37 = vpop.f32.mrb[59].mxu1  ;;  %1586 = vmatprep.mubr.bf16.mxu0 %v2774_v9  ;;  %v1392_v63 = vmax.f32 %v1360_v0, 0.0 }
 0x242   :  { %v1355_v4 = vadd.f32 %v2117_v31, %v1354_v37  ;;  %v1390_v7 = vmax.f32 %v1352_v34, 0.0 }
 0x243   :  { %v1393_v6 = vmax.f32 %v1363_v3, 0.0 }
 0x244   :  { %v1391_v8 = vmax.f32 %v1355_v4, 0.0 }
 0x245   :  { %v1403_v10 = vpack.c.bf16 %v1393_v6, %v1392_v63 }
 0x246   :  { %v1402_v11 = vpack.c.bf16 %v1391_v8, %v1390_v7 }
 0x248   :  { %1587 = vmatmul.mubr.bf16.gmra.mrb[80].mxu0 %v1402_v11 }
 0x249   :  { %1596 = vmatprep.mubr.bf16.mxu0 %v2774_v9 }
 0x24e   :  { %v2567_v13 = vpop.f32.mrb[60].mxu1 }
 0x24f   :  { %v1376_v14 = vadd.f32 %v2567_v13, %v2117_v31  ;;  %v1367_v53 = vpop.f32.mrb[61].mxu1 }
 0x250   :  { %v1368_v17 = vadd.f32 %v2117_v31, %v1367_v53  ;;  %v2568_v42 = vpop.f32.mrb[62].mxu1  ;;  %1597 = vmatmul.mubr.bf16.gmra.mrb[84].mxu0 %v1403_v10 }
 0x251   :  { %v1379_v56 = vadd.f32 %v2568_v42, %v2117_v31  ;;  %v1370_v18 = vpop.f32.mrb[63].mxu1  ;;  %1606 = vmatprep.mubr.bf16.mxu0 %v2774_v9  ;;  %v1396_v23 = vmax.f32 %v1376_v14, 0.0 }
 0x252   :  { %v1371_v20 = vadd.f32 %v2117_v31, %v1370_v18  ;;  %v1394_v15 = vmax.f32 %v1368_v17, 0.0  ;;  %v1426_v31 = vsub.s32 0, %v1425_v30 }
 0x253   :  { %v1397_v12 = vmax.f32 %v1379_v56, 0.0 }
 0x254   :  { %v1395_v21 = vmax.f32 %v1371_v20, 0.0  ;;  %v3357_v35 = vrot.slane %v1422_v32, %v1426_v31 }
 0x255   :  { %v1405_v45 = vpack.c.bf16 %v1397_v12, %v1396_v23 }
 0x256   :  { %v1404_v24 = vpack.c.bf16 %v1395_v21, %v1394_v15 }
 0x258   :  { %1607 = vmatmul.mubr.bf16.gmra.mrb[88].mxu0 %v1404_v24 }
 0x259   :  { %1616 = vmatprep.mubr.bf16.mxu0 %v2774_v9  ;;  %v2748_v9 = vld [vmem:[%s3433_s7 + $0x78] sm:$0xff]  }
 0x25a   :  { %2469 = vmatprep.subr.bf16.mxu1 %v2748_v9 }
 0x25b   :  { %2470 = vmatpush3.bf16.msra.mxu1 %v2749_v28 }
 0x260   :  { %1617 = vmatmul.mubr.bf16.gmra.mrb[92].mxu0 %v1405_v45 }
 0x2fb   :  { %v1548_v36 = vpop.f32.mrb[64].mxu0 }
 0x2fc   :  { %v1549_v38 = vadd.f32 %v1548_v36, %v3357_v35  ;;  %v1550_v39 = vpop.f32.mrb[65].mxu0 }
 0x2fd   :  { %v1551_v2 = vadd.f32 %v1550_v39, %v3359_v62  ;;  %v1552_v40 = vpop.f32.mrb[66].mxu0 }
 0x2fe   :  { %v1553_v41 = vadd.f32 %v1552_v40, %v3357_v35  ;;  %v1554_v1 = vpop.f32.mrb[67].mxu0  ;;  %v1627_v44 = vmax.f32 %v1549_v38, 0.0 }
 0x2ff   :  { %v1555_v43 = vadd.f32 %v1554_v1, %v3359_v62  ;;  %v1628_v5 = vmax.f32 %v1551_v2, 0.0 }
 0x300   :  { %v1629_v46 = vmax.f32 %v1553_v41, 0.0 }
 0x301   :  { %v1630_v47 = vmax.f32 %v1555_v43, 0.0 }
 0x302   :  { %v1659_v48 = vpack.c.bf16 %v1629_v46, %v1627_v44 }
 0x303   :  { %v1660_v49 = vpack.c.bf16 %v1630_v47, %v1628_v5  ;;  %v1558_v16 = vpop.f32.mrb[68].mxu0 }
 0x304   :  { %v1559_v51 = vadd.f32 %v1558_v16, %v3357_v35  ;;  %v1560_v52 = vpop.f32.mrb[69].mxu0 }
 0x305   :  { %v1561_v54 = vadd.f32 %v1560_v52, %v3359_v62  ;;  %v1562_v19 = vpop.f32.mrb[70].mxu0  ;;  %1842 = vmatprep.mubr.bf16.mxu1 %v1660_v49 }
 0x306   :  { %v1563_v55 = vadd.f32 %v1562_v19, %v3357_v35  ;;  %v1564_v57 = vpop.f32.mrb[71].mxu0  ;;  %1843 = vmatmul.mubr.bf16.vlgmr.msra.gmra.mrb[64].mxu1 %v1659_v48  ;;  %v1631_v60 = vmax.f32 %v1559_v51, 0.0 }
 0x307   :  { %v1565_v59 = vadd.f32 %v1564_v57, %v3359_v62  ;;  %v1632_v61 = vmax.f32 %v1561_v54, 0.0 }
 0x308   :  { %v1633_v22 = vmax.f32 %v1563_v55, 0.0 }
 0x309   :  { %v1634_v0 = vmax.f32 %v1565_v59, 0.0 }
 0x30a   :  { %v1661_v25 = vpack.c.bf16 %v1633_v22, %v1631_v60 }
 0x30b   :  { %v1662_v34 = vpack.c.bf16 %v1634_v0, %v1632_v61  ;;  %v1568_v58 = vpop.f32.mrb[72].mxu0 }
 0x30c   :  { %v1569_v3 = vadd.f32 %v1568_v58, %v3357_v35  ;;  %v1570_v37 = vpop.f32.mrb[73].mxu0 }
 0x30d   :  { %v1571_v4 = vadd.f32 %v1570_v37, %v3359_v62  ;;  %v1572_v63 = vpop.f32.mrb[74].mxu0  ;;  %1850 = vmatprep.mubr.bf16.mxu1 %v1662_v34 }
 0x30e   :  { %v1573_v6 = vadd.f32 %v1572_v63, %v3357_v35  ;;  %v1574_v7 = vpop.f32.mrb[75].mxu0  ;;  %1851 = vmatmul.mubr.bf16.gmra.mrb[68].mxu1 %v1661_v25  ;;  %v1635_v10 = vmax.f32 %v1569_v3, 0.0 }
 0x30f   :  { %v1575_v8 = vadd.f32 %v1574_v7, %v3359_v62  ;;  %v1636_v13 = vmax.f32 %v1571_v4, 0.0 }
 0x310   :  { %v1637_v11 = vmax.f32 %v1573_v6, 0.0 }
 0x311   :  { %v1638_v14 = vmax.f32 %v1575_v8, 0.0 }
 0x312   :  { %v1663_v53 = vpack.c.bf16 %v1637_v11, %v1635_v10 }
 0x313   :  { %v1664_v17 = vpack.c.bf16 %v1638_v14, %v1636_v13  ;;  %v1578_v42 = vpop.f32.mrb[76].mxu0 }
 0x314   :  { %v1579_v56 = vadd.f32 %v1578_v42, %v3357_v35  ;;  %v1580_v18 = vpop.f32.mrb[77].mxu0 }
 0x315   :  { %v1581_v20 = vadd.f32 %v1580_v18, %v3359_v62  ;;  %v1582_v23 = vpop.f32.mrb[78].mxu0  ;;  %1858 = vmatprep.mubr.bf16.mxu1 %v1664_v17 }
 0x316   :  { %v1583_v12 = vadd.f32 %v1582_v23, %v3357_v35  ;;  %v1584_v15 = vpop.f32.mrb[79].mxu0  ;;  %1859 = vmatmul.mubr.bf16.gmra.mrb[72].mxu1 %v1663_v53  ;;  %v1639_v45 = vmax.f32 %v1579_v56, 0.0 }
 0x317   :  { %v1585_v21 = vadd.f32 %v1584_v15, %v3359_v62  ;;  %v1640_v26 = vmax.f32 %v1581_v20, 0.0 }
 0x318   :  { %v1641_v24 = vmax.f32 %v1583_v12, 0.0 }
 0x319   :  { %v1642_v50 = vmax.f32 %v1585_v21, 0.0 }
 0x31a   :  { %v1665_v27 = vpack.c.bf16 %v1641_v24, %v1639_v45 }
 0x31b   :  { %v1666_v9 = vpack.c.bf16 %v1642_v50, %v1640_v26  ;;  %v1588_v28 = vpop.f32.mrb[80].mxu0 }
 0x31c   :  { %v1589_v29 = vadd.f32 %v1588_v28, %v3357_v35  ;;  %v1590_v30 = vpop.f32.mrb[81].mxu0 }
 0x31d   :  { %v1591_v31 = vadd.f32 %v1590_v30, %v3359_v62  ;;  %v1592_v32 = vpop.f32.mrb[82].mxu0  ;;  %1866 = vmatprep.mubr.bf16.mxu1 %v1666_v9 }
 0x31e   :  { %v1593_v33 = vadd.f32 %v1592_v32, %v3357_v35  ;;  %v1594_v36 = vpop.f32.mrb[83].mxu0  ;;  %1867 = vmatmul.mubr.bf16.gmra.mrb[76].mxu1 %v1665_v27  ;;  %v1643_v39 = vmax.f32 %v1589_v29, 0.0 }
 0x31f   :  { %v1595_v38 = vadd.f32 %v1594_v36, %v3359_v62  ;;  %v1644_v40 = vmax.f32 %v1591_v31, 0.0 }
 0x320   :  { %v1645_v2 = vmax.f32 %v1593_v33, 0.0 }
 0x321   :  { %v1646_v41 = vmax.f32 %v1595_v38, 0.0 }
 0x322   :  { %v1667_v1 = vpack.c.bf16 %v1645_v2, %v1643_v39 }
 0x323   :  { %v1668_v43 = vpack.c.bf16 %v1646_v41, %v1644_v40  ;;  %v1598_v44 = vpop.f32.mrb[84].mxu0 }
 0x324   :  { %v1599_v46 = vadd.f32 %v1598_v44, %v3357_v35  ;;  %v1600_v5 = vpop.f32.mrb[85].mxu0 }
 0x325   :  { %v1601_v47 = vadd.f32 %v1600_v5, %v3359_v62  ;;  %v1602_v48 = vpop.f32.mrb[86].mxu0  ;;  %1874 = vmatprep.mubr.bf16.mxu1 %v1668_v43 }
 0x326   :  { %v1603_v49 = vadd.f32 %v1602_v48, %v3357_v35  ;;  %v1604_v16 = vpop.f32.mrb[87].mxu0  ;;  %1875 = vmatmul.mubr.bf16.gmra.mrb[80].mxu1 %v1667_v1  ;;  %v1647_v52 = vmax.f32 %v1599_v46, 0.0 }
 0x327   :  { %v1605_v51 = vadd.f32 %v1604_v16, %v3359_v62  ;;  %v1648_v19 = vmax.f32 %v1601_v47, 0.0 }
 0x328   :  { %v1649_v54 = vmax.f32 %v1603_v49, 0.0 }
 0x329   :  { %v1650_v55 = vmax.f32 %v1605_v51, 0.0 }
 0x32a   :  { %v1669_v57 = vpack.c.bf16 %v1649_v54, %v1647_v52 }
 0x32b   :  { %v1670_v59 = vpack.c.bf16 %v1650_v55, %v1648_v19  ;;  %v1608_v60 = vpop.f32.mrb[88].mxu0 }
 0x32c   :  { %v1609_v22 = vadd.f32 %v1608_v60, %v3357_v35  ;;  %v1610_v61 = vpop.f32.mrb[89].mxu0 }
 0x32d   :  { %v1611_v0 = vadd.f32 %v1610_v61, %v3359_v62  ;;  %v1612_v25 = vpop.f32.mrb[90].mxu0  ;;  %1882 = vmatprep.mubr.bf16.mxu1 %v1670_v59 }
 0x32e   :  { %v1613_v34 = vadd.f32 %v1612_v25, %v3357_v35  ;;  %v1614_v58 = vpop.f32.mrb[91].mxu0  ;;  %1883 = vmatmul.mubr.bf16.gmra.mrb[84].mxu1 %v1669_v57  ;;  %v1651_v37 = vmax.f32 %v1609_v22, 0.0 }
 0x32f   :  { %v1615_v3 = vadd.f32 %v1614_v58, %v3359_v62  ;;  %v1652_v63 = vmax.f32 %v1611_v0, 0.0 }
 0x330   :  { %v1653_v4 = vmax.f32 %v1613_v34, 0.0 }
 0x331   :  { %v1654_v6 = vmax.f32 %v1615_v3, 0.0 }
 0x332   :  { %v1671_v7 = vpack.c.bf16 %v1653_v4, %v1651_v37 }
 0x333   :  { %v1672_v8 = vpack.c.bf16 %v1654_v6, %v1652_v63  ;;  %v1618_v10 = vpop.f32.mrb[92].mxu0 }
 0x334   :  { %v1619_v11 = vadd.f32 %v1618_v10, %v3357_v35  ;;  %v1620_v13 = vpop.f32.mrb[93].mxu0 }
 0x335   :  { %v1621_v14 = vadd.f32 %v1620_v13, %v3359_v62  ;;  %v1622_v53 = vpop.f32.mrb[94].mxu0  ;;  %1890 = vmatprep.mubr.bf16.mxu1 %v1672_v8 }
 0x336   :  { %v1623_v17 = vadd.f32 %v1622_v53, %v3357_v35  ;;  %v1624_v42 = vpop.f32.mrb[95].mxu0  ;;  %1891 = vmatmul.mubr.bf16.gmra.mrb[88].mxu1 %v1671_v7  ;;  %v1655_v18 = vmax.f32 %v1619_v11, 0.0  ;;  %v3396_v35 = vld [vmem:[%s3434_s8] ss:$0 sm:$0xff]  ;;  %s2775_s8 = smov [#allocation2]  }
 0x337   :  { %v1625_v56 = vadd.f32 %v1624_v42, %v3359_v62  ;;  %v1656_v23 = vmax.f32 %v1621_v14, 0.0  ;;  %s1992_s12 = sshll.u32 %s2775_s8, 4  ;;  %s1993_s12 = int_to_ptr.vmem [resolvable:$true] %s1992_s12 }
 0x338   :  { %v1657_v20 = vmax.f32 %v1623_v17, 0.0  ;;  %s2750_s13 = scalar_lea.vmem %s1993_s12, 1024  ;;  %p2755_p1 = scmp.lt.s32.totalorder %s1993_s12, %s1993_s12 }
 0x339   :  { %v1658_v12 = vmax.f32 %v1625_v56, 0.0  ;;  %p2751_p0 = scmp.ne.s32.totalorder %s1993_s12, %s2750_s13  ;;  %p2756_p2 = scmp.lt.s32.totalorder %s2750_s13, %s2750_s13 }
 0x33a   :  { %v1673_v15 = vpack.c.bf16 %v1657_v20, %v1655_v18 }
 0x33b   :  { %v1674_v21 = vpack.c.bf16 %v1658_v12, %v1656_v23  ;;  %p2757_p3 = por %p2756_p2, %p2755_p1 }
 0x33d   :  { %1898 = vmatprep.mubr.bf16.mxu1 %v1674_v21  ;;  %p2758_p4 = pnand %p2757_p3, %p2751_p0 }
 0x33e   :  { %1899 = vmatmul.mubr.bf16.gmra.mrb[92].mxu1 %v1673_v15 }
 0x3d9   :  { %v2471_v45 = vpop.f32.mrb[64].mxu1 }
 0x3da   :  { %v2472_v24 = vpop.f32.mrb[65].mxu1 }
 0x3db   :  { %v2473_v26 = vadd.f32 %v2472_v24, %v2471_v45  ;;  %v2474_v50 = vpop.f32.mrb[66].mxu1 }
 0x3dc   :  { %v2475_v27 = vpop.f32.mrb[67].mxu1 }
 0x3dd   :  { %v2476_v9 = vadd.f32 %v2475_v27, %v2474_v50  ;;  %v1845_v62 = vadd.f32 %v2473_v26, %v3396_v35 }
 0x3df   :  { %v1848_v28 = vadd.f32 %v2476_v9, %v3396_v35 }
 0x3e1   :  { %v2194_v29 = vpack.c.bf16 %v1848_v28, %v1845_v62  ;;  %v2477_v30 = vpop.f32.mrb[68].mxu1 }
 0x3e2   :  { %v2478_v31 = vpop.f32.mrb[69].mxu1 }
 0x3e3   :  { %2195 = vst [vmem:[#allocation2] sm:$0xff] %v2194_v29   ;;  %v2479_v32 = vadd.f32 %v2478_v31, %v2477_v30  ;;  %v2480_v33 = vpop.f32.mrb[70].mxu1 }
 0x3e4   :  { %v2481_v36 = vpop.f32.mrb[71].mxu1 }
 0x3e5   :  { %v2482_v38 = vadd.f32 %v2481_v36, %v2480_v33  ;;  %v1853_v39 = vadd.f32 %v2479_v32, %v3396_v35 }
 0x3e7   :  { %v1856_v2 = vadd.f32 %v2482_v38, %v3396_v35 }
 0x3e9   :  { %v2199_v40 = vpack.c.bf16 %v1856_v2, %v1853_v39  ;;  %v2483_v41 = vpop.f32.mrb[72].mxu1 }
 0x3ea   :  { %v2484_v1 = vpop.f32.mrb[73].mxu1 }
 0x3eb   :  { %2231 = vst [vmem:[#allocation2 + $0x8] sm:$0xff] %v2199_v40   ;;  %v2485_v43 = vadd.f32 %v2484_v1, %v2483_v41  ;;  %v2486_v44 = vpop.f32.mrb[74].mxu1 }
 0x3ec   :  { %v2487_v46 = vpop.f32.mrb[75].mxu1 }
 0x3ed   :  { %v2488_v5 = vadd.f32 %v2487_v46, %v2486_v44  ;;  %v1861_v47 = vadd.f32 %v2485_v43, %v3396_v35 }
 0x3ef   :  { %v1864_v48 = vadd.f32 %v2488_v5, %v3396_v35 }
 0x3f1   :  { %v2204_v49 = vpack.c.bf16 %v1864_v48, %v1861_v47  ;;  %v2489_v16 = vpop.f32.mrb[76].mxu1 }
 0x3f2   :  { %v2490_v51 = vpop.f32.mrb[77].mxu1 }
 0x3f3   :  { %2232 = vst [vmem:[#allocation2 + $0x10] sm:$0xff] %v2204_v49   ;;  %v2491_v52 = vadd.f32 %v2490_v51, %v2489_v16  ;;  %v2492_v54 = vpop.f32.mrb[78].mxu1 }
 0x3f4   :  { %v2493_v19 = vpop.f32.mrb[79].mxu1 }
 0x3f5   :  { %v2494_v55 = vadd.f32 %v2493_v19, %v2492_v54  ;;  %v1869_v57 = vadd.f32 %v2491_v52, %v3396_v35 }
 0x3f7   :  { %v1872_v59 = vadd.f32 %v2494_v55, %v3396_v35 }
 0x3f9   :  { %v2209_v60 = vpack.c.bf16 %v1872_v59, %v1869_v57  ;;  %v2495_v22 = vpop.f32.mrb[80].mxu1 }
 0x3fa   :  { %v2496_v61 = vpop.f32.mrb[81].mxu1 }
 0x3fb   :  { %2233 = vst [vmem:[#allocation2 + $0x18] sm:$0xff] %v2209_v60   ;;  %v2497_v0 = vadd.f32 %v2496_v61, %v2495_v22  ;;  %v2498_v25 = vpop.f32.mrb[82].mxu1 }
 0x3fc   :  { %v2499_v34 = vpop.f32.mrb[83].mxu1 }
 0x3fd   :  { %v2500_v58 = vadd.f32 %v2499_v34, %v2498_v25  ;;  %v1877_v3 = vadd.f32 %v2497_v0, %v3396_v35 }
 0x3ff   :  { %v1880_v37 = vadd.f32 %v2500_v58, %v3396_v35 }
 0x401   :  { %v2214_v4 = vpack.c.bf16 %v1880_v37, %v1877_v3  ;;  %v2501_v63 = vpop.f32.mrb[84].mxu1 }
 0x402   :  { %v2502_v6 = vpop.f32.mrb[85].mxu1 }
 0x403   :  { %2234 = vst [vmem:[#allocation2 + $0x20] sm:$0xff] %v2214_v4   ;;  %v2503_v7 = vadd.f32 %v2502_v6, %v2501_v63  ;;  %v2504_v8 = vpop.f32.mrb[86].mxu1 }
 0x404   :  { %v2505_v10 = vpop.f32.mrb[87].mxu1 }
 0x405   :  { %v2506_v11 = vadd.f32 %v2505_v10, %v2504_v8  ;;  %v1885_v13 = vadd.f32 %v2503_v7, %v3396_v35 }
 0x407   :  { %v1888_v14 = vadd.f32 %v2506_v11, %v3396_v35 }
 0x409   :  { %v2219_v53 = vpack.c.bf16 %v1888_v14, %v1885_v13  ;;  %v2507_v17 = vpop.f32.mrb[88].mxu1 }
 0x40a   :  { %v2508_v42 = vpop.f32.mrb[89].mxu1 }
 0x40b   :  { %2235 = vst [vmem:[#allocation2 + $0x28] sm:$0xff] %v2219_v53   ;;  %v2509_v56 = vadd.f32 %v2508_v42, %v2507_v17  ;;  %v2510_v18 = vpop.f32.mrb[90].mxu1 }
 0x40c   :  { %v2511_v20 = vpop.f32.mrb[91].mxu1 }
 0x40d   :  { %v2512_v23 = vadd.f32 %v2511_v20, %v2510_v18  ;;  %v1893_v12 = vadd.f32 %v2509_v56, %v3396_v35 }
 0x40f   :  { %v1896_v15 = vadd.f32 %v2512_v23, %v3396_v35 }
 0x411   :  { %v2224_v21 = vpack.c.bf16 %v1896_v15, %v1893_v12  ;;  %v2513_v45 = vpop.f32.mrb[92].mxu1 }
 0x412   :  { %v2514_v24 = vpop.f32.mrb[93].mxu1 }
 0x413   :  { %2236 = vst [vmem:[#allocation2 + $0x30] sm:$0xff] %v2224_v21   ;;  %v2515_v26 = vadd.f32 %v2514_v24, %v2513_v45  ;;  %v2516_v50 = vpop.f32.mrb[94].mxu1 }
 0x414   :  { %v2517_v27 = vpop.f32.mrb[95].mxu1 }
 0x415   :  { %v2518_v9 = vadd.f32 %v2517_v27, %v2516_v50  ;;  %v1901_v62 = vadd.f32 %v2515_v26, %v3396_v35 }
 0x417   :  { %v1904_v28 = vadd.f32 %v2518_v9, %v3396_v35 }
 0x419   :  { %v2229_v29 = vpack.c.bf16 %v1904_v28, %v1901_v62 }
 0x41b   :  { %2237 = vst [vmem:[#allocation2 + $0x38] sm:$0xff] %v2229_v29  }
 0x41c   :  { %2761 = shalt.err (!%p2758_p4)
}
 0x41d   :  { %s2762_s16 = scalar_lea.hbm %s3435_s9, 1024 }
 0x41e   :  { %p2763_p5 = scmp.ne.s32.totalorder %s3435_s9, %s2762_s16  ;;  %p2766_p6 = scmp.lt.u32.totalorder %s2762_s16, %s3435_s9 }
 0x420   :  { %p2768_p7 = pnand %p2766_p6, %p2763_p5 }
 0x422   :  { %2771 = shalt.err (!%p2768_p7)
}
 0x423   :  { %s2776_s21 = smov 64   ;;  %s2777_s3 = smov 4  }
 0x424   :  { %1998 = dma.vmem_to_hbm [thread:$0]  %s1993_s12, 1024, %s3435_s9, [#allocation3], %s2776_s21, %s2776_s21, %s2777_s3  }
 0x425   :  { %2772 = dma.done.wait [#allocation3], 1024  }
 0x426   :  { %2773 = vsyncadd [#allocation3], 4294966272 }
 0x427   :  { %2002 = vsyncpa [#allocation3], 1 }

// kernel: tpu_custom_call.1
= control target key start
LH: loop header
LB: loop body
LE: loop exit
PB: predicated region body
PF: predicated region fallthrough
CT: control target
= control target key end

     0   :  { %vm777_vm0 = vcmask 130048   ;;  %s3426_s0 = inlined_call_operand.vmem [shape: bf16[128,784], index: 0, kind: input, shape index: {}]   ;;  %s3427_s1 = inlined_call_operand.vmem [shape: bf16[784,128], index: 1, kind: input, shape index: {}]   ;;  %s3428_s2 = inlined_call_operand.vmem [shape: f32[1,128], index: 2, kind: input, shape index: {}]   ;;  %s3429_s3 = inlined_call_operand.vmem [shape: bf16[128,128], index: 3, kind: input, shape index: {}]   ;;  %s3430_s4 = inlined_call_operand.vmem [shape: f32[1,128], index: 4, kind: input, shape index: {}]   ;;  %s3431_s5 = inlined_call_operand.vmem [shape: bf16[128,256], index: 5, kind: input, shape index: {}]   ;;  %s3432_s6 = inlined_call_operand.vmem [shape: f32[1,256], index: 6, kind: input, shape index: {}]   ;;  %s3433_s7 = inlined_call_operand.vmem [shape: bf16[256,128], index: 7, kind: input, shape index: {}]   ;;  %s3434_s8 = inlined_call_operand.vmem [shape: f32[1,128], index: 8, kind: input, shape index: {}]   ;;  %s3435_s9 = inlined_call_operand.hbm [shape: bf16[128,128], index: 9, kind: output, shape index: {}]  }
   0x1   :  { %v2573_v0 = vld [vmem:[%s3427_s1 + $0x40] sm:$0xff]   ;;  %v2577_v4 = vld [vmem:[%s3427_s1 + $0x48] sm:$0xff]   ;;  %v2581_v8 = vld [vmem:[%s3427_s1 + $0x50] sm:$0xff]  }
   0x2   :  { %v2574_v1 = vld [vmem:[%s3427_s1] sm:$0xff]   ;;  %2238 = vmatprep.subr.bf16.mxu0 %v2573_v0  ;;  %v2578_v5 = vld [vmem:[%s3427_s1 + $0x8] sm:$0xff]   ;;  %v2582_v9 = vld [vmem:[%s3427_s1 + $0x10] sm:$0xff]  }
   0x3   :  { %v2575_v2 = vld [vmem:[%s3427_s1 + $0xc0] sm:$0xff]   ;;  %2239 = vmatpush3.bf16.msra.mxu0 %v2574_v1  ;;  %v2579_v6 = vld [vmem:[%s3427_s1 + $0xc8] sm:$0xff]   ;;  %v2583_v10 = vld [vmem:[%s3427_s1 + $0xd0] sm:$0xff]  }
   0x4   :  { %v2576_v3 = vld [vmem:[%s3427_s1 + $0x80] sm:$0xff]   ;;  %2302 = vmatprep.subr.bf16.mxu1 %v2575_v2  ;;  %2240 = vmatprep.subr.bf16.mxu0 %v2577_v4  ;;  %v2580_v7 = vld [vmem:[%s3427_s1 + $0x88] sm:$0xff]   ;;  %v2584_v11 = vld [vmem:[%s3427_s1 + $0x90] sm:$0xff]  }
   0x5   :  { %2303 = vmatpush3.bf16.msra.mxu1 %v2576_v3  ;;  %v2585_v12 = vld [vmem:[%s3427_s1 + $0x58] sm:$0xff]   ;;  %v2589_v16 = vld [vmem:[%s3427_s1 + $0x60] sm:$0xff]   ;;  %v2593_v20 = vld [vmem:[%s3427_s1 + $0x68] sm:$0xff]  }
   0x6   :  { %2304 = vmatprep.subr.bf16.mxu1 %v2579_v6  ;;  %v2586_v13 = vld [vmem:[%s3427_s1 + $0x18] sm:$0xff]   ;;  %v2590_v17 = vld [vmem:[%s3427_s1 + $0x20] sm:$0xff]   ;;  %v2594_v21 = vld [vmem:[%s3427_s1 + $0x28] sm:$0xff]  }
   0x7   :  { %2241 = vmatpush3.bf16.msra.mxu0 %v2578_v5  ;;  %v2587_v14 = vld [vmem:[%s3427_s1 + $0xd8] sm:$0xff]   ;;  %v2591_v18 = vld [vmem:[%s3427_s1 + $0xe0] sm:$0xff]   ;;  %v2595_v22 = vld [vmem:[%s3427_s1 + $0xe8] sm:$0xff]  }
   0x8   :  { %2242 = vmatprep.subr.bf16.mxu0 %v2581_v8  ;;  %v2588_v15 = vld [vmem:[%s3427_s1 + $0x98] sm:$0xff]   ;;  %v2592_v19 = vld [vmem:[%s3427_s1 + $0xa0] sm:$0xff]   ;;  %v2596_v23 = vld [vmem:[%s3427_s1 + $0xa8] sm:$0xff]  }
   0x9   :  { %2305 = vmatpush3.bf16.msra.mxu1 %v2580_v7  ;;  %v2597_v24 = vld [vmem:[%s3427_s1 + $0x70] sm:$0xff]   ;;  %v2601_v28 = vld [vmem:[%s3427_s1 + $0x78] sm:$0xff]   ;;  %v2606_v32 = vld [vmem:[%s3426_s0 + $0x4] ss:$28 sps:$4 sm:$0xff]  }
   0xa   :  { %2306 = vmatprep.subr.bf16.mxu1 %v2583_v10  ;;  %v2598_v25 = vld [vmem:[%s3427_s1 + $0x30] sm:$0xff]   ;;  %v2602_v29 = vld [vmem:[%s3427_s1 + $0x38] sm:$0xff]   ;;  %834 = vmatprep.mubr.bf16.mxu0 %v2606_v32  ;;  %v2608_v34 = vld [vmem:[%s3427_s1 + $0x140] sm:$0xff]  }
   0xb   :  { %2243 = vmatpush3.bf16.msra.mxu0 %v2582_v9  ;;  %v2599_v26 = vld [vmem:[%s3427_s1 + $0xf0] sm:$0xff]   ;;  %v2603_v30 = vld [vmem:[%s3427_s1 + $0xf8] sm:$0xff]   ;;  %v2609_v35 = vld [vmem:[%s3426_s0 + $0x8] ss:$28 sps:$4 sm:$0xff]  }
   0xc   :  { %2244 = vmatprep.subr.bf16.mxu0 %v2585_v12  ;;  %v2600_v27 = vld [vmem:[%s3427_s1 + $0xb0] sm:$0xff]   ;;  %v2604_v31 = vld [vmem:[%s3426_s0] ss:$28 sps:$4 sm:$0xff]   ;;  %v2611_v36 = vld [vmem:[%s3426_s0 + $0xc] ss:$28 sps:$4 sm:$0xff]  }
   0xd   :  { %2307 = vmatpush3.bf16.msra.mxu1 %v2584_v11  ;;  %v2607_v33 = vld [vmem:[%s3427_s1 + $0xb8] sm:$0xff]   ;;  %v2612_v37 = vld [vmem:[%s3427_s1 + $0x100] sm:$0xff]   ;;  %931 = vmatprep.mubr.bf16.mxu1 %v2611_v36  ;;  %v2616_v40 = vld [vmem:[%s3427_s1 + $0x148] sm:$0xff]  }
   0xe   :  { %2308 = vmatprep.subr.bf16.mxu1 %v2587_v14  ;;  %v2613_v38 = vld [vmem:[%s3426_s0 + $0x3c] ss:$28 sps:$4 sm:$0xff]   ;;  %v2617_v41 = vld [vmem:[%s3426_s0 + $0x44] ss:$28 sps:$4 sm:$0xff]   ;;  %v2619_v42 = vld [vmem:[%s3427_s1 + $0x108] sm:$0xff]  }
   0xf   :  { %2245 = vmatpush3.bf16.msra.mxu0 %v2586_v13  ;;  %v2615_v39 = vld [vmem:[%s3426_s0 + $0x38] ss:$28 sps:$4 sm:$0xff]   ;;  %v2620_v43 = vld [vmem:[%s3426_s0 + $0x40] ss:$28 sps:$4 sm:$0xff]   ;;  %v2624_v49 = vld [vmem:[%s3426_s0 + $0x70] ss:$28 sps:$4 sm:$0xff]  }
  0x10   :  { %2246 = vmatprep.subr.bf16.mxu0 %v2589_v16  ;;  %v2621_v44 = vld [vmem:[%s3427_s1 + $0x180] sm:$0xff]   ;;  %v2622_v45 = vld [vmem:[%s3426_s0 + $0x74] ss:$28 sps:$4 sm:$0xff]   ;;  %v2626_v47 = vld [vmem:[%s3426_s0 + $0x7c] ss:$28 sps:$4 sm:$0xff]  }
  0x11   :  { %2309 = vmatpush3.bf16.msra.mxu1 %v2588_v15  ;;  %v2625_v46 = vld [vmem:[%s3427_s1 + $0x150] sm:$0xff]   ;;  %v2630_v50 = vld [vmem:[%s3426_s0 + $0xac] ss:$28 sps:$4 sm:$0xff]   ;;  %v2633_v51 = vld [vmem:[%s3427_s1 + $0x158] sm:$0xff]  }
  0x12   :  { %2310 = vmatprep.subr.bf16.mxu1 %v2591_v18  ;;  %v2628_v48 = vld [vmem:[%s3427_s1 + $0x110] sm:$0xff]   ;;  %v2636_v54 = vld [vmem:[%s3427_s1 + $0x118] sm:$0xff]   ;;  %v2641_v55 = vld [vmem:[%s3427_s1 + $0x160] sm:$0xff]  }
  0x13   :  { %2247 = vmatpush3.bf16.msra.mxu0 %v2590_v17  ;;  %v2629_v52 = vld [vmem:[%s3426_s0 + $0x78] ss:$28 sps:$4 sm:$0xff]   ;;  %v2632_v56 = vld [vmem:[%s3426_s0 + $0xa8] ss:$28 sps:$4 sm:$0xff]   ;;  %v2637_v59 = vld [vmem:[%s3426_s0 + $0xb0] ss:$28 sps:$4 sm:$0xff]  }
  0x14   :  { %2248 = vmatprep.subr.bf16.mxu0 %v2593_v20  ;;  %v2634_v53 = vld [vmem:[%s3426_s0 + $0xb4] ss:$28 sps:$4 sm:$0xff]   ;;  %v2644_v57 = vld [vmem:[%s3427_s1 + $0x120] sm:$0xff]   ;;  %v2649_v60 = vld [vmem:[%s3427_s1 + $0x168] sm:$0xff]  }
  0x15   :  { %2311 = vmatpush3.bf16.msra.mxu1 %v2592_v19  ;;  %v2638_v58 = vld [vmem:[%s3426_s0 + $0xe4] ss:$28 sps:$4 sm:$0xff]   ;;  %v2642_v61 = vld [vmem:[%s3426_s0 + $0xec] ss:$28 sps:$4 sm:$0xff]   ;;  %v2657_v0 = vld [vmem:[%s3427_s1 + $0x170] sm:$0xff]  }
  0x16   :  { %2312 = vmatprep.subr.bf16.mxu1 %v2595_v22  ;;  %v2652_v62 = vld [vmem:[%s3427_s1 + $0x128] sm:$0xff]   ;;  %v2640_v63 = vld [vmem:[%s3426_s0 + $0xe0] ss:$28 sps:$4 sm:$0xff]   ;;  %v2660_v2 = vld [vmem:[%s3427_s1 + $0x130] sm:$0xff]  }
  0x17   :  { %2249 = vmatpush3.bf16.msra.mxu0 %v2594_v21  ;;  %v2646_v1 = vld [vmem:[%s3426_s0 + $0x11c] ss:$28 sps:$4 sm:$0xff]   ;;  %v2645_v3 = vld [vmem:[%s3426_s0 + $0xe8] ss:$28 sps:$4 sm:$0xff]   ;;  %v2654_v8 = vld [vmem:[%s3426_s0 + $0x154] ss:$28 sps:$4 sm:$0xff]  }
  0x18   :  { %2250 = vmatprep.subr.bf16.mxu0 %v2597_v24  ;;  %v2650_v4 = vld [vmem:[%s3426_s0 + $0x124] ss:$28 sps:$4 sm:$0xff]   ;;  %v2665_v5 = vld [vmem:[%s3427_s1 + $0x178] sm:$0xff]   ;;  %v2656_v11 = vld [vmem:[%s3426_s0 + $0x150] ss:$28 sps:$4 sm:$0xff]  }
  0x19   :  { %2313 = vmatpush3.bf16.msra.mxu1 %v2596_v23  ;;  %v2668_v6 = vld [vmem:[%s3427_s1 + $0x138] sm:$0xff]   ;;  %v2662_v12 = vld [vmem:[%s3426_s0 + $0x18c] ss:$28 sps:$4 sm:$0xff]   ;;  %v2666_v14 = vld [vmem:[%s3426_s0 + $0x194] ss:$28 sps:$4 sm:$0xff]  }
  0x1a   :  { %2314 = vmatprep.subr.bf16.mxu1 %v2599_v26  ;;  %v2648_v7 = vld [vmem:[%s3426_s0 + $0x118] ss:$28 sps:$4 sm:$0xff]   ;;  %v2653_v9 = vld [vmem:[%s3426_s0 + $0x120] ss:$28 sps:$4 sm:$0xff]   ;;  %v2664_v15 = vld [vmem:[%s3426_s0 + $0x188] ss:$28 sps:$4 sm:$0xff]  }
  0x1b   :  { %2251 = vmatpush3.bf16.msra.mxu0 %v2598_v25  ;;  %v2658_v10 = vld [vmem:[%s3426_s0 + $0x15c] ss:$28 sps:$4 sm:$0xff]   ;;  %v2669_v16 = vld [vmem:[%s3426_s0 + $0x190] ss:$28 sps:$4 sm:$0xff]   ;;  %v2681_v22 = vld [vmem:[%s3426_s0 + $0x88] ss:$28 sps:$4 sm:$0xff]  }
  0x1c   :  { %2252 = vmatprep.subr.bf16.mxu0 %v2601_v28  ;;  %v2661_v13 = vld [vmem:[%s3426_s0 + $0x158] ss:$28 sps:$4 sm:$0xff]   ;;  %v2670_v19 = vld [vmem:[%s3426_s0 + $0x10] ss:$28 sps:$4 sm:$0xff]   ;;  %v2677_v23 = vld [vmem:[%s3426_s0 + $0x48] ss:$28 sps:$4 sm:$0xff]  }
  0x1d   :  { %2315 = vmatpush3.bf16.msra.mxu1 %v2600_v27  ;;  %v2672_v17 = vld [vmem:[%s3426_s0 + $0x14] ss:$28 sps:$4 sm:$0xff]   ;;  %v2675_v20 = vld [vmem:[%s3426_s0 + $0x4c] ss:$28 sps:$4 sm:$0xff]   ;;  %v2678_v24 = vld [vmem:[%s3426_s0 + $0x84] ss:$28 sps:$4 sm:$0xff]  }
  0x1e   :  { %2316 = vmatprep.subr.bf16.mxu1 %v2603_v30  ;;  %v2673_v18 = vld [vmem:[%s3426_s0 + $0x18] ss:$28 sps:$4 sm:$0xff]   ;;  %v2674_v21 = vld [vmem:[%s3426_s0 + $0x50] ss:$28 sps:$4 sm:$0xff]   ;;  %v2682_v25 = vld [vmem:[%s3426_s0 + $0xc0] ss:$28 sps:$4 sm:$0xff]  }
  0x1f   :  { %2253 = vmatpush3.bf16.msra.mxu0 %v2602_v29  ;;  %v2689_v26 = vld [vmem:[%s3426_s0 + $0xf8] ss:$28 sps:$4 sm:$0xff]  }
  0x20   :  { %2366 = vmatprep.subr.bf16.mxu0 %v2608_v34 }
  0x21   :  { %2317 = vmatpush3.bf16.msra.mxu1 %v2607_v33 }
  0x22   :  { %835 = vmatmul.mubr.bf16.vlgmr.msra.gmra.mrb[0].mxu0 %v2604_v31  ;;  %2519 = vmatprep.subr.bf16.mxu1 %v2621_v44 }
  0x23   :  { %2367 = vmatpush3.bf16.msra.mxu0 %v2612_v37  ;;  %842 = vmatprep.mubr.bf16.mxu0 %v2613_v38 }
  0x24   :  { %932 = vmatmul.mubr.bf16.vlgmr.msra.gmra.mrb[0].mxu1 %v2609_v35  ;;  %2368 = vmatprep.subr.bf16.mxu0 %v2616_v40 }
  0x25   :  { %939 = vmatprep.mubr.bf16.mxu1 %v2617_v41  ;;  %2520 = vmatpush3.bf16.msra.mxu1 %v2621_v44 }
  0x27   :  { %2369 = vmatpush3.bf16.msra.mxu0 %v2619_v42 }
  0x28   :  { %2370 = vmatprep.subr.bf16.mxu0 %v2625_v46 }
  0x2a   :  { %843 = vmatmul.mubr.bf16.gmra.mrb[4].mxu0 %v2615_v39 }
  0x2b   :  { %850 = vmatprep.mubr.bf16.mxu0 %v2622_v45  ;;  %2371 = vmatpush3.bf16.msra.mxu0 %v2628_v48 }
  0x2c   :  { %940 = vmatmul.mubr.bf16.gmra.mrb[4].mxu1 %v2620_v43  ;;  %2372 = vmatprep.subr.bf16.mxu0 %v2633_v51 }
  0x2d   :  { %947 = vmatprep.mubr.bf16.mxu1 %v2626_v47 }
  0x2f   :  { %2373 = vmatpush3.bf16.msra.mxu0 %v2636_v54 }
  0x30   :  { %2374 = vmatprep.subr.bf16.mxu0 %v2641_v55 }
  0x32   :  { %851 = vmatmul.mubr.bf16.gmra.mrb[8].mxu0 %v2624_v49 }
  0x33   :  { %858 = vmatprep.mubr.bf16.mxu0 %v2630_v50  ;;  %2375 = vmatpush3.bf16.msra.mxu0 %v2644_v57 }
  0x34   :  { %948 = vmatmul.mubr.bf16.gmra.mrb[8].mxu1 %v2629_v52  ;;  %2376 = vmatprep.subr.bf16.mxu0 %v2649_v60 }
  0x35   :  { %955 = vmatprep.mubr.bf16.mxu1 %v2634_v53 }
  0x37   :  { %2377 = vmatpush3.bf16.msra.mxu0 %v2652_v62 }
  0x38   :  { %2378 = vmatprep.subr.bf16.mxu0 %v2657_v0 }
  0x3a   :  { %859 = vmatmul.mubr.bf16.gmra.mrb[12].mxu0 %v2632_v56 }
  0x3b   :  { %866 = vmatprep.mubr.bf16.mxu0 %v2638_v58  ;;  %2379 = vmatpush3.bf16.msra.mxu0 %v2660_v2 }
  0x3c   :  { %956 = vmatmul.mubr.bf16.gmra.mrb[12].mxu1 %v2637_v59  ;;  %2380 = vmatprep.subr.bf16.mxu0 %v2665_v5 }
  0x3d   :  { %963 = vmatprep.mubr.bf16.mxu1 %v2642_v61 }
  0x3f   :  { %2381 = vmatpush3.bf16.msra.mxu0 %v2668_v6 }
  0x42   :  { %867 = vmatmul.mubr.bf16.gmra.mrb[16].mxu0 %v2640_v63 }
  0x43   :  { %874 = vmatprep.mubr.bf16.mxu0 %v2646_v1 }
  0x44   :  { %964 = vmatmul.mubr.bf16.gmra.mrb[16].mxu1 %v2645_v3 }
  0x45   :  { %971 = vmatprep.mubr.bf16.mxu1 %v2650_v4 }
  0x4a   :  { %875 = vmatmul.mubr.bf16.gmra.mrb[20].mxu0 %v2648_v7 }
  0x4b   :  { %882 = vmatprep.mubr.bf16.mxu0 %v2654_v8 }
  0x4c   :  { %972 = vmatmul.mubr.bf16.gmra.mrb[20].mxu1 %v2653_v9 }
  0x4d   :  { %979 = vmatprep.mubr.bf16.mxu1 %v2658_v10 }
  0x52   :  { %883 = vmatmul.mubr.bf16.gmra.mrb[24].mxu0 %v2656_v11 }
  0x53   :  { %890 = vmatprep.mubr.bf16.mxu0 %v2662_v12 }
  0x54   :  { %980 = vmatmul.mubr.bf16.gmra.mrb[24].mxu1 %v2661_v13 }
  0x55   :  { %987 = vmatprep.mubr.bf16.mxu1 %v2666_v14 }
  0x5a   :  { %891 = vmatmul.mubr.bf16.gmra.mrb[28].mxu0 %v2664_v15 }
  0x5b   :  { %1028 = vmatprep.mubr.bf16.mxu0 %v2672_v17 }
  0x5c   :  { %988 = vmatmul.mubr.bf16.gmra.mrb[28].mxu1 %v2669_v16 }
  0x5d   :  { %2521 = vmatprep.mubr.msk.bf16.mxu1 %vm777_vm0, %v2673_v18 }
  0x62   :  { %1029 = vmatmul.mubr.bf16.vlgmr.msra.gmra.mrb[32].mxu0 %v2670_v19 }
  0x63   :  { %1036 = vmatprep.mubr.bf16.mxu0 %v2675_v20 }
  0x64   :  { %2522 = vmatmul.mubr.msk.bf16.vlgmr.msra.gmra.mrb[32].mxu1 %vm777_vm0, %v2674_v21 }
  0x65   :  { %2525 = vmatprep.mubr.msk.bf16.mxu1 %vm777_vm0, %v2681_v22 }
  0x6a   :  { %1037 = vmatmul.mubr.bf16.gmra.mrb[36].mxu0 %v2677_v23 }
  0x6b   :  { %1044 = vmatprep.mubr.bf16.mxu0 %v2678_v24 }
  0x6c   :  { %2526 = vmatmul.mubr.msk.bf16.gmra.mrb[36].mxu1 %vm777_vm0, %v2682_v25 }
  0x6d   :  { %14 = vsyncpa [#allocation3], 0  ;;  %v2680_v27 = vld [vmem:[%s3426_s0 + $0x80] ss:$28 sps:$4 sm:$0xff]   ;;  %2529 = vmatprep.mubr.msk.bf16.mxu1 %vm777_vm0, %v2689_v26  ;;  %v2690_v29 = vld [vmem:[%s3426_s0 + $0x130] ss:$28 sps:$4 sm:$0xff]  }
  0x6e   :  { %v2683_v28 = vld [vmem:[%s3426_s0 + $0xbc] ss:$28 sps:$4 sm:$0xff]   ;;  %v2697_v30 = vld [vmem:[%s3426_s0 + $0x168] ss:$28 sps:$4 sm:$0xff]   ;;  %v2686_v32 = vld [vmem:[%s3426_s0 + $0xf4] ss:$28 sps:$4 sm:$0xff]  }
  0x6f   :  { %v2685_v31 = vld [vmem:[%s3426_s0 + $0xb8] ss:$28 sps:$4 sm:$0xff]   ;;  %v2698_v33 = vld [vmem:[%s3426_s0 + $0x1a0] ss:$28 sps:$4 sm:$0xff]   ;;  %v2688_v34 = vld [vmem:[%s3426_s0 + $0xf0] ss:$28 sps:$4 sm:$0xff]  }
  0x70   :  { %v2691_v35 = vld [vmem:[%s3426_s0 + $0x12c] ss:$28 sps:$4 sm:$0xff]   ;;  %v2694_v37 = vld [vmem:[%s3426_s0 + $0x164] ss:$28 sps:$4 sm:$0xff]   ;;  %v2699_v39 = vld [vmem:[%s3426_s0 + $0x19c] ss:$28 sps:$4 sm:$0xff]  }
  0x71   :  { %v2693_v36 = vld [vmem:[%s3426_s0 + $0x128] ss:$28 sps:$4 sm:$0xff]   ;;  %v2696_v38 = vld [vmem:[%s3426_s0 + $0x160] ss:$28 sps:$4 sm:$0xff]   ;;  %v2701_v40 = vld [vmem:[%s3426_s0 + $0x198] ss:$28 sps:$4 sm:$0xff]  }
  0x72   :  { %1045 = vmatmul.mubr.bf16.gmra.mrb[40].mxu0 %v2680_v27  ;;  %v2702_v41 = vld [vmem:[%s3429_s3] sm:$0xff]   ;;  %v2703_v42 = vld [vmem:[%s3429_s3 + $0x8] sm:$0xff]   ;;  %v2704_v43 = vld [vmem:[%s3429_s3 + $0x10] sm:$0xff]  }
  0x73   :  { %1052 = vmatprep.mubr.bf16.mxu0 %v2683_v28  ;;  %2537 = vmatprep.subr.bf16.mxu1 %v2702_v41  ;;  %v2705_v44 = vld [vmem:[%s3429_s3 + $0x18] sm:$0xff]   ;;  %v2706_v45 = vld [vmem:[%s3429_s3 + $0x20] sm:$0xff]   ;;  %v2707_v46 = vld [vmem:[%s3429_s3 + $0x28] sm:$0xff]  }
  0x74   :  { %2530 = vmatmul.mubr.msk.bf16.gmra.mrb[40].mxu1 %vm777_vm0, %v2690_v29  ;;  %v2708_v47 = vld [vmem:[%s3429_s3 + $0x30] sm:$0xff]   ;;  %v2709_v48 = vld [vmem:[%s3429_s3 + $0x38] sm:$0xff]   ;;  %v3178_v50 = vld [vmem:[%s3428_s2] ss:$0 sm:$0xff] }
  0x75   :  { %2533 = vmatprep.mubr.msk.bf16.mxu1 %vm777_vm0, %v2697_v30  ;;  %2538 = vmatpush3.bf16.msra.mxu1 %v2702_v41  ;;  %v2710_v63 = vld [vmem:[%s3431_s5] ss:$8 sps:$4 sm:$0xff]   ;;  %v2712_v0 = vld [vmem:[%s3431_s5 + $0x4] ss:$8 sps:$4 sm:$0xff]   ;;  %v2715_v3 = vld [vmem:[%s3431_s5 + $0x14] ss:$8 sps:$4 sm:$0xff]  }
  0x76   :  { %2539 = vmatprep.subr.bf16.mxu1 %v2703_v42  ;;  %1514 = vmatprep.subr.bf16.mxu0 %v2712_v0  ;;  %v2713_v7 = vld [vmem:[%s3431_s5 + $0x10] ss:$8 sps:$4 sm:$0xff]   ;;  %v2718_v10 = vld [vmem:[%s3431_s5 + $0x24] ss:$8 sps:$4 sm:$0xff]   ;;  %v2716_v18 = vld [vmem:[%s3431_s5 + $0x20] ss:$8 sps:$4 sm:$0xff]  }
  0x77   :  { %1515 = vmatpush1.bf16.msra.mxu0 %v2710_v63  ;;  %v2721_v21 = vld [vmem:[%s3431_s5 + $0x34] ss:$8 sps:$4 sm:$0xff]   ;;  %v2719_v27 = vld [vmem:[%s3431_s5 + $0x30] ss:$8 sps:$4 sm:$0xff]   ;;  %v2724_v30 = vld [vmem:[%s3431_s5 + $0x44] ss:$8 sps:$4 sm:$0xff]  }
  0x78   :  { %1516 = vmatprep.subr.bf16.mxu0 %v2715_v3  ;;  %v2727_v41 = vld [vmem:[%s3431_s5 + $0x54] ss:$8 sps:$4 sm:$0xff]  }
  0x79   :  { %2540 = vmatpush3.bf16.msra.mxu1 %v2703_v42 }
  0x7a   :  { %1053 = vmatmul.mubr.bf16.gmra.mrb[44].mxu0 %v2685_v31  ;;  %2541 = vmatprep.subr.bf16.mxu1 %v2704_v43 }
  0x7b   :  { %1060 = vmatprep.mubr.bf16.mxu0 %v2686_v32  ;;  %1517 = vmatpush1.bf16.msra.mxu0 %v2713_v7 }
  0x7c   :  { %2534 = vmatmul.mubr.msk.bf16.gmra.mrb[44].mxu1 %vm777_vm0, %v2698_v33  ;;  %1518 = vmatprep.subr.bf16.mxu0 %v2718_v10 }
  0x7d   :  { %2542 = vmatpush3.bf16.msra.mxu1 %v2704_v43 }
  0x7e   :  { %2543 = vmatprep.subr.bf16.mxu1 %v2705_v44 }
  0x7f   :  { %1519 = vmatpush1.bf16.msra.mxu0 %v2716_v18 }
  0x80   :  { %1520 = vmatprep.subr.bf16.mxu0 %v2721_v21 }
  0x81   :  { %2544 = vmatpush3.bf16.msra.mxu1 %v2705_v44 }
  0x82   :  { %1061 = vmatmul.mubr.bf16.gmra.mrb[48].mxu0 %v2688_v34  ;;  %2545 = vmatprep.subr.bf16.mxu1 %v2706_v45 }
  0x83   :  { %1068 = vmatprep.mubr.bf16.mxu0 %v2691_v35  ;;  %1521 = vmatpush1.bf16.msra.mxu0 %v2719_v27 }
  0x84   :  { %1522 = vmatprep.subr.bf16.mxu0 %v2724_v30 }
  0x85   :  { %2546 = vmatpush3.bf16.msra.mxu1 %v2706_v45 }
  0x86   :  { %2547 = vmatprep.subr.bf16.mxu1 %v2707_v46 }
  0x89   :  { %2548 = vmatpush3.bf16.msra.mxu1 %v2707_v46 }
  0x8a   :  { %1069 = vmatmul.mubr.bf16.gmra.mrb[52].mxu0 %v2693_v36  ;;  %2549 = vmatprep.subr.bf16.mxu1 %v2708_v47 }
  0x8b   :  { %1076 = vmatprep.mubr.bf16.mxu0 %v2694_v37 }
  0x8d   :  { %2550 = vmatpush3.bf16.msra.mxu1 %v2708_v47  ;;  %v2725_v47 = vld [vmem:[%s3431_s5 + $0x50] ss:$8 sps:$4 sm:$0xff]  }
  0x8e   :  { %2551 = vmatprep.subr.bf16.mxu1 %v2709_v48 }
  0x91   :  { %2552 = vmatpush3.bf16.msra.mxu1 %v2709_v48 }
  0x92   :  { %1077 = vmatmul.mubr.bf16.gmra.mrb[56].mxu0 %v2696_v38  ;;  %v2722_v38 = vld [vmem:[%s3431_s5 + $0x40] ss:$8 sps:$4 sm:$0xff]  }
  0x93   :  { %1084 = vmatprep.mubr.bf16.mxu0 %v2699_v39  ;;  %1523 = vmatpush1.bf16.msra.mxu0 %v2722_v38 }
  0x94   :  { %1524 = vmatprep.subr.bf16.mxu0 %v2727_v41 }
  0x97   :  { %1525 = vmatpush1.bf16.msra.mxu0 %v2725_v47 }
  0x9a   :  { %1085 = vmatmul.mubr.bf16.gmra.mrb[60].mxu0 %v2701_v40 }
  0xf5   :  { %v2254_v49 = vpop.f32.mrb[0].mxu0 }
  0xf6   :  { %v2255_v51 = vpop.f32.mrb[1].mxu0 }
  0xf7   :  { %v2256_v52 = vadd.f32 %v2255_v51, %v2254_v49  ;;  %v2257_v53 = vpop.f32.mrb[2].mxu0  ;;  %v2318_v54 = vpop.f32.mrb[0].mxu1  ;;  %v2730_v51 = vld [vmem:[%s3431_s5 + $0x64] ss:$8 sps:$4 sm:$0xff]  }
  0xf8   :  { %v2258_v55 = vpop.f32.mrb[3].mxu0  ;;  %v2319_v58 = vpop.f32.mrb[1].mxu1  ;;  %1526 = vmatprep.subr.bf16.mxu0 %v2730_v51 }
  0xf9   :  { %v837_v56 = vadd.f32 %v2256_v52, %v3178_v50  ;;  %v2259_v57 = vadd.f32 %v2258_v55, %v2257_v53  ;;  %v2320_v59 = vadd.f32 %v2319_v58, %v2318_v54  ;;  %v2321_v60 = vpop.f32.mrb[2].mxu1 }
  0xfa   :  { %v2322_v62 = vpop.f32.mrb[3].mxu1 }
  0xfb   :  { %v840_v61 = vadd.f32 %v2259_v57, %v3178_v50  ;;  %v3188_v1 = vadd.f32 %v2320_v59, %v837_v56  ;;  %v2323_v2 = vadd.f32 %v2322_v62, %v2321_v60  ;;  %v2728_v59 = vld [vmem:[%s3431_s5 + $0x60] ss:$8 sps:$4 sm:$0xff]  }
  0xfc   :  { %1527 = vmatpush1.bf16.msra.mxu0 %v2728_v59 }
  0xfd   :  { %v2260_v4 = vpop.f32.mrb[4].mxu0  ;;  %v3193_v5 = vadd.f32 %v2323_v2, %v840_v61 }
  0xfe   :  { %v2261_v6 = vpop.f32.mrb[5].mxu0 }
  0xff   :  { %v2262_v8 = vadd.f32 %v2261_v6, %v2260_v4  ;;  %v2263_v9 = vpop.f32.mrb[6].mxu0  ;;  %v2324_v11 = vpop.f32.mrb[4].mxu1 }
 0x100   :  { %v2264_v12 = vpop.f32.mrb[7].mxu0  ;;  %v2325_v15 = vpop.f32.mrb[5].mxu1 }
 0x101   :  { %v845_v13 = vadd.f32 %v2262_v8, %v3178_v50  ;;  %v2265_v14 = vadd.f32 %v2264_v12, %v2263_v9  ;;  %v2326_v16 = vadd.f32 %v2325_v15, %v2324_v11  ;;  %v2327_v17 = vpop.f32.mrb[6].mxu1 }
 0x102   :  { %v2328_v20 = vpop.f32.mrb[7].mxu1 }
 0x103   :  { %v848_v19 = vadd.f32 %v2265_v14, %v3178_v50  ;;  %v3209_v22 = vadd.f32 %v2326_v16, %v845_v13  ;;  %v2329_v23 = vadd.f32 %v2328_v20, %v2327_v17 }
 0x105   :  { %v2266_v24 = vpop.f32.mrb[8].mxu0  ;;  %v3211_v25 = vadd.f32 %v2329_v23, %v848_v19 }
 0x106   :  { %v2267_v26 = vpop.f32.mrb[9].mxu0 }
 0x107   :  { %v2268_v28 = vadd.f32 %v2267_v26, %v2266_v24  ;;  %v2269_v29 = vpop.f32.mrb[10].mxu0  ;;  %v2330_v31 = vpop.f32.mrb[8].mxu1 }
 0x108   :  { %v2270_v32 = vpop.f32.mrb[11].mxu0  ;;  %v2331_v35 = vpop.f32.mrb[9].mxu1 }
 0x109   :  { %v853_v33 = vadd.f32 %v2268_v28, %v3178_v50  ;;  %v2271_v34 = vadd.f32 %v2270_v32, %v2269_v29  ;;  %v2332_v36 = vadd.f32 %v2331_v35, %v2330_v31  ;;  %v2333_v37 = vpop.f32.mrb[10].mxu1 }
 0x10a   :  { %v2334_v40 = vpop.f32.mrb[11].mxu1 }
 0x10b   :  { %v856_v39 = vadd.f32 %v2271_v34, %v3178_v50  ;;  %v3227_v42 = vadd.f32 %v2332_v36, %v853_v33  ;;  %v2335_v43 = vadd.f32 %v2334_v40, %v2333_v37 }
 0x10d   :  { %v2272_v44 = vpop.f32.mrb[12].mxu0  ;;  %v3229_v45 = vadd.f32 %v2335_v43, %v856_v39 }
 0x10e   :  { %v2273_v46 = vpop.f32.mrb[13].mxu0 }
 0x10f   :  { %v2274_v48 = vadd.f32 %v2273_v46, %v2272_v44  ;;  %v2275_v49 = vpop.f32.mrb[14].mxu0  ;;  %v2336_v52 = vpop.f32.mrb[12].mxu1 }
 0x110   :  { %v2276_v53 = vpop.f32.mrb[15].mxu0  ;;  %v2337_v56 = vpop.f32.mrb[13].mxu1 }
 0x111   :  { %v861_v54 = vadd.f32 %v2274_v48, %v3178_v50  ;;  %v2277_v55 = vadd.f32 %v2276_v53, %v2275_v49  ;;  %v2338_v57 = vadd.f32 %v2337_v56, %v2336_v52  ;;  %v2339_v58 = vpop.f32.mrb[14].mxu1 }
 0x112   :  { %v2340_v61 = vpop.f32.mrb[15].mxu1 }
 0x113   :  { %v864_v60 = vadd.f32 %v2277_v55, %v3178_v50  ;;  %v3242_v62 = vadd.f32 %v2338_v57, %v861_v54  ;;  %v2341_v63 = vadd.f32 %v2340_v61, %v2339_v58 }
 0x115   :  { %v2278_v0 = vpop.f32.mrb[16].mxu0  ;;  %v3244_v2 = vadd.f32 %v2341_v63, %v864_v60 }
 0x116   :  { %v2279_v3 = vpop.f32.mrb[17].mxu0 }
 0x117   :  { %v2280_v4 = vadd.f32 %v2279_v3, %v2278_v0  ;;  %v2281_v6 = vpop.f32.mrb[18].mxu0  ;;  %v2342_v7 = vpop.f32.mrb[16].mxu1 }
 0x118   :  { %v2282_v8 = vpop.f32.mrb[19].mxu0  ;;  %v2343_v11 = vpop.f32.mrb[17].mxu1 }
 0x119   :  { %v869_v9 = vadd.f32 %v2280_v4, %v3178_v50  ;;  %v2283_v10 = vadd.f32 %v2282_v8, %v2281_v6  ;;  %v2344_v12 = vadd.f32 %v2343_v11, %v2342_v7  ;;  %v2345_v13 = vpop.f32.mrb[18].mxu1 }
 0x11a   :  { %v2346_v15 = vpop.f32.mrb[19].mxu1 }
 0x11b   :  { %v872_v14 = vadd.f32 %v2283_v10, %v3178_v50  ;;  %v3248_v16 = vadd.f32 %v2344_v12, %v869_v9  ;;  %v2347_v17 = vadd.f32 %v2346_v15, %v2345_v13 }
 0x11d   :  { %v2284_v18 = vpop.f32.mrb[20].mxu0  ;;  %v3250_v19 = vadd.f32 %v2347_v17, %v872_v14 }
 0x11e   :  { %v2285_v20 = vpop.f32.mrb[21].mxu0 }
 0x11f   :  { %v2286_v21 = vadd.f32 %v2285_v20, %v2284_v18  ;;  %v2287_v23 = vpop.f32.mrb[22].mxu0  ;;  %v2348_v24 = vpop.f32.mrb[20].mxu1 }
 0x120   :  { %v2288_v26 = vpop.f32.mrb[23].mxu0  ;;  %v2349_v29 = vpop.f32.mrb[21].mxu1 }
 0x121   :  { %v877_v27 = vadd.f32 %v2286_v21, %v3178_v50  ;;  %v2289_v28 = vadd.f32 %v2288_v26, %v2287_v23  ;;  %v2350_v30 = vadd.f32 %v2349_v29, %v2348_v24  ;;  %v2351_v31 = vpop.f32.mrb[22].mxu1 }
 0x122   :  { %v2352_v33 = vpop.f32.mrb[23].mxu1 }
 0x123   :  { %v880_v32 = vadd.f32 %v2289_v28, %v3178_v50  ;;  %v3254_v34 = vadd.f32 %v2350_v30, %v877_v27  ;;  %v2353_v35 = vadd.f32 %v2352_v33, %v2351_v31 }
 0x125   :  { %v2290_v36 = vpop.f32.mrb[24].mxu0  ;;  %v3256_v37 = vadd.f32 %v2353_v35, %v880_v32 }
 0x126   :  { %v2291_v38 = vpop.f32.mrb[25].mxu0 }
 0x127   :  { %v2292_v39 = vadd.f32 %v2291_v38, %v2290_v36  ;;  %v2293_v40 = vpop.f32.mrb[26].mxu0  ;;  %v2354_v41 = vpop.f32.mrb[24].mxu1 }
 0x128   :  { %v2294_v43 = vpop.f32.mrb[27].mxu0  ;;  %v2355_v47 = vpop.f32.mrb[25].mxu1 }
 0x129   :  { %v885_v44 = vadd.f32 %v2292_v39, %v3178_v50  ;;  %v2295_v46 = vadd.f32 %v2294_v43, %v2293_v40  ;;  %v2356_v48 = vadd.f32 %v2355_v47, %v2354_v41  ;;  %v2357_v49 = vpop.f32.mrb[26].mxu1 }
 0x12a   :  { %v2358_v52 = vpop.f32.mrb[27].mxu1 }
 0x12b   :  { %v888_v51 = vadd.f32 %v2295_v46, %v3178_v50  ;;  %v3260_v53 = vadd.f32 %v2356_v48, %v885_v44  ;;  %v2359_v54 = vadd.f32 %v2358_v52, %v2357_v49 }
 0x12d   :  { %v2296_v55 = vpop.f32.mrb[28].mxu0  ;;  %v3262_v56 = vadd.f32 %v2359_v54, %v888_v51 }
 0x12e   :  { %v2297_v57 = vpop.f32.mrb[29].mxu0 }
 0x12f   :  { %v2298_v58 = vadd.f32 %v2297_v57, %v2296_v55  ;;  %v2299_v59 = vpop.f32.mrb[30].mxu0  ;;  %v2360_v60 = vpop.f32.mrb[28].mxu1 }
 0x130   :  { %v2300_v61 = vpop.f32.mrb[31].mxu0  ;;  %v2361_v3 = vpop.f32.mrb[29].mxu1 }
 0x131   :  { %v893_v63 = vadd.f32 %v2298_v58, %v3178_v50  ;;  %v2301_v0 = vadd.f32 %v2300_v61, %v2299_v59  ;;  %v2362_v4 = vadd.f32 %v2361_v3, %v2360_v60  ;;  %v2363_v6 = vpop.f32.mrb[30].mxu1 }
 0x132   :  { %v2364_v8 = vpop.f32.mrb[31].mxu1 }
 0x133   :  { %v896_v7 = vadd.f32 %v2301_v0, %v3178_v50  ;;  %v3266_v9 = vadd.f32 %v2362_v4, %v893_v63  ;;  %v2365_v10 = vadd.f32 %v2364_v8, %v2363_v6 }
 0x135   :  { %v2382_v11 = vpop.f32.mrb[32].mxu0  ;;  %v3268_v12 = vadd.f32 %v2365_v10, %v896_v7 }
 0x136   :  { %v2383_v13 = vpop.f32.mrb[33].mxu0 }
 0x137   :  { %v2384_v14 = vadd.f32 %v2383_v13, %v2382_v11  ;;  %v2385_v15 = vpop.f32.mrb[34].mxu0  ;;  %v2523_v18 = vpop.f32.mrb[32].mxu1 }
 0x138   :  { %v2386_v17 = vpop.f32.mrb[35].mxu0  ;;  %v1127_v23 = vpop.f32.mrb[33].mxu1 }
 0x139   :  { %v2387_v20 = vadd.f32 %v2386_v17, %v2385_v15  ;;  %v1031_v21 = vadd.f32 %v2384_v14, %v3188_v1  ;;  %v2524_v24 = vpop.f32.mrb[34].mxu1 }
 0x13a   :  { %v1130_v27 = vpop.f32.mrb[35].mxu1 }
 0x13b   :  { %v1128_v26 = vadd.f32 %v1127_v23, %v1031_v21  ;;  %v1034_v50 = vadd.f32 %v2387_v20, %v3193_v5 }
 0x13d   :  { %v1131_v28 = vadd.f32 %v1130_v27, %v1034_v50  ;;  %v2388_v29 = vpop.f32.mrb[36].mxu0  ;;  %v1190_v31 = vmax.f32 %v1128_v26, 0.0 }
 0x13e   :  { %v2389_v30 = vpop.f32.mrb[37].mxu0 }
 0x13f   :  { %v1191_v32 = vmax.f32 %v1131_v28, 0.0  ;;  %v2390_v33 = vadd.f32 %v2389_v30, %v2388_v29  ;;  %v2391_v35 = vpop.f32.mrb[38].mxu0  ;;  %v2527_v38 = vpop.f32.mrb[36].mxu1 }
 0x140   :  { %v2392_v36 = vpop.f32.mrb[39].mxu0  ;;  %v1143_v1 = vpop.f32.mrb[37].mxu1 }
 0x141   :  { %v1206_v39 = vpack.c.bf16 %v1191_v32, %v1190_v31  ;;  %v1039_v40 = vadd.f32 %v2390_v33, %v3209_v22  ;;  %v2393_v41 = vadd.f32 %v2392_v36, %v2391_v35  ;;  %v2528_v43 = vpop.f32.mrb[38].mxu1 }
 0x142   :  { %v1146_v5 = vpop.f32.mrb[39].mxu1 }
 0x143   :  { %v1136_v44 = vadd.f32 %v2523_v18, %v1039_v40  ;;  %v1042_v46 = vadd.f32 %v2393_v41, %v3211_v25  ;;  %2553 = vmatprep.mubr.bf16.mxu1 %v1206_v39 }
 0x145   :  { %v1139_v47 = vadd.f32 %v2524_v24, %v1042_v46  ;;  %v2394_v48 = vpop.f32.mrb[40].mxu0  ;;  %v1192_v51 = vmax.f32 %v1136_v44, 0.0 }
 0x146   :  { %v2395_v49 = vpop.f32.mrb[41].mxu0 }
 0x147   :  { %v1193_v52 = vmax.f32 %v1139_v47, 0.0  ;;  %v2396_v54 = vadd.f32 %v2395_v49, %v2394_v48  ;;  %v2397_v55 = vpop.f32.mrb[42].mxu0  ;;  %v2531_v58 = vpop.f32.mrb[40].mxu1 }
 0x148   :  { %v2398_v57 = vpop.f32.mrb[43].mxu0  ;;  %v1159_v61 = vpop.f32.mrb[41].mxu1 }
 0x149   :  { %v1207_v59 = vpack.c.bf16 %v1193_v52, %v1192_v51  ;;  %v2399_v60 = vadd.f32 %v2398_v57, %v2397_v55  ;;  %v1047_v22 = vadd.f32 %v2396_v54, %v3227_v42  ;;  %v2532_v63 = vpop.f32.mrb[42].mxu1 }
 0x14a   :  { %v1162_v3 = vpop.f32.mrb[43].mxu1 }
 0x14b   :  { %v1144_v0 = vadd.f32 %v1143_v1, %v1047_v22  ;;  %2554 = vmatmul.mubr.bf16.vlgmr.msra.gmra.mrb[48].mxu1 %v1207_v59  ;;  %v1050_v25 = vadd.f32 %v2399_v60, %v3229_v45 }
 0x14d   :  { %v1147_v4 = vadd.f32 %v1146_v5, %v1050_v25  ;;  %v2400_v6 = vpop.f32.mrb[44].mxu0  ;;  %v1194_v8 = vmax.f32 %v1144_v0, 0.0 }
 0x14e   :  { %v2401_v7 = vpop.f32.mrb[45].mxu0 }
 0x14f   :  { %v1195_v10 = vmax.f32 %v1147_v4, 0.0  ;;  %v2402_v11 = vadd.f32 %v2401_v7, %v2400_v6  ;;  %v2403_v13 = vpop.f32.mrb[46].mxu0  ;;  %v3276_v15 = vpop.f32.mrb[44].mxu1 }
 0x150   :  { %v2404_v14 = vpop.f32.mrb[47].mxu0  ;;  %v1175_v20 = vpop.f32.mrb[45].mxu1 }
 0x151   :  { %v1208_v17 = vpack.c.bf16 %v1195_v10, %v1194_v8  ;;  %v1055_v42 = vadd.f32 %v2402_v11, %v3242_v62  ;;  %v2405_v18 = vadd.f32 %v2404_v14, %v2403_v13  ;;  %v2536_v21 = vpop.f32.mrb[46].mxu1 }
 0x152   :  { %v1178_v24 = vpop.f32.mrb[47].mxu1 }
 0x153   :  { %v1152_v23 = vadd.f32 %v2527_v38, %v1055_v42  ;;  %v1058_v45 = vadd.f32 %v2405_v18, %v3244_v2  ;;  %2557 = vmatprep.mubr.bf16.mxu1 %v1208_v17 }
 0x155   :  { %v1155_v26 = vadd.f32 %v2528_v43, %v1058_v45  ;;  %v2406_v50 = vpop.f32.mrb[48].mxu0  ;;  %v1196_v28 = vmax.f32 %v1152_v23, 0.0  ;;  %v2731_v23 = vld [vmem:[%s3431_s5 + $0x70] ss:$8 sps:$4 sm:$0xff]   ;;  %v2737_v45 = vld [vmem:[%s3433_s7 + $0x8] sm:$0xff]  }
 0x156   :  { %v2407_v27 = vpop.f32.mrb[49].mxu0 }
 0x157   :  { %v1197_v29 = vmax.f32 %v1155_v26, 0.0  ;;  %v2408_v30 = vadd.f32 %v2407_v27, %v2406_v50  ;;  %v2409_v31 = vpop.f32.mrb[50].mxu0  ;;  %v2739_v26 = vld [vmem:[%s3433_s7 + $0x10] sm:$0xff]   ;;  %v2740_v50 = vld [vmem:[%s3433_s7 + $0x58] sm:$0xff]  }
 0x158   :  { %v2410_v32 = vpop.f32.mrb[51].mxu0  ;;  %v2741_v27 = vld [vmem:[%s3433_s7 + $0x18] sm:$0xff]  }
 0x159   :  { %v2411_v33 = vadd.f32 %v2410_v32, %v2409_v31  ;;  %v1063_v35 = vadd.f32 %v2408_v30, %v3248_v16  ;;  %v1209_v62 = vpack.c.bf16 %v1197_v29, %v1196_v28  ;;  %v2742_v28 = vld [vmem:[%s3433_s7 + $0x60] sm:$0xff]   ;;  %v2744_v30 = vld [vmem:[%s3433_s7 + $0x68] sm:$0xff]  }
 0x15a   :  { %v2743_v29 = vld [vmem:[%s3433_s7 + $0x20] sm:$0xff]  }
 0x15b   :  { %v1160_v36 = vadd.f32 %v1159_v61, %v1063_v35  ;;  %2558 = vmatmul.mubr.bf16.gmra.mrb[52].mxu1 %v1209_v62  ;;  %v1066_v38 = vadd.f32 %v2411_v33, %v3250_v19  ;;  %v2117_v31 = vld [vmem:[%s3430_s4] ss:$0 sm:$0xff] }
 0x15d   :  { %v1163_v39 = vadd.f32 %v1162_v3, %v1066_v38  ;;  %v2412_v2 = vpop.f32.mrb[52].mxu0  ;;  %v1198_v41 = vmax.f32 %v1160_v36, 0.0 }
 0x15e   :  { %v2413_v40 = vpop.f32.mrb[53].mxu0 }
 0x15f   :  { %v1199_v1 = vmax.f32 %v1163_v39, 0.0  ;;  %v2414_v43 = vadd.f32 %v2413_v40, %v2412_v2  ;;  %v2415_v44 = vpop.f32.mrb[54].mxu0 }
 0x160   :  { %v2416_v46 = vpop.f32.mrb[55].mxu0 }
 0x161   :  { %v1210_v5 = vpack.c.bf16 %v1199_v1, %v1198_v41  ;;  %v1071_v47 = vadd.f32 %v2414_v43, %v3254_v34  ;;  %v2417_v48 = vadd.f32 %v2416_v46, %v2415_v44 }
 0x163   :  { %v1168_v49 = vadd.f32 %v2531_v58, %v1071_v47  ;;  %v1074_v16 = vadd.f32 %v2417_v48, %v3256_v37  ;;  %2561 = vmatprep.mubr.bf16.mxu1 %v1210_v5 }
 0x165   :  { %v1171_v51 = vadd.f32 %v2532_v63, %v1074_v16  ;;  %v2418_v52 = vpop.f32.mrb[56].mxu0  ;;  %v1200_v19 = vmax.f32 %v1168_v49, 0.0 }
 0x166   :  { %v2419_v54 = vpop.f32.mrb[57].mxu0 }
 0x167   :  { %v1201_v55 = vmax.f32 %v1171_v51, 0.0  ;;  %v2420_v57 = vadd.f32 %v2419_v54, %v2418_v52  ;;  %v2421_v59 = vpop.f32.mrb[58].mxu0 }
 0x168   :  { %v2422_v60 = vpop.f32.mrb[59].mxu0 }
 0x169   :  { %v2423_v22 = vadd.f32 %v2422_v60, %v2421_v59  ;;  %v1079_v61 = vadd.f32 %v2420_v57, %v3260_v53  ;;  %v1211_v0 = vpack.c.bf16 %v1201_v55, %v1200_v19 }
 0x16b   :  { %v1176_v25 = vadd.f32 %v1175_v20, %v1079_v61  ;;  %2562 = vmatmul.mubr.bf16.gmra.mrb[56].mxu1 %v1211_v0  ;;  %v1082_v34 = vadd.f32 %v2423_v22, %v3262_v56  ;;  %v2733_v20 = vld [vmem:[%s3431_s5 + $0x74] ss:$8 sps:$4 sm:$0xff]  }
 0x16c   :  { %1528 = vmatprep.subr.bf16.mxu0 %v2733_v20 }
 0x16d   :  { %v1179_v58 = vadd.f32 %v1178_v24, %v1082_v34  ;;  %v2424_v3 = vpop.f32.mrb[60].mxu0  ;;  %v1202_v4 = vmax.f32 %v1176_v25, 0.0  ;;  %1529 = vmatpush1.bf16.msra.mxu0 %v2731_v23  ;;  %v2738_v24 = vld [vmem:[%s3433_s7 + $0x50] sm:$0xff]  }
 0x16e   :  { %v2425_v37 = vpop.f32.mrb[61].mxu0 }
 0x16f   :  { %v1203_v63 = vmax.f32 %v1179_v58, 0.0  ;;  %v2426_v6 = vadd.f32 %v2425_v37, %v2424_v3  ;;  %v2427_v7 = vpop.f32.mrb[62].mxu0 }
 0x170   :  { %v2428_v8 = vpop.f32.mrb[63].mxu0 }
 0x171   :  { %v1212_v10 = vpack.c.bf16 %v1203_v63, %v1202_v4  ;;  %v1087_v11 = vadd.f32 %v2426_v6, %v3266_v9  ;;  %v2429_v13 = vadd.f32 %v2428_v8, %v2427_v7  ;;  %v2774_v9 = vmov 0  }
 0x172   :  { %1546 = vmatprep.mubr.bf16.mxu0 %v2774_v9 }
 0x173   :  { %v1184_v14 = vadd.f32 %v3276_v15, %v1087_v11  ;;  %v1090_v53 = vadd.f32 %v2429_v13, %v3268_v12  ;;  %2565 = vmatprep.mubr.bf16.mxu1 %v1212_v10  ;;  %v2734_v12 = vld [vmem:[%s3433_s7 + $0x40] sm:$0xff]  }
 0x174   :  { %v2735_v15 = vld [vmem:[%s3433_s7] sm:$0xff]   ;;  %2455 = vmatprep.subr.bf16.mxu1 %v2734_v12 }
 0x175   :  { %v1187_v17 = vadd.f32 %v2536_v21, %v1090_v53  ;;  %v1204_v42 = vmax.f32 %v1184_v14, 0.0  ;;  %v2736_v21 = vld [vmem:[%s3433_s7 + $0x48] sm:$0xff]   ;;  %2456 = vmatpush3.bf16.msra.mxu1 %v2735_v15 }
 0x176   :  { %2457 = vmatprep.subr.bf16.mxu1 %v2736_v21 }
 0x177   :  { %v1205_v56 = vmax.f32 %v1187_v17, 0.0 }
 0x179   :  { %v1213_v18 = vpack.c.bf16 %v1205_v56, %v1204_v42  ;;  %2458 = vmatpush3.bf16.msra.mxu1 %v2737_v45 }
 0x17a   :  { %2459 = vmatprep.subr.bf16.mxu1 %v2738_v24 }
 0x17b   :  { %2566 = vmatmul.mubr.bf16.gmra.mrb[60].mxu1 %v1213_v18 }
 0x17d   :  { %2460 = vmatpush3.bf16.msra.mxu1 %v2739_v26  ;;  %v2745_v26 = vld [vmem:[%s3433_s7 + $0x28] sm:$0xff]  }
 0x17e   :  { %2461 = vmatprep.subr.bf16.mxu1 %v2740_v50  ;;  %v2746_v50 = vld [vmem:[%s3433_s7 + $0x70] sm:$0xff]  }
 0x181   :  { %2462 = vmatpush3.bf16.msra.mxu1 %v2741_v27  ;;  %v2747_v27 = vld [vmem:[%s3433_s7 + $0x30] sm:$0xff]  }
 0x182   :  { %2463 = vmatprep.subr.bf16.mxu1 %v2742_v28  ;;  %v2749_v28 = vld [vmem:[%s3433_s7 + $0x38] sm:$0xff]  }
 0x185   :  { %2464 = vmatpush3.bf16.msra.mxu1 %v2743_v29  ;;  %v1424_v29 = vlaneseq }
 0x186   :  { %2465 = vmatprep.subr.bf16.mxu1 %v2744_v30 }
 0x187   :  { %v1425_v30 = vshrl.u32 %v1424_v29, 7 }
 0x189   :  { %2466 = vmatpush3.bf16.msra.mxu1 %v2745_v26 }
 0x18a   :  { %2467 = vmatprep.subr.bf16.mxu1 %v2746_v50 }
 0x18d   :  { %2468 = vmatpush3.bf16.msra.mxu1 %v2747_v27 }
 0x21e   :  { %v2555_v32 = vpop.f32.mrb[48].mxu1 }
 0x21f   :  { %v1328_v33 = vadd.f32 %v2555_v32, %v2117_v31  ;;  %v1319_v35 = vpop.f32.mrb[49].mxu1  ;;  %v1422_v32 = vld [vmem:[%s3432_s6] sm:$0x3] }
 0x220   :  { %v1320_v62 = vadd.f32 %v2117_v31, %v1319_v35  ;;  %v2556_v36 = vpop.f32.mrb[50].mxu1 }
 0x221   :  { %v1331_v38 = vadd.f32 %v2556_v36, %v2117_v31  ;;  %v1322_v39 = vpop.f32.mrb[51].mxu1  ;;  %v1384_v40 = vmax.f32 %v1328_v33, 0.0  ;;  %v1430_v33 = vsub.s32 1, %v1425_v30 }
 0x222   :  { %v1323_v2 = vadd.f32 %v2117_v31, %v1322_v39  ;;  %v1382_v1 = vmax.f32 %v1320_v62, 0.0 }
 0x223   :  { %v1385_v41 = vmax.f32 %v1331_v38, 0.0  ;;  %v3359_v62 = vrot.slane %v1422_v32, %v1430_v33 }
 0x224   :  { %v1383_v43 = vmax.f32 %v1323_v2, 0.0 }
 0x225   :  { %v1399_v44 = vpack.c.bf16 %v1385_v41, %v1384_v40 }
 0x226   :  { %v1398_v46 = vpack.c.bf16 %v1383_v43, %v1382_v1 }
 0x228   :  { %1547 = vmatmul.mubr.bf16.vlgmr.msra.gmra.mrb[64].mxu0 %v1398_v46 }
 0x229   :  { %1556 = vmatprep.mubr.bf16.mxu0 %v2774_v9 }
 0x22e   :  { %v2559_v5 = vpop.f32.mrb[52].mxu1 }
 0x22f   :  { %v1344_v47 = vadd.f32 %v2559_v5, %v2117_v31  ;;  %v1335_v48 = vpop.f32.mrb[53].mxu1 }
 0x230   :  { %v1336_v49 = vadd.f32 %v2117_v31, %v1335_v48  ;;  %v2560_v16 = vpop.f32.mrb[54].mxu1  ;;  %1557 = vmatmul.mubr.bf16.gmra.mrb[68].mxu0 %v1399_v44 }
 0x231   :  { %v1347_v51 = vadd.f32 %v2560_v16, %v2117_v31  ;;  %v1338_v52 = vpop.f32.mrb[55].mxu1  ;;  %1566 = vmatprep.mubr.bf16.mxu0 %v2774_v9  ;;  %v1388_v19 = vmax.f32 %v1344_v47, 0.0 }
 0x232   :  { %v1339_v54 = vadd.f32 %v2117_v31, %v1338_v52  ;;  %v1386_v57 = vmax.f32 %v1336_v49, 0.0 }
 0x233   :  { %v1389_v55 = vmax.f32 %v1347_v51, 0.0 }
 0x234   :  { %v1387_v59 = vmax.f32 %v1339_v54, 0.0 }
 0x235   :  { %v1401_v60 = vpack.c.bf16 %v1389_v55, %v1388_v19 }
 0x236   :  { %v1400_v22 = vpack.c.bf16 %v1387_v59, %v1386_v57 }
 0x238   :  { %1567 = vmatmul.mubr.bf16.gmra.mrb[72].mxu0 %v1400_v22 }
 0x239   :  { %1576 = vmatprep.mubr.bf16.mxu0 %v2774_v9 }
 0x23e   :  { %v2563_v61 = vpop.f32.mrb[56].mxu1 }
 0x23f   :  { %v1360_v0 = vadd.f32 %v2563_v61, %v2117_v31  ;;  %v1351_v25 = vpop.f32.mrb[57].mxu1 }
 0x240   :  { %v1352_v34 = vadd.f32 %v2117_v31, %v1351_v25  ;;  %v2564_v58 = vpop.f32.mrb[58].mxu1  ;;  %1577 = vmatmul.mubr.bf16.gmra.mrb[76].mxu0 %v1401_v60 }
 0x241   :  { %v1363_v3 = vadd.f32 %v2564_v58, %v2117_v31  ;;  %v1354_v37 = vpop.f32.mrb[59].mxu1  ;;  %1586 = vmatprep.mubr.bf16.mxu0 %v2774_v9  ;;  %v1392_v63 = vmax.f32 %v1360_v0, 0.0 }
 0x242   :  { %v1355_v4 = vadd.f32 %v2117_v31, %v1354_v37  ;;  %v1390_v7 = vmax.f32 %v1352_v34, 0.0 }
 0x243   :  { %v1393_v6 = vmax.f32 %v1363_v3, 0.0 }
 0x244   :  { %v1391_v8 = vmax.f32 %v1355_v4, 0.0 }
 0x245   :  { %v1403_v10 = vpack.c.bf16 %v1393_v6, %v1392_v63 }
 0x246   :  { %v1402_v11 = vpack.c.bf16 %v1391_v8, %v1390_v7 }
 0x248   :  { %1587 = vmatmul.mubr.bf16.gmra.mrb[80].mxu0 %v1402_v11 }
 0x249   :  { %1596 = vmatprep.mubr.bf16.mxu0 %v2774_v9 }
 0x24e   :  { %v2567_v13 = vpop.f32.mrb[60].mxu1 }
 0x24f   :  { %v1376_v14 = vadd.f32 %v2567_v13, %v2117_v31  ;;  %v1367_v53 = vpop.f32.mrb[61].mxu1 }
 0x250   :  { %v1368_v17 = vadd.f32 %v2117_v31, %v1367_v53  ;;  %v2568_v42 = vpop.f32.mrb[62].mxu1  ;;  %1597 = vmatmul.mubr.bf16.gmra.mrb[84].mxu0 %v1403_v10 }
 0x251   :  { %v1379_v56 = vadd.f32 %v2568_v42, %v2117_v31  ;;  %v1370_v18 = vpop.f32.mrb[63].mxu1  ;;  %1606 = vmatprep.mubr.bf16.mxu0 %v2774_v9  ;;  %v1396_v23 = vmax.f32 %v1376_v14, 0.0 }
 0x252   :  { %v1371_v20 = vadd.f32 %v2117_v31, %v1370_v18  ;;  %v1394_v15 = vmax.f32 %v1368_v17, 0.0  ;;  %v1426_v31 = vsub.s32 0, %v1425_v30 }
 0x253   :  { %v1397_v12 = vmax.f32 %v1379_v56, 0.0 }
 0x254   :  { %v1395_v21 = vmax.f32 %v1371_v20, 0.0  ;;  %v3357_v35 = vrot.slane %v1422_v32, %v1426_v31 }
 0x255   :  { %v1405_v45 = vpack.c.bf16 %v1397_v12, %v1396_v23 }
 0x256   :  { %v1404_v24 = vpack.c.bf16 %v1395_v21, %v1394_v15 }
 0x258   :  { %1607 = vmatmul.mubr.bf16.gmra.mrb[88].mxu0 %v1404_v24 }
 0x259   :  { %1616 = vmatprep.mubr.bf16.mxu0 %v2774_v9  ;;  %v2748_v9 = vld [vmem:[%s3433_s7 + $0x78] sm:$0xff]  }
 0x25a   :  { %2469 = vmatprep.subr.bf16.mxu1 %v2748_v9 }
 0x25b   :  { %2470 = vmatpush3.bf16.msra.mxu1 %v2749_v28 }
 0x260   :  { %1617 = vmatmul.mubr.bf16.gmra.mrb[92].mxu0 %v1405_v45 }
 0x2fb   :  { %v1548_v36 = vpop.f32.mrb[64].mxu0 }
 0x2fc   :  { %v1549_v38 = vadd.f32 %v1548_v36, %v3357_v35  ;;  %v1550_v39 = vpop.f32.mrb[65].mxu0 }
 0x2fd   :  { %v1551_v2 = vadd.f32 %v1550_v39, %v3359_v62  ;;  %v1552_v40 = vpop.f32.mrb[66].mxu0 }
 0x2fe   :  { %v1553_v41 = vadd.f32 %v1552_v40, %v3357_v35  ;;  %v1554_v1 = vpop.f32.mrb[67].mxu0  ;;  %v1627_v44 = vmax.f32 %v1549_v38, 0.0 }
 0x2ff   :  { %v1555_v43 = vadd.f32 %v1554_v1, %v3359_v62  ;;  %v1628_v5 = vmax.f32 %v1551_v2, 0.0 }
 0x300   :  { %v1629_v46 = vmax.f32 %v1553_v41, 0.0 }
 0x301   :  { %v1630_v47 = vmax.f32 %v1555_v43, 0.0 }
 0x302   :  { %v1659_v48 = vpack.c.bf16 %v1629_v46, %v1627_v44 }
 0x303   :  { %v1660_v49 = vpack.c.bf16 %v1630_v47, %v1628_v5  ;;  %v1558_v16 = vpop.f32.mrb[68].mxu0 }
 0x304   :  { %v1559_v51 = vadd.f32 %v1558_v16, %v3357_v35  ;;  %v1560_v52 = vpop.f32.mrb[69].mxu0 }
 0x305   :  { %v1561_v54 = vadd.f32 %v1560_v52, %v3359_v62  ;;  %v1562_v19 = vpop.f32.mrb[70].mxu0  ;;  %1842 = vmatprep.mubr.bf16.mxu1 %v1660_v49 }
 0x306   :  { %v1563_v55 = vadd.f32 %v1562_v19, %v3357_v35  ;;  %v1564_v57 = vpop.f32.mrb[71].mxu0  ;;  %1843 = vmatmul.mubr.bf16.vlgmr.msra.gmra.mrb[64].mxu1 %v1659_v48  ;;  %v1631_v60 = vmax.f32 %v1559_v51, 0.0 }
 0x307   :  { %v1565_v59 = vadd.f32 %v1564_v57, %v3359_v62  ;;  %v1632_v61 = vmax.f32 %v1561_v54, 0.0 }
 0x308   :  { %v1633_v22 = vmax.f32 %v1563_v55, 0.0 }
 0x309   :  { %v1634_v0 = vmax.f32 %v1565_v59, 0.0 }
 0x30a   :  { %v1661_v25 = vpack.c.bf16 %v1633_v22, %v1631_v60 }
 0x30b   :  { %v1662_v34 = vpack.c.bf16 %v1634_v0, %v1632_v61  ;;  %v1568_v58 = vpop.f32.mrb[72].mxu0 }
 0x30c   :  { %v1569_v3 = vadd.f32 %v1568_v58, %v3357_v35  ;;  %v1570_v37 = vpop.f32.mrb[73].mxu0 }
 0x30d   :  { %v1571_v4 = vadd.f32 %v1570_v37, %v3359_v62  ;;  %v1572_v63 = vpop.f32.mrb[74].mxu0  ;;  %1850 = vmatprep.mubr.bf16.mxu1 %v1662_v34 }
 0x30e   :  { %v1573_v6 = vadd.f32 %v1572_v63, %v3357_v35  ;;  %v1574_v7 = vpop.f32.mrb[75].mxu0  ;;  %1851 = vmatmul.mubr.bf16.gmra.mrb[68].mxu1 %v1661_v25  ;;  %v1635_v10 = vmax.f32 %v1569_v3, 0.0 }
 0x30f   :  { %v1575_v8 = vadd.f32 %v1574_v7, %v3359_v62  ;;  %v1636_v13 = vmax.f32 %v1571_v4, 0.0 }
 0x310   :  { %v1637_v11 = vmax.f32 %v1573_v6, 0.0 }
 0x311   :  { %v1638_v14 = vmax.f32 %v1575_v8, 0.0 }
 0x312   :  { %v1663_v53 = vpack.c.bf16 %v1637_v11, %v1635_v10 }
 0x313   :  { %v1664_v17 = vpack.c.bf16 %v1638_v14, %v1636_v13  ;;  %v1578_v42 = vpop.f32.mrb[76].mxu0 }
 0x314   :  { %v1579_v56 = vadd.f32 %v1578_v42, %v3357_v35  ;;  %v1580_v18 = vpop.f32.mrb[77].mxu0 }
 0x315   :  { %v1581_v20 = vadd.f32 %v1580_v18, %v3359_v62  ;;  %v1582_v23 = vpop.f32.mrb[78].mxu0  ;;  %1858 = vmatprep.mubr.bf16.mxu1 %v1664_v17 }
 0x316   :  { %v1583_v12 = vadd.f32 %v1582_v23, %v3357_v35  ;;  %v1584_v15 = vpop.f32.mrb[79].mxu0  ;;  %1859 = vmatmul.mubr.bf16.gmra.mrb[72].mxu1 %v1663_v53  ;;  %v1639_v45 = vmax.f32 %v1579_v56, 0.0 }
 0x317   :  { %v1585_v21 = vadd.f32 %v1584_v15, %v3359_v62  ;;  %v1640_v26 = vmax.f32 %v1581_v20, 0.0 }
 0x318   :  { %v1641_v24 = vmax.f32 %v1583_v12, 0.0 }
 0x319   :  { %v1642_v50 = vmax.f32 %v1585_v21, 0.0 }
 0x31a   :  { %v1665_v27 = vpack.c.bf16 %v1641_v24, %v1639_v45 }
 0x31b   :  { %v1666_v9 = vpack.c.bf16 %v1642_v50, %v1640_v26  ;;  %v1588_v28 = vpop.f32.mrb[80].mxu0 }
 0x31c   :  { %v1589_v29 = vadd.f32 %v1588_v28, %v3357_v35  ;;  %v1590_v30 = vpop.f32.mrb[81].mxu0 }
 0x31d   :  { %v1591_v31 = vadd.f32 %v1590_v30, %v3359_v62  ;;  %v1592_v32 = vpop.f32.mrb[82].mxu0  ;;  %1866 = vmatprep.mubr.bf16.mxu1 %v1666_v9 }
 0x31e   :  { %v1593_v33 = vadd.f32 %v1592_v32, %v3357_v35  ;;  %v1594_v36 = vpop.f32.mrb[83].mxu0  ;;  %1867 = vmatmul.mubr.bf16.gmra.mrb[76].mxu1 %v1665_v27  ;;  %v1643_v39 = vmax.f32 %v1589_v29, 0.0 }
 0x31f   :  { %v1595_v38 = vadd.f32 %v1594_v36, %v3359_v62  ;;  %v1644_v40 = vmax.f32 %v1591_v31, 0.0 }
 0x320   :  { %v1645_v2 = vmax.f32 %v1593_v33, 0.0 }
 0x321   :  { %v1646_v41 = vmax.f32 %v1595_v38, 0.0 }
 0x322   :  { %v1667_v1 = vpack.c.bf16 %v1645_v2, %v1643_v39 }
 0x323   :  { %v1668_v43 = vpack.c.bf16 %v1646_v41, %v1644_v40  ;;  %v1598_v44 = vpop.f32.mrb[84].mxu0 }
 0x324   :  { %v1599_v46 = vadd.f32 %v1598_v44, %v3357_v35  ;;  %v1600_v5 = vpop.f32.mrb[85].mxu0 }
 0x325   :  { %v1601_v47 = vadd.f32 %v1600_v5, %v3359_v62  ;;  %v1602_v48 = vpop.f32.mrb[86].mxu0  ;;  %1874 = vmatprep.mubr.bf16.mxu1 %v1668_v43 }
 0x326   :  { %v1603_v49 = vadd.f32 %v1602_v48, %v3357_v35  ;;  %v1604_v16 = vpop.f32.mrb[87].mxu0  ;;  %1875 = vmatmul.mubr.bf16.gmra.mrb[80].mxu1 %v1667_v1  ;;  %v1647_v52 = vmax.f32 %v1599_v46, 0.0 }
 0x327   :  { %v1605_v51 = vadd.f32 %v1604_v16, %v3359_v62  ;;  %v1648_v19 = vmax.f32 %v1601_v47, 0.0 }
 0x328   :  { %v1649_v54 = vmax.f32 %v1603_v49, 0.0 }
 0x329   :  { %v1650_v55 = vmax.f32 %v1605_v51, 0.0 }
 0x32a   :  { %v1669_v57 = vpack.c.bf16 %v1649_v54, %v1647_v52 }
 0x32b   :  { %v1670_v59 = vpack.c.bf16 %v1650_v55, %v1648_v19  ;;  %v1608_v60 = vpop.f32.mrb[88].mxu0 }
 0x32c   :  { %v1609_v22 = vadd.f32 %v1608_v60, %v3357_v35  ;;  %v1610_v61 = vpop.f32.mrb[89].mxu0 }
 0x32d   :  { %v1611_v0 = vadd.f32 %v1610_v61, %v3359_v62  ;;  %v1612_v25 = vpop.f32.mrb[90].mxu0  ;;  %1882 = vmatprep.mubr.bf16.mxu1 %v1670_v59 }
 0x32e   :  { %v1613_v34 = vadd.f32 %v1612_v25, %v3357_v35  ;;  %v1614_v58 = vpop.f32.mrb[91].mxu0  ;;  %1883 = vmatmul.mubr.bf16.gmra.mrb[84].mxu1 %v1669_v57  ;;  %v1651_v37 = vmax.f32 %v1609_v22, 0.0 }
 0x32f   :  { %v1615_v3 = vadd.f32 %v1614_v58, %v3359_v62  ;;  %v1652_v63 = vmax.f32 %v1611_v0, 0.0 }
 0x330   :  { %v1653_v4 = vmax.f32 %v1613_v34, 0.0 }
 0x331   :  { %v1654_v6 = vmax.f32 %v1615_v3, 0.0 }
 0x332   :  { %v1671_v7 = vpack.c.bf16 %v1653_v4, %v1651_v37 }
 0x333   :  { %v1672_v8 = vpack.c.bf16 %v1654_v6, %v1652_v63  ;;  %v1618_v10 = vpop.f32.mrb[92].mxu0 }
 0x334   :  { %v1619_v11 = vadd.f32 %v1618_v10, %v3357_v35  ;;  %v1620_v13 = vpop.f32.mrb[93].mxu0 }
 0x335   :  { %v1621_v14 = vadd.f32 %v1620_v13, %v3359_v62  ;;  %v1622_v53 = vpop.f32.mrb[94].mxu0  ;;  %1890 = vmatprep.mubr.bf16.mxu1 %v1672_v8 }
 0x336   :  { %v1623_v17 = vadd.f32 %v1622_v53, %v3357_v35  ;;  %v1624_v42 = vpop.f32.mrb[95].mxu0  ;;  %1891 = vmatmul.mubr.bf16.gmra.mrb[88].mxu1 %v1671_v7  ;;  %v1655_v18 = vmax.f32 %v1619_v11, 0.0  ;;  %v3396_v35 = vld [vmem:[%s3434_s8] ss:$0 sm:$0xff]  ;;  %s2775_s8 = smov [#allocation2]  }
 0x337   :  { %v1625_v56 = vadd.f32 %v1624_v42, %v3359_v62  ;;  %v1656_v23 = vmax.f32 %v1621_v14, 0.0  ;;  %s1992_s12 = sshll.u32 %s2775_s8, 4  ;;  %s1993_s12 = int_to_ptr.vmem [resolvable:$true] %s1992_s12 }
 0x338   :  { %v1657_v20 = vmax.f32 %v1623_v17, 0.0  ;;  %s2750_s13 = scalar_lea.vmem %s1993_s12, 1024  ;;  %p2755_p1 = scmp.lt.s32.totalorder %s1993_s12, %s1993_s12 }
 0x339   :  { %v1658_v12 = vmax.f32 %v1625_v56, 0.0  ;;  %p2751_p0 = scmp.ne.s32.totalorder %s1993_s12, %s2750_s13  ;;  %p2756_p2 = scmp.lt.s32.totalorder %s2750_s13, %s2750_s13 }
 0x33a   :  { %v1673_v15 = vpack.c.bf16 %v1657_v20, %v1655_v18 }
 0x33b   :  { %v1674_v21 = vpack.c.bf16 %v1658_v12, %v1656_v23  ;;  %p2757_p3 = por %p2756_p2, %p2755_p1 }
 0x33d   :  { %1898 = vmatprep.mubr.bf16.mxu1 %v1674_v21  ;;  %p2758_p4 = pnand %p2757_p3, %p2751_p0 }
 0x33e   :  { %1899 = vmatmul.mubr.bf16.gmra.mrb[92].mxu1 %v1673_v15 }
 0x3d9   :  { %v2471_v45 = vpop.f32.mrb[64].mxu1 }
 0x3da   :  { %v2472_v24 = vpop.f32.mrb[65].mxu1 }
 0x3db   :  { %v2473_v26 = vadd.f32 %v2472_v24, %v2471_v45  ;;  %v2474_v50 = vpop.f32.mrb[66].mxu1 }
 0x3dc   :  { %v2475_v27 = vpop.f32.mrb[67].mxu1 }
 0x3dd   :  { %v2476_v9 = vadd.f32 %v2475_v27, %v2474_v50  ;;  %v1845_v62 = vadd.f32 %v2473_v26, %v3396_v35 }
 0x3df   :  { %v1848_v28 = vadd.f32 %v2476_v9, %v3396_v35 }
 0x3e1   :  { %v2194_v29 = vpack.c.bf16 %v1848_v28, %v1845_v62  ;;  %v2477_v30 = vpop.f32.mrb[68].mxu1 }
 0x3e2   :  { %v2478_v31 = vpop.f32.mrb[69].mxu1 }
 0x3e3   :  { %2195 = vst [vmem:[#allocation2] sm:$0xff] %v2194_v29   ;;  %v2479_v32 = vadd.f32 %v2478_v31, %v2477_v30  ;;  %v2480_v33 = vpop.f32.mrb[70].mxu1 }
 0x3e4   :  { %v2481_v36 = vpop.f32.mrb[71].mxu1 }
 0x3e5   :  { %v2482_v38 = vadd.f32 %v2481_v36, %v2480_v33  ;;  %v1853_v39 = vadd.f32 %v2479_v32, %v3396_v35 }
 0x3e7   :  { %v1856_v2 = vadd.f32 %v2482_v38, %v3396_v35 }
 0x3e9   :  { %v2199_v40 = vpack.c.bf16 %v1856_v2, %v1853_v39  ;;  %v2483_v41 = vpop.f32.mrb[72].mxu1 }
 0x3ea   :  { %v2484_v1 = vpop.f32.mrb[73].mxu1 }
 0x3eb   :  { %2231 = vst [vmem:[#allocation2 + $0x8] sm:$0xff] %v2199_v40   ;;  %v2485_v43 = vadd.f32 %v2484_v1, %v2483_v41  ;;  %v2486_v44 = vpop.f32.mrb[74].mxu1 }
 0x3ec   :  { %v2487_v46 = vpop.f32.mrb[75].mxu1 }
 0x3ed   :  { %v2488_v5 = vadd.f32 %v2487_v46, %v2486_v44  ;;  %v1861_v47 = vadd.f32 %v2485_v43, %v3396_v35 }
 0x3ef   :  { %v1864_v48 = vadd.f32 %v2488_v5, %v3396_v35 }
 0x3f1   :  { %v2204_v49 = vpack.c.bf16 %v1864_v48, %v1861_v47  ;;  %v2489_v16 = vpop.f32.mrb[76].mxu1 }
 0x3f2   :  { %v2490_v51 = vpop.f32.mrb[77].mxu1 }
 0x3f3   :  { %2232 = vst [vmem:[#allocation2 + $0x10] sm:$0xff] %v2204_v49   ;;  %v2491_v52 = vadd.f32 %v2490_v51, %v2489_v16  ;;  %v2492_v54 = vpop.f32.mrb[78].mxu1 }
 0x3f4   :  { %v2493_v19 = vpop.f32.mrb[79].mxu1 }
 0x3f5   :  { %v2494_v55 = vadd.f32 %v2493_v19, %v2492_v54  ;;  %v1869_v57 = vadd.f32 %v2491_v52, %v3396_v35 }
 0x3f7   :  { %v1872_v59 = vadd.f32 %v2494_v55, %v3396_v35 }
 0x3f9   :  { %v2209_v60 = vpack.c.bf16 %v1872_v59, %v1869_v57  ;;  %v2495_v22 = vpop.f32.mrb[80].mxu1 }
 0x3fa   :  { %v2496_v61 = vpop.f32.mrb[81].mxu1 }
 0x3fb   :  { %2233 = vst [vmem:[#allocation2 + $0x18] sm:$0xff] %v2209_v60   ;;  %v2497_v0 = vadd.f32 %v2496_v61, %v2495_v22  ;;  %v2498_v25 = vpop.f32.mrb[82].mxu1 }
 0x3fc   :  { %v2499_v34 = vpop.f32.mrb[83].mxu1 }
 0x3fd   :  { %v2500_v58 = vadd.f32 %v2499_v34, %v2498_v25  ;;  %v1877_v3 = vadd.f32 %v2497_v0, %v3396_v35 }
 0x3ff   :  { %v1880_v37 = vadd.f32 %v2500_v58, %v3396_v35 }
 0x401   :  { %v2214_v4 = vpack.c.bf16 %v1880_v37, %v1877_v3  ;;  %v2501_v63 = vpop.f32.mrb[84].mxu1 }
 0x402   :  { %v2502_v6 = vpop.f32.mrb[85].mxu1 }
 0x403   :  { %2234 = vst [vmem:[#allocation2 + $0x20] sm:$0xff] %v2214_v4   ;;  %v2503_v7 = vadd.f32 %v2502_v6, %v2501_v63  ;;  %v2504_v8 = vpop.f32.mrb[86].mxu1 }
 0x404   :  { %v2505_v10 = vpop.f32.mrb[87].mxu1 }
 0x405   :  { %v2506_v11 = vadd.f32 %v2505_v10, %v2504_v8  ;;  %v1885_v13 = vadd.f32 %v2503_v7, %v3396_v35 }
 0x407   :  { %v1888_v14 = vadd.f32 %v2506_v11, %v3396_v35 }
 0x409   :  { %v2219_v53 = vpack.c.bf16 %v1888_v14, %v1885_v13  ;;  %v2507_v17 = vpop.f32.mrb[88].mxu1 }
 0x40a   :  { %v2508_v42 = vpop.f32.mrb[89].mxu1 }
 0x40b   :  { %2235 = vst [vmem:[#allocation2 + $0x28] sm:$0xff] %v2219_v53   ;;  %v2509_v56 = vadd.f32 %v2508_v42, %v2507_v17  ;;  %v2510_v18 = vpop.f32.mrb[90].mxu1 }
 0x40c   :  { %v2511_v20 = vpop.f32.mrb[91].mxu1 }
 0x40d   :  { %v2512_v23 = vadd.f32 %v2511_v20, %v2510_v18  ;;  %v1893_v12 = vadd.f32 %v2509_v56, %v3396_v35 }
 0x40f   :  { %v1896_v15 = vadd.f32 %v2512_v23, %v3396_v35 }
 0x411   :  { %v2224_v21 = vpack.c.bf16 %v1896_v15, %v1893_v12  ;;  %v2513_v45 = vpop.f32.mrb[92].mxu1 }
 0x412   :  { %v2514_v24 = vpop.f32.mrb[93].mxu1 }
 0x413   :  { %2236 = vst [vmem:[#allocation2 + $0x30] sm:$0xff] %v2224_v21   ;;  %v2515_v26 = vadd.f32 %v2514_v24, %v2513_v45  ;;  %v2516_v50 = vpop.f32.mrb[94].mxu1 }
 0x414   :  { %v2517_v27 = vpop.f32.mrb[95].mxu1 }
 0x415   :  { %v2518_v9 = vadd.f32 %v2517_v27, %v2516_v50  ;;  %v1901_v62 = vadd.f32 %v2515_v26, %v3396_v35 }
 0x417   :  { %v1904_v28 = vadd.f32 %v2518_v9, %v3396_v35 }
 0x419   :  { %v2229_v29 = vpack.c.bf16 %v1904_v28, %v1901_v62 }
 0x41b   :  { %2237 = vst [vmem:[#allocation2 + $0x38] sm:$0xff] %v2229_v29  }
 0x41c   :  { %2761 = shalt.err (!%p2758_p4)
}
 0x41d   :  { %s2762_s16 = scalar_lea.hbm %s3435_s9, 1024 }
 0x41e   :  { %p2763_p5 = scmp.ne.s32.totalorder %s3435_s9, %s2762_s16  ;;  %p2766_p6 = scmp.lt.u32.totalorder %s2762_s16, %s3435_s9 }
 0x420   :  { %p2768_p7 = pnand %p2766_p6, %p2763_p5 }
 0x422   :  { %2771 = shalt.err (!%p2768_p7)
}
 0x423   :  { %s2776_s21 = smov 64   ;;  %s2777_s3 = smov 4  }
 0x424   :  { %1998 = dma.vmem_to_hbm [thread:$0]  %s1993_s12, 1024, %s3435_s9, [#allocation3], %s2776_s21, %s2776_s21, %s2777_s3  }
 0x425   :  { %2772 = dma.done.wait [#allocation3], 1024  }
 0x426   :  { %2773 = vsyncadd [#allocation3], 4294966272 }
 0x427   :  { %2002 = vsyncpa [#allocation3], 1 }

</bundles_post_ra>
